<compile_context>
chip_gen: v5e
topology: v5e:2x2
jax: 0.10.0
libtpu: 0.0.40
codegen_flags: <defaults>
</compile_context>

<pallas_src>
import functools
import math

import jax
import jax.numpy as jnp
from jax.experimental import pallas as pl
from jax.experimental.pallas import tpu as pltpu

EPS = 1e-5


# ------------------------------ fused kernel -------------------------------

def _actor_fused_kernel(x1_ref, w1_ref, w2_ref, w3_hbm, b3_ref,
                        w4_ref, b4_ref, w5_ref, b5_ref,
                        out_ref, w3_vmem, dma_sem, *, batch):
    """Whole Actor forward on VMEM-resident data (single grid point).

    x1_ref  : (256*N, 128) bf16  conv1 im2col (K padded 108->128), rows ordered
                                 (conv2-tap t, conv2-out-pixel p, n).
    w1_ref  : (128, 64)   bf16   conv1 weight (rows: cin*kh*kw, zero-padded).
    w2_ref  : (1024, 128) bf16   conv2 weight, rows grouped (tap, cin).
    w3_hbm  : (2048, 256) bf16   conv3 weight in HBM (manually DMA'd).
    b3/b4/b5: (1, C)      f32    biases of conv3 / fc / out.
    w4_ref  : (256, 128)  bf16   fc weight (transposed).
    w5_ref  : (128, A)    bf16   out weight (transposed).
    w3_vmem : (2048, 256) bf16   VMEM scratch landing buffer for w3.
    """
    n16 = 16 * batch

    # Kick off the conv3-weight DMA (largest operand, ~1 MiB) immediately so
    # it overlaps with conv1/conv2 compute; awaited just before the conv3 dot.
    w3_copy = pltpu.make_async_copy(w3_hbm, w3_vmem, dma_sem.at[0])
    w3_copy.start()

    # ---- conv1 (k=6, s=6) : one (256N,128)@(128,64) matmul -----------------
    y1 = jnp.dot(x1_ref[...], w1_ref[...], preferred_element_type=jnp.float32)

    # Repack tap-major rows into lane blocks: (256N, 64) -> (16N, 1024) so the
    # BN/SiLU stage runs on full 128-lane tiles and conv2 is a single matmul.
    # Row slab t has rows [t*16N, (t+1)*16N) (8-aligned); lane offset = t*64.
    y1r = jnp.concatenate(
        [y1[t * n16:(t + 1) * n16, :] for t in range(16)], axis=1)

    # ---- BN1 (training-mode batch stats) + SiLU ----------------------------
    # Per-(tap, channel) column stats over rows, then average the 16 tap
    # groups -> per-channel stats over all N*16*16 spatial positions.
    cm = jnp.mean(y1r, axis=0, keepdims=True)            # (1, 1024) E[x]
    cs = jnp.mean(y1r * y1r, axis=0, keepdims=True)      # (1, 1024) E[x^2]
    m1 = sum(cm[:, t * 64:(t + 1) * 64] for t in range(16)) * (1.0 / 16.0)
    s1 = sum(cs[:, t * 64:(t + 1) * 64] for t in range(16)) * (1.0 / 16.0)
    inv1 = jax.lax.rsqrt(s1 - m1 * m1 + EPS)             # (1, 64)
    m1f = jnp.concatenate([m1] * 16, axis=1)             # (1, 1024)
    inv1f = jnp.concatenate([inv1] * 16, axis=1)         # (1, 1024)
    z1 = (y1r - m1f) * inv1f
    a1 = (z1 * jax.nn.sigmoid(z1)).astype(jnp.bfloat16)  # (16N, 1024)

    # ---- conv2 (k=4, s=4) : single (16N,1024)@(1024,128) matmul ------------
    y2 = jnp.dot(a1, w2_ref[...], preferred_element_type=jnp.float32)

    # ---- BN2 + SiLU (rows = N * 4*4 conv2 output pixels) -------------------
    m2 = jnp.mean(y2, axis=0, keepdims=True)
    v2 = jnp.mean(y2 * y2, axis=0, keepdims=True) - m2 * m2
    z2 = (y2 - m2) * jax.lax.rsqrt(v2 + EPS)
    a2 = z2 * jax.nn.sigmoid(z2)                         # (16N, 128) f32

    # Repack pixel-major rows into lanes: (16N, 128) -> (N, 2048); slab p is
    # rows [p*N, (p+1)*N) placed at the 128-aligned lane offset p*128.
    a2r = jnp.concatenate(
        [a2[p * batch:(p + 1) * batch, :] for p in range(16)],
        axis=1).astype(jnp.bfloat16)                     # (N, 2048)

    # ---- conv3 (k=4 over the whole 4x4 map) + bias + SiLU : one K=2048 dot -
    w3_copy.wait()
    y3 = jnp.dot(a2r, w3_vmem[...],
                 preferred_element_type=jnp.float32) + b3_ref[...]
    y3 = y3 * jax.nn.sigmoid(y3)                         # (N, 256)

    # ---- fc + SiLU ----------------------------------------------------------
    y4 = jnp.dot(y3.astype(jnp.bfloat16), w4_ref[...],
                 preferred_element_type=jnp.float32) + b4_ref[...]
    y4 = y4 * jax.nn.sigmoid(y4)                         # (N, 128)

    # ---- out + Tanh ---------------------------------------------------------
    y5 = jnp.dot(y4.astype(jnp.bfloat16), w5_ref[...],
                 preferred_element_type=jnp.float32) + b5_ref[...]
    out_ref[...] = jnp.tanh(y5)


# ------------------------- host-side glue (im2col) --------------------------

def _conv1_im2col(state_nchw):
    """im2col for conv1 (k=6, s=6) with tap-major row ordering.

    Row index = (kh2*4 + kw2) * 16N + (Ho2*4 + Wo2) * N + n, where (kh2, kw2)
    is the position inside conv2's 4x4 receptive field and (Ho2, Wo2) is the
    conv2 output pixel.  Columns ordered (Cin, kh1, kw1), zero-padded 108->128.

    This is a pure data reshuffle; under the jit it runs as one fused XLA
    cast/transpose/pad (~350 KB of HBM traffic at N=2) ahead of the kernel.
    # TODO(synk): fold the patch extraction into the kernel via strided DMA to
    # remove this extra XLA fusion + HBM round trip entirely.
    """
    n = state_nchw.shape[0]
    x = state_nchw.astype(jnp.bfloat16)
    x = x.reshape(n, 3, 4, 4, 6, 4, 4, 6)            # n,c,Ho2,kh2,kh1,Wo2,kw2,kw1
    x = x.transpose(3, 6, 2, 5, 0, 1, 4, 7)          # kh2,kw2,Ho2,Wo2,n,c,kh1,kw1
    x = x.reshape(16 * 16 * n, 3 * 6 * 6)            # (256N, 108)
    x = jnp.pad(x, ((0, 0), (0, 128 - 108)))         # K: 108 -> 128 (lane aligned)
    return x


# -------------------------------- parameters --------------------------------

def init_actor_params(action_dim, seed=42):
    """Deterministic init mimicking Actor.reset_parameters / PyTorch defaults.

    Weights are stored bf16, pre-transposed / pre-permuted to the layouts the
    fused kernel expects.  conv1/conv2 biases are omitted on purpose: they are
    exactly cancelled by the training-mode BatchNorm mean subtraction.
    """
    key = jax.random.PRNGKey(seed)
    ks = jax.random.split(key, 8)

    def u(k, shape, lim):
        return jax.random.uniform(k, shape, jnp.float32, -lim, lim)

    p = {}
    # conv1: (64, 3, 6, 6); hidden_init limit = 1/sqrt(out_channels)
    w1 = u(ks[0], (64, 3, 6, 6), 1.0 / math.sqrt(64.0))
    w1m = w1.reshape(64, -1).T                             # (108, 64), rows (c,kh,kw)
    p["w1"] = jnp.pad(w1m, ((0, 20), (0, 0))).astype(jnp.bfloat16)   # (128, 64)

    # conv2: (128, 64, 4, 4) -> rows grouped (kh, kw, cin)
    w2 = u(ks[1], (128, 64, 4, 4), 1.0 / math.sqrt(128.0))
    p["w2"] = w2.transpose(2, 3, 1, 0).reshape(1024, 128).astype(jnp.bfloat16)

    # conv3: (256, 128, 4, 4) -> rows grouped (kh, kw, cin); keeps its bias
    w3 = u(ks[2], (256, 128, 4, 4), 1.0 / math.sqrt(256.0))
    p["w3"] = w3.transpose(2, 3, 1, 0).reshape(2048, 256).astype(jnp.bfloat16)
    p["b3"] = u(ks[3], (1, 256), 1.0 / math.sqrt(128.0 * 4 * 4))

    # fc: (128, 256) -> (256, 128)
    w4 = u(ks[4], (128, 256), 1.0 / math.sqrt(128.0))
    p["w4"] = w4.T.astype(jnp.bfloat16)
    p["b4"] = u(ks[5], (1, 128), 1.0 / math.sqrt(256.0))

    # out: (action_dim, 128) -> (128, action_dim); weight U(+/-3e-3),
    # bias keeps PyTorch Linear default U(+/-1/sqrt(in_features=128))
    # (reset_parameters does not touch out.bias).
    w5 = u(ks[6], (action_dim, 128), 3e-3)
    p["w5"] = w5.T.astype(jnp.bfloat16)
    p["b5"] = u(ks[7], (1, action_dim), 1.0 / math.sqrt(128.0))
    return p


# ---------------------------------- forward ---------------------------------

@jax.jit
def actor_forward(state_nchw, params):
    n, c, h, w = state_nchw.shape
    assert (c, h, w) == (3, 96, 96), "architecture implies 3x96x96 input"
    action_dim = params["w5"].shape[1]

    x1 = _conv1_im2col(state_nchw)                        # (256N, 128) bf16

    kernel = functools.partial(_actor_fused_kernel, batch=n)
    return pl.pallas_call(
        kernel,
        out_shape=jax.ShapeDtypeStruct((n, action_dim), jnp.float32),
        grid_spec=pltpu.PrefetchScalarGridSpec(
            num_scalar_prefetch=0,
            grid=(1,),
            in_specs=[
                pl.BlockSpec((256 * n, 128), lambda i: (0, 0)),      # x1
                pl.BlockSpec((128, 64), lambda i: (0, 0)),           # w1
                pl.BlockSpec((1024, 128), lambda i: (0, 0)),         # w2
                pl.BlockSpec(memory_space=pl.ANY),                   # w3 (manual DMA)
                pl.BlockSpec((1, 256), lambda i: (0, 0)),            # b3
                pl.BlockSpec((256, 128), lambda i: (0, 0)),          # w4
                pl.BlockSpec((1, 128), lambda i: (0, 0)),            # b4
                pl.BlockSpec((128, action_dim), lambda i: (0, 0)),   # w5
                pl.BlockSpec((1, action_dim), lambda i: (0, 0)),     # b5
            ],
            out_specs=pl.BlockSpec((n, action_dim), lambda i: (0, 0)),
            scratch_shapes=[
                pltpu.VMEM((2048, 256), jnp.bfloat16),   # w3 landing buffer
                pltpu.SemaphoreType.DMA((1,)),           # w3 DMA completion sem
            ],
        ),
        compiler_params=pltpu.CompilerParams(
            dimension_semantics=("arbitrary",),
        ),
    )(x1, params["w1"], params["w2"], params["w3"], params["b3"],
      params["w4"], params["b4"], params["w5"], params["b5"])


# ------------------------------------ main -----------------------------------

if __name__ == "__main__":
    action_dim = 4
    batch = 2
    # Input spatial size implied by the architecture: 96 -> 16 -> 4 -> 1
    state = jax.random.normal(jax.random.PRNGKey(0), (batch, 3, 96, 96), jnp.float32)

    params = init_actor_params(action_dim, seed=42)
    out = actor_forward(state, params)
    out = jax.block_until_ready(out)

    assert out.shape == (batch, action_dim), out.shape
    assert bool(jnp.all(jnp.abs(out) <= 1.0 + 1e-6))  # tanh range sanity check
    print("KERNEL_OK")
</pallas_src>

<mosaic_0001>
module attributes {stable_mosaic.version = 11 : i64} {
  func.func @_actor_fused_kernel(%arg0: i32, %arg1: memref<512x128xbf16, #tpu.memory_space<vmem>>, %arg2: memref<128x64xbf16, #tpu.memory_space<vmem>>, %arg3: memref<1024x128xbf16, #tpu.memory_space<vmem>>, %arg4: memref<2048x256xbf16, #tpu.memory_space<any>>, %arg5: memref<1x256xf32, #tpu.memory_space<vmem>>, %arg6: memref<256x128xbf16, #tpu.memory_space<vmem>>, %arg7: memref<1x128xf32, #tpu.memory_space<vmem>>, %arg8: memref<128x4xbf16, #tpu.memory_space<vmem>>, %arg9: memref<1x4xf32, #tpu.memory_space<vmem>>, %arg10: memref<2x4xf32, #tpu.memory_space<vmem>>, %arg11: memref<2048x256xbf16, #tpu.memory_space<vmem>>, %arg12: memref<1x!tpu.dma_semaphore, #tpu.memory_space<semaphore_mem>>) attributes {dimension_semantics = [#tpu.dimension_semantics<arbitrary>], iteration_bounds = array<i64: 1>, scalar_prefetch = 0 : i64, scratch_operands = 2 : i64, tpu.core_type = #tpu.core_type<tc>, window_params = [{pipeline_mode = #tpu.pipeline_mode<synchronous>, transform_indices = @transform_0, window_bounds = array<i64: 512, 128>}, {pipeline_mode = #tpu.pipeline_mode<synchronous>, transform_indices = @transform_1, window_bounds = array<i64: 128, 64>}, {pipeline_mode = #tpu.pipeline_mode<synchronous>, transform_indices = @transform_2, window_bounds = array<i64: 1024, 128>}, {}, {pipeline_mode = #tpu.pipeline_mode<synchronous>, transform_indices = @transform_4, window_bounds = array<i64: 1, 256>}, {pipeline_mode = #tpu.pipeline_mode<synchronous>, transform_indices = @transform_5, window_bounds = array<i64: 256, 128>}, {pipeline_mode = #tpu.pipeline_mode<synchronous>, transform_indices = @transform_6, window_bounds = array<i64: 1, 128>}, {pipeline_mode = #tpu.pipeline_mode<synchronous>, transform_indices = @transform_7, window_bounds = array<i64: 128, 4>}, {pipeline_mode = #tpu.pipeline_mode<synchronous>, transform_indices = @transform_8, window_bounds = array<i64: 1, 4>}, {pipeline_mode = #tpu.pipeline_mode<synchronous>, transform_indices = @transform_9, window_bounds = array<i64: 2, 4>}]} {
    %c0_i32 = arith.constant 0 : i32
    %0 = tpu.memref_slice %arg12[%c0_i32] : memref<1x!tpu.dma_semaphore, #tpu.memory_space<semaphore_mem>> -> memref<1x!tpu.dma_semaphore, #tpu.memory_space<semaphore_mem>>
    %1 = tpu.memref_squeeze %0 : memref<1x!tpu.dma_semaphore, #tpu.memory_space<semaphore_mem>> -> memref<!tpu.dma_semaphore, #tpu.memory_space<semaphore_mem>>
    tpu.enqueue_dma source(%arg4 : memref<2048x256xbf16, #tpu.memory_space<any>>) target(%arg11 : memref<2048x256xbf16, #tpu.memory_space<vmem>>) target_semaphore(%1 : memref<!tpu.dma_semaphore, #tpu.memory_space<semaphore_mem>>)
    %c0 = arith.constant 0 : index
    %c0_0 = arith.constant 0 : index
    %2 = vector.load %arg1[%c0, %c0_0] : memref<512x128xbf16, #tpu.memory_space<vmem>>, vector<512x128xbf16>
    %c0_1 = arith.constant 0 : index
    %c0_2 = arith.constant 0 : index
    %3 = vector.load %arg2[%c0_1, %c0_2] : memref<128x64xbf16, #tpu.memory_space<vmem>>, vector<128x64xbf16>
    %cst = arith.constant dense<0.000000e+00> : vector<512x64xf32>
    %4 = tpu.matmul %2, %3, %cst {dimension_numbers = #tpu.dot_dimension_numbers<[1], [0], [0], [1], [0, 0, 1, 1], [], []>} : vector<512x128xbf16>, vector<128x64xbf16>, vector<512x64xf32> -> vector<512x64xf32>
    %5 = vector.extract_strided_slice %4 {offsets = [0, 0], sizes = [32, 64], strides = [1, 1]} : vector<512x64xf32> to vector<32x64xf32>
    %6 = vector.extract_strided_slice %4 {offsets = [32, 0], sizes = [32, 64], strides = [1, 1]} : vector<512x64xf32> to vector<32x64xf32>
    %7 = vector.extract_strided_slice %4 {offsets = [64, 0], sizes = [32, 64], strides = [1, 1]} : vector<512x64xf32> to vector<32x64xf32>
    %8 = vector.extract_strided_slice %4 {offsets = [96, 0], sizes = [32, 64], strides = [1, 1]} : vector<512x64xf32> to vector<32x64xf32>
    %9 = vector.extract_strided_slice %4 {offsets = [128, 0], sizes = [32, 64], strides = [1, 1]} : vector<512x64xf32> to vector<32x64xf32>
    %10 = vector.extract_strided_slice %4 {offsets = [160, 0], sizes = [32, 64], strides = [1, 1]} : vector<512x64xf32> to vector<32x64xf32>
    %11 = vector.extract_strided_slice %4 {offsets = [192, 0], sizes = [32, 64], strides = [1, 1]} : vector<512x64xf32> to vector<32x64xf32>
    %12 = vector.extract_strided_slice %4 {offsets = [224, 0], sizes = [32, 64], strides = [1, 1]} : vector<512x64xf32> to vector<32x64xf32>
    %13 = vector.extract_strided_slice %4 {offsets = [256, 0], sizes = [32, 64], strides = [1, 1]} : vector<512x64xf32> to vector<32x64xf32>
    %14 = vector.extract_strided_slice %4 {offsets = [288, 0], sizes = [32, 64], strides = [1, 1]} : vector<512x64xf32> to vector<32x64xf32>
    %15 = vector.extract_strided_slice %4 {offsets = [320, 0], sizes = [32, 64], strides = [1, 1]} : vector<512x64xf32> to vector<32x64xf32>
    %16 = vector.extract_strided_slice %4 {offsets = [352, 0], sizes = [32, 64], strides = [1, 1]} : vector<512x64xf32> to vector<32x64xf32>
    %17 = vector.extract_strided_slice %4 {offsets = [384, 0], sizes = [32, 64], strides = [1, 1]} : vector<512x64xf32> to vector<32x64xf32>
    %18 = vector.extract_strided_slice %4 {offsets = [416, 0], sizes = [32, 64], strides = [1, 1]} : vector<512x64xf32> to vector<32x64xf32>
    %19 = vector.extract_strided_slice %4 {offsets = [448, 0], sizes = [32, 64], strides = [1, 1]} : vector<512x64xf32> to vector<32x64xf32>
    %20 = vector.extract_strided_slice %4 {offsets = [480, 0], sizes = [32, 64], strides = [1, 1]} : vector<512x64xf32> to vector<32x64xf32>
    %21 = tpu.concatenate %5, %6, %7, %8, %9, %10, %11, %12, %13, %14, %15, %16, %17, %18, %19, %20 in 1 : vector<32x64xf32>, vector<32x64xf32>, vector<32x64xf32>, vector<32x64xf32>, vector<32x64xf32>, vector<32x64xf32>, vector<32x64xf32>, vector<32x64xf32>, vector<32x64xf32>, vector<32x64xf32>, vector<32x64xf32>, vector<32x64xf32>, vector<32x64xf32>, vector<32x64xf32>, vector<32x64xf32>, vector<32x64xf32> -> vector<32x1024xf32>
    %cst_3 = arith.constant dense<0.000000e+00> : vector<1024xf32>
    %22 = vector.multi_reduction <add>, %21, %cst_3 [0] : vector<32x1024xf32> to vector<1024xf32>
    %23 = vector.shape_cast %22 : vector<1024xf32> to vector<1x1024xf32>
    %cst_4 = arith.constant 3.200000e+01 : f32
    %24 = vector.broadcast %cst_4 : f32 to vector<1x1024xf32>
    %25 = arith.divf %23, %24 : vector<1x1024xf32>
    %26 = arith.mulf %21, %21 : vector<32x1024xf32>
    %cst_5 = arith.constant dense<0.000000e+00> : vector<1024xf32>
    %27 = vector.multi_reduction <add>, %26, %cst_5 [0] : vector<32x1024xf32> to vector<1024xf32>
    %28 = vector.shape_cast %27 : vector<1024xf32> to vector<1x1024xf32>
    %cst_6 = arith.constant 3.200000e+01 : f32
    %29 = vector.broadcast %cst_6 : f32 to vector<1x1024xf32>
    %30 = arith.divf %28, %29 : vector<1x1024xf32>
    %31 = vector.extract_strided_slice %25 {offsets = [0, 0], sizes = [1, 64], strides = [1, 1]} : vector<1x1024xf32> to vector<1x64xf32>
    %cst_7 = arith.constant 0.000000e+00 : f32
    %32 = vector.broadcast %cst_7 : f32 to vector<1x64xf32>
    %33 = arith.addf %32, %31 : vector<1x64xf32>
    %34 = vector.extract_strided_slice %25 {offsets = [0, 64], sizes = [1, 64], strides = [1, 1]} : vector<1x1024xf32> to vector<1x64xf32>
    %35 = arith.addf %33, %34 : vector<1x64xf32>
    %36 = vector.extract_strided_slice %25 {offsets = [0, 128], sizes = [1, 64], strides = [1, 1]} : vector<1x1024xf32> to vector<1x64xf32>
    %37 = arith.addf %35, %36 : vector<1x64xf32>
    %38 = vector.extract_strided_slice %25 {offsets = [0, 192], sizes = [1, 64], strides = [1, 1]} : vector<1x1024xf32> to vector<1x64xf32>
    %39 = arith.addf %37, %38 : vector<1x64xf32>
    %40 = vector.extract_strided_slice %25 {offsets = [0, 256], sizes = [1, 64], strides = [1, 1]} : vector<1x1024xf32> to vector<1x64xf32>
    %41 = arith.addf %39, %40 : vector<1x64xf32>
    %42 = vector.extract_strided_slice %25 {offsets = [0, 320], sizes = [1, 64], strides = [1, 1]} : vector<1x1024xf32> to vector<1x64xf32>
    %43 = arith.addf %41, %42 : vector<1x64xf32>
    %44 = vector.extract_strided_slice %25 {offsets = [0, 384], sizes = [1, 64], strides = [1, 1]} : vector<1x1024xf32> to vector<1x64xf32>
    %45 = arith.addf %43, %44 : vector<1x64xf32>
    %46 = vector.extract_strided_slice %25 {offsets = [0, 448], sizes = [1, 64], strides = [1, 1]} : vector<1x1024xf32> to vector<1x64xf32>
    %47 = arith.addf %45, %46 : vector<1x64xf32>
    %48 = vector.extract_strided_slice %25 {offsets = [0, 512], sizes = [1, 64], strides = [1, 1]} : vector<1x1024xf32> to vector<1x64xf32>
    %49 = arith.addf %47, %48 : vector<1x64xf32>
    %50 = vector.extract_strided_slice %25 {offsets = [0, 576], sizes = [1, 64], strides = [1, 1]} : vector<1x1024xf32> to vector<1x64xf32>
    %51 = arith.addf %49, %50 : vector<1x64xf32>
    %52 = vector.extract_strided_slice %25 {offsets = [0, 640], sizes = [1, 64], strides = [1, 1]} : vector<1x1024xf32> to vector<1x64xf32>
    %53 = arith.addf %51, %52 : vector<1x64xf32>
    %54 = vector.extract_strided_slice %25 {offsets = [0, 704], sizes = [1, 64], strides = [1, 1]} : vector<1x1024xf32> to vector<1x64xf32>
    %55 = arith.addf %53, %54 : vector<1x64xf32>
    %56 = vector.extract_strided_slice %25 {offsets = [0, 768], sizes = [1, 64], strides = [1, 1]} : vector<1x1024xf32> to vector<1x64xf32>
    %57 = arith.addf %55, %56 : vector<1x64xf32>
    %58 = vector.extract_strided_slice %25 {offsets = [0, 832], sizes = [1, 64], strides = [1, 1]} : vector<1x1024xf32> to vector<1x64xf32>
    %59 = arith.addf %57, %58 : vector<1x64xf32>
    %60 = vector.extract_strided_slice %25 {offsets = [0, 896], sizes = [1, 64], strides = [1, 1]} : vector<1x1024xf32> to vector<1x64xf32>
    %61 = arith.addf %59, %60 : vector<1x64xf32>
    %62 = vector.extract_strided_slice %25 {offsets = [0, 960], sizes = [1, 64], strides = [1, 1]} : vector<1x1024xf32> to vector<1x64xf32>
    %63 = arith.addf %61, %62 : vector<1x64xf32>
    %cst_8 = arith.constant 6.250000e-02 : f32
    %64 = vector.broadcast %cst_8 : f32 to vector<1x64xf32>
    %65 = arith.mulf %63, %64 : vector<1x64xf32>
    %66 = vector.extract_strided_slice %30 {offsets = [0, 0], sizes = [1, 64], strides = [1, 1]} : vector<1x1024xf32> to vector<1x64xf32>
    %cst_9 = arith.constant 0.000000e+00 : f32
    %67 = vector.broadcast %cst_9 : f32 to vector<1x64xf32>
    %68 = arith.addf %67, %66 : vector<1x64xf32>
    %69 = vector.extract_strided_slice %30 {offsets = [0, 64], sizes = [1, 64], strides = [1, 1]} : vector<1x1024xf32> to vector<1x64xf32>
    %70 = arith.addf %68, %69 : vector<1x64xf32>
    %71 = vector.extract_strided_slice %30 {offsets = [0, 128], sizes = [1, 64], strides = [1, 1]} : vector<1x1024xf32> to vector<1x64xf32>
    %72 = arith.addf %70, %71 : vector<1x64xf32>
    %73 = vector.extract_strided_slice %30 {offsets = [0, 192], sizes = [1, 64], strides = [1, 1]} : vector<1x1024xf32> to vector<1x64xf32>
    %74 = arith.addf %72, %73 : vector<1x64xf32>
    %75 = vector.extract_strided_slice %30 {offsets = [0, 256], sizes = [1, 64], strides = [1, 1]} : vector<1x1024xf32> to vector<1x64xf32>
    %76 = arith.addf %74, %75 : vector<1x64xf32>
    %77 = vector.extract_strided_slice %30 {offsets = [0, 320], sizes = [1, 64], strides = [1, 1]} : vector<1x1024xf32> to vector<1x64xf32>
    %78 = arith.addf %76, %77 : vector<1x64xf32>
    %79 = vector.extract_strided_slice %30 {offsets = [0, 384], sizes = [1, 64], strides = [1, 1]} : vector<1x1024xf32> to vector<1x64xf32>
    %80 = arith.addf %78, %79 : vector<1x64xf32>
    %81 = vector.extract_strided_slice %30 {offsets = [0, 448], sizes = [1, 64], strides = [1, 1]} : vector<1x1024xf32> to vector<1x64xf32>
    %82 = arith.addf %80, %81 : vector<1x64xf32>
    %83 = vector.extract_strided_slice %30 {offsets = [0, 512], sizes = [1, 64], strides = [1, 1]} : vector<1x1024xf32> to vector<1x64xf32>
    %84 = arith.addf %82, %83 : vector<1x64xf32>
    %85 = vector.extract_strided_slice %30 {offsets = [0, 576], sizes = [1, 64], strides = [1, 1]} : vector<1x1024xf32> to vector<1x64xf32>
    %86 = arith.addf %84, %85 : vector<1x64xf32>
    %87 = vector.extract_strided_slice %30 {offsets = [0, 640], sizes = [1, 64], strides = [1, 1]} : vector<1x1024xf32> to vector<1x64xf32>
    %88 = arith.addf %86, %87 : vector<1x64xf32>
    %89 = vector.extract_strided_slice %30 {offsets = [0, 704], sizes = [1, 64], strides = [1, 1]} : vector<1x1024xf32> to vector<1x64xf32>
    %90 = arith.addf %88, %89 : vector<1x64xf32>
    %91 = vector.extract_strided_slice %30 {offsets = [0, 768], sizes = [1, 64], strides = [1, 1]} : vector<1x1024xf32> to vector<1x64xf32>
    %92 = arith.addf %90, %91 : vector<1x64xf32>
    %93 = vector.extract_strided_slice %30 {offsets = [0, 832], sizes = [1, 64], strides = [1, 1]} : vector<1x1024xf32> to vector<1x64xf32>
    %94 = arith.addf %92, %93 : vector<1x64xf32>
    %95 = vector.extract_strided_slice %30 {offsets = [0, 896], sizes = [1, 64], strides = [1, 1]} : vector<1x1024xf32> to vector<1x64xf32>
    %96 = arith.addf %94, %95 : vector<1x64xf32>
    %97 = vector.extract_strided_slice %30 {offsets = [0, 960], sizes = [1, 64], strides = [1, 1]} : vector<1x1024xf32> to vector<1x64xf32>
    %98 = arith.addf %96, %97 : vector<1x64xf32>
    %cst_10 = arith.constant 6.250000e-02 : f32
    %99 = vector.broadcast %cst_10 : f32 to vector<1x64xf32>
    %100 = arith.mulf %98, %99 : vector<1x64xf32>
    %101 = arith.mulf %65, %65 : vector<1x64xf32>
    %102 = arith.subf %100, %101 : vector<1x64xf32>
    %cst_11 = arith.constant 9.99999974E-6 : f32
    %103 = vector.broadcast %cst_11 : f32 to vector<1x64xf32>
    %104 = arith.addf %102, %103 : vector<1x64xf32>
    %105 = math.rsqrt %104 : vector<1x64xf32>
    %106 = tpu.concatenate %65, %65, %65, %65, %65, %65, %65, %65, %65, %65, %65, %65, %65, %65, %65, %65 in 1 : vector<1x64xf32>, vector<1x64xf32>, vector<1x64xf32>, vector<1x64xf32>, vector<1x64xf32>, vector<1x64xf32>, vector<1x64xf32>, vector<1x64xf32>, vector<1x64xf32>, vector<1x64xf32>, vector<1x64xf32>, vector<1x64xf32>, vector<1x64xf32>, vector<1x64xf32>, vector<1x64xf32>, vector<1x64xf32> -> vector<1x1024xf32>
    %107 = tpu.concatenate %105, %105, %105, %105, %105, %105, %105, %105, %105, %105, %105, %105, %105, %105, %105, %105 in 1 : vector<1x64xf32>, vector<1x64xf32>, vector<1x64xf32>, vector<1x64xf32>, vector<1x64xf32>, vector<1x64xf32>, vector<1x64xf32>, vector<1x64xf32>, vector<1x64xf32>, vector<1x64xf32>, vector<1x64xf32>, vector<1x64xf32>, vector<1x64xf32>, vector<1x64xf32>, vector<1x64xf32>, vector<1x64xf32> -> vector<1x1024xf32>
    %108 = vector.broadcast %106 : vector<1x1024xf32> to vector<32x1024xf32>
    %109 = arith.subf %21, %108 : vector<32x1024xf32>
    %110 = vector.broadcast %107 : vector<1x1024xf32> to vector<32x1024xf32>
    %111 = arith.mulf %109, %110 : vector<32x1024xf32>
    %112 = arith.negf %111 : vector<32x1024xf32>
    %113 = math.exp %112 : vector<32x1024xf32>
    %cst_12 = arith.constant 1.000000e+00 : f32
    %114 = vector.broadcast %cst_12 : f32 to vector<32x1024xf32>
    %115 = arith.addf %114, %113 : vector<32x1024xf32>
    %116 = arith.divf %114, %115 : vector<32x1024xf32>
    %117 = arith.mulf %111, %116 : vector<32x1024xf32>
    %118 = arith.truncf %117 : vector<32x1024xf32> to vector<32x1024xbf16>
    %c0_13 = arith.constant 0 : index
    %c0_14 = arith.constant 0 : index
    %119 = vector.load %arg3[%c0_13, %c0_14] : memref<1024x128xbf16, #tpu.memory_space<vmem>>, vector<1024x128xbf16>
    %cst_15 = arith.constant dense<0.000000e+00> : vector<32x128xf32>
    %120 = tpu.matmul %118, %119, %cst_15 {dimension_numbers = #tpu.dot_dimension_numbers<[1], [0], [0], [1], [0, 0, 1, 1], [], []>} : vector<32x1024xbf16>, vector<1024x128xbf16>, vector<32x128xf32> -> vector<32x128xf32>
    %cst_16 = arith.constant dense<0.000000e+00> : vector<128xf32>
    %121 = vector.multi_reduction <add>, %120, %cst_16 [0] : vector<32x128xf32> to vector<128xf32>
    %122 = vector.shape_cast %121 : vector<128xf32> to vector<1x128xf32>
    %cst_17 = arith.constant 3.200000e+01 : f32
    %123 = vector.broadcast %cst_17 : f32 to vector<1x128xf32>
    %124 = arith.divf %122, %123 : vector<1x128xf32>
    %125 = arith.mulf %120, %120 : vector<32x128xf32>
    %cst_18 = arith.constant dense<0.000000e+00> : vector<128xf32>
    %126 = vector.multi_reduction <add>, %125, %cst_18 [0] : vector<32x128xf32> to vector<128xf32>
    %127 = vector.shape_cast %126 : vector<128xf32> to vector<1x128xf32>
    %cst_19 = arith.constant 3.200000e+01 : f32
    %128 = vector.broadcast %cst_19 : f32 to vector<1x128xf32>
    %129 = arith.divf %127, %128 : vector<1x128xf32>
    %130 = arith.mulf %124, %124 : vector<1x128xf32>
    %131 = arith.subf %129, %130 : vector<1x128xf32>
    %132 = vector.broadcast %124 : vector<1x128xf32> to vector<32x128xf32>
    %133 = arith.subf %120, %132 : vector<32x128xf32>
    %cst_20 = arith.constant 9.99999974E-6 : f32
    %134 = vector.broadcast %cst_20 : f32 to vector<1x128xf32>
    %135 = arith.addf %131, %134 : vector<1x128xf32>
    %136 = math.rsqrt %135 : vector<1x128xf32>
    %137 = vector.broadcast %136 : vector<1x128xf32> to vector<32x128xf32>
    %138 = arith.mulf %133, %137 : vector<32x128xf32>
    %139 = arith.negf %138 : vector<32x128xf32>
    %140 = math.exp %139 : vector<32x128xf32>
    %cst_21 = arith.constant 1.000000e+00 : f32
    %141 = vector.broadcast %cst_21 : f32 to vector<32x128xf32>
    %142 = arith.addf %141, %140 : vector<32x128xf32>
    %143 = arith.divf %141, %142 : vector<32x128xf32>
    %144 = arith.mulf %138, %143 : vector<32x128xf32>
    %145 = vector.extract_strided_slice %144 {offsets = [0, 0], sizes = [2, 128], strides = [1, 1]} : vector<32x128xf32> to vector<2x128xf32>
    %146 = vector.extract_strided_slice %144 {offsets = [2, 0], sizes = [2, 128], strides = [1, 1]} : vector<32x128xf32> to vector<2x128xf32>
    %147 = vector.extract_strided_slice %144 {offsets = [4, 0], sizes = [2, 128], strides = [1, 1]} : vector<32x128xf32> to vector<2x128xf32>
    %148 = vector.extract_strided_slice %144 {offsets = [6, 0], sizes = [2, 128], strides = [1, 1]} : vector<32x128xf32> to vector<2x128xf32>
    %149 = vector.extract_strided_slice %144 {offsets = [8, 0], sizes = [2, 128], strides = [1, 1]} : vector<32x128xf32> to vector<2x128xf32>
    %150 = vector.extract_strided_slice %144 {offsets = [10, 0], sizes = [2, 128], strides = [1, 1]} : vector<32x128xf32> to vector<2x128xf32>
    %151 = vector.extract_strided_slice %144 {offsets = [12, 0], sizes = [2, 128], strides = [1, 1]} : vector<32x128xf32> to vector<2x128xf32>
    %152 = vector.extract_strided_slice %144 {offsets = [14, 0], sizes = [2, 128], strides = [1, 1]} : vector<32x128xf32> to vector<2x128xf32>
    %153 = vector.extract_strided_slice %144 {offsets = [16, 0], sizes = [2, 128], strides = [1, 1]} : vector<32x128xf32> to vector<2x128xf32>
    %154 = vector.extract_strided_slice %144 {offsets = [18, 0], sizes = [2, 128], strides = [1, 1]} : vector<32x128xf32> to vector<2x128xf32>
    %155 = vector.extract_strided_slice %144 {offsets = [20, 0], sizes = [2, 128], strides = [1, 1]} : vector<32x128xf32> to vector<2x128xf32>
    %156 = vector.extract_strided_slice %144 {offsets = [22, 0], sizes = [2, 128], strides = [1, 1]} : vector<32x128xf32> to vector<2x128xf32>
    %157 = vector.extract_strided_slice %144 {offsets = [24, 0], sizes = [2, 128], strides = [1, 1]} : vector<32x128xf32> to vector<2x128xf32>
    %158 = vector.extract_strided_slice %144 {offsets = [26, 0], sizes = [2, 128], strides = [1, 1]} : vector<32x128xf32> to vector<2x128xf32>
    %159 = vector.extract_strided_slice %144 {offsets = [28, 0], sizes = [2, 128], strides = [1, 1]} : vector<32x128xf32> to vector<2x128xf32>
    %160 = vector.extract_strided_slice %144 {offsets = [30, 0], sizes = [2, 128], strides = [1, 1]} : vector<32x128xf32> to vector<2x128xf32>
    %161 = tpu.concatenate %145, %146, %147, %148, %149, %150, %151, %152, %153, %154, %155, %156, %157, %158, %159, %160 in 1 : vector<2x128xf32>, vector<2x128xf32>, vector<2x128xf32>, vector<2x128xf32>, vector<2x128xf32>, vector<2x128xf32>, vector<2x128xf32>, vector<2x128xf32>, vector<2x128xf32>, vector<2x128xf32>, vector<2x128xf32>, vector<2x128xf32>, vector<2x128xf32>, vector<2x128xf32>, vector<2x128xf32>, vector<2x128xf32> -> vector<2x2048xf32>
    %162 = arith.truncf %161 : vector<2x2048xf32> to vector<2x2048xbf16>
    %c0_i32_22 = arith.constant 0 : i32
    %163 = tpu.memref_slice %arg12[%c0_i32_22] : memref<1x!tpu.dma_semaphore, #tpu.memory_space<semaphore_mem>> -> memref<1x!tpu.dma_semaphore, #tpu.memory_space<semaphore_mem>>
    %164 = tpu.memref_squeeze %163 : memref<1x!tpu.dma_semaphore, #tpu.memory_space<semaphore_mem>> -> memref<!tpu.dma_semaphore, #tpu.memory_space<semaphore_mem>>
    tpu.wait_dma2 semaphore(%164 : memref<!tpu.dma_semaphore, #tpu.memory_space<semaphore_mem>>) src(%arg4 : memref<2048x256xbf16, #tpu.memory_space<any>>) dst(%arg11 : memref<2048x256xbf16, #tpu.memory_space<vmem>>)
    %c0_23 = arith.constant 0 : index
    %c0_24 = arith.constant 0 : index
    %165 = vector.load %arg11[%c0_23, %c0_24] : memref<2048x256xbf16, #tpu.memory_space<vmem>>, vector<2048x256xbf16>
    %cst_25 = arith.constant dense<0.000000e+00> : vector<2x256xf32>
    %166 = tpu.matmul %162, %165, %cst_25 {dimension_numbers = #tpu.dot_dimension_numbers<[1], [0], [0], [1], [0, 0, 1, 1], [], []>} : vector<2x2048xbf16>, vector<2048x256xbf16>, vector<2x256xf32> -> vector<2x256xf32>
    %c0_26 = arith.constant 0 : index
    %c0_27 = arith.constant 0 : index
    %167 = vector.load %arg5[%c0_26, %c0_27] : memref<1x256xf32, #tpu.memory_space<vmem>>, vector<1x256xf32>
    %168 = vector.broadcast %167 : vector<1x256xf32> to vector<2x256xf32>
    %169 = arith.addf %166, %168 : vector<2x256xf32>
    %170 = arith.negf %169 : vector<2x256xf32>
    %171 = math.exp %170 : vector<2x256xf32>
    %cst_28 = arith.constant 1.000000e+00 : f32
    %172 = vector.broadcast %cst_28 : f32 to vector<2x256xf32>
    %173 = arith.addf %172, %171 : vector<2x256xf32>
    %174 = arith.divf %172, %173 : vector<2x256xf32>
    %175 = arith.mulf %169, %174 : vector<2x256xf32>
    %176 = arith.truncf %175 : vector<2x256xf32> to vector<2x256xbf16>
    %c0_29 = arith.constant 0 : index
    %c0_30 = arith.constant 0 : index
    %177 = vector.load %arg6[%c0_29, %c0_30] : memref<256x128xbf16, #tpu.memory_space<vmem>>, vector<256x128xbf16>
    %cst_31 = arith.constant dense<0.000000e+00> : vector<2x128xf32>
    %178 = tpu.matmul %176, %177, %cst_31 {dimension_numbers = #tpu.dot_dimension_numbers<[1], [0], [0], [1], [0, 0, 1, 1], [], []>} : vector<2x256xbf16>, vector<256x128xbf16>, vector<2x128xf32> -> vector<2x128xf32>
    %c0_32 = arith.constant 0 : index
    %c0_33 = arith.constant 0 : index
    %179 = vector.load %arg7[%c0_32, %c0_33] : memref<1x128xf32, #tpu.memory_space<vmem>>, vector<1x128xf32>
    %180 = vector.broadcast %179 : vector<1x128xf32> to vector<2x128xf32>
    %181 = arith.addf %178, %180 : vector<2x128xf32>
    %182 = arith.negf %181 : vector<2x128xf32>
    %183 = math.exp %182 : vector<2x128xf32>
    %cst_34 = arith.constant 1.000000e+00 : f32
    %184 = vector.broadcast %cst_34 : f32 to vector<2x128xf32>
    %185 = arith.addf %184, %183 : vector<2x128xf32>
    %186 = arith.divf %184, %185 : vector<2x128xf32>
    %187 = arith.mulf %181, %186 : vector<2x128xf32>
    %188 = arith.truncf %187 : vector<2x128xf32> to vector<2x128xbf16>
    %c0_35 = arith.constant 0 : index
    %c0_36 = arith.constant 0 : index
    %189 = vector.load %arg8[%c0_35, %c0_36] : memref<128x4xbf16, #tpu.memory_space<vmem>>, vector<128x4xbf16>
    %cst_37 = arith.constant dense<0.000000e+00> : vector<2x4xf32>
    %190 = tpu.matmul %188, %189, %cst_37 {dimension_numbers = #tpu.dot_dimension_numbers<[1], [0], [0], [1], [0, 0, 1, 1], [], []>} : vector<2x128xbf16>, vector<128x4xbf16>, vector<2x4xf32> -> vector<2x4xf32>
    %c0_38 = arith.constant 0 : index
    %c0_39 = arith.constant 0 : index
    %191 = vector.load %arg9[%c0_38, %c0_39] : memref<1x4xf32, #tpu.memory_space<vmem>>, vector<1x4xf32>
    %192 = vector.broadcast %191 : vector<1x4xf32> to vector<2x4xf32>
    %193 = arith.addf %190, %192 : vector<2x4xf32>
    %194 = math.tanh %193 : vector<2x4xf32>
    %c0_40 = arith.constant 0 : index
    %c0_41 = arith.constant 0 : index
    %195 = vector.load %arg10[%c0_40, %c0_41] : memref<2x4xf32, #tpu.memory_space<vmem>>, vector<2x4xf32>
    tpu.vector_store %arg10[%c0_40, %c0_41], %194 {strides = array<i32>} : memref<2x4xf32, #tpu.memory_space<vmem>>, vector<2x4xf32>,
    return
  }
  func.func @transform_0(%arg0: i32) -> (i32, i32) {
    %c0_i32 = arith.constant 0 : i32
    %c0_i32_0 = arith.constant 0 : i32
    %c0_i32_1 = arith.constant 0 : i32
    return %c0_i32, %c0_i32_0 : i32, i32
  }
  func.func @transform_1(%arg0: i32) -> (i32, i32) {
    %c0_i32 = arith.constant 0 : i32
    %c0_i32_0 = arith.constant 0 : i32
    %c0_i32_1 = arith.constant 0 : i32
    return %c0_i32, %c0_i32_0 : i32, i32
  }
  func.func @transform_2(%arg0: i32) -> (i32, i32) {
    %c0_i32 = arith.constant 0 : i32
    %c0_i32_0 = arith.constant 0 : i32
    %c0_i32_1 = arith.constant 0 : i32
    return %c0_i32, %c0_i32_0 : i32, i32
  }
  func.func @transform_4(%arg0: i32) -> (i32, i32) {
    %c0_i32 = arith.constant 0 : i32
    %c0_i32_0 = arith.constant 0 : i32
    %c0_i32_1 = arith.constant 0 : i32
    return %c0_i32, %c0_i32_0 : i32, i32
  }
  func.func @transform_5(%arg0: i32) -> (i32, i32) {
    %c0_i32 = arith.constant 0 : i32
    %c0_i32_0 = arith.constant 0 : i32
    %c0_i32_1 = arith.constant 0 : i32
    return %c0_i32, %c0_i32_0 : i32, i32
  }
  func.func @transform_6(%arg0: i32) -> (i32, i32) {
    %c0_i32 = arith.constant 0 : i32
    %c0_i32_0 = arith.constant 0 : i32
    %c0_i32_1 = arith.constant 0 : i32
    return %c0_i32, %c0_i32_0 : i32, i32
  }
  func.func @transform_7(%arg0: i32) -> (i32, i32) {
    %c0_i32 = arith.constant 0 : i32
    %c0_i32_0 = arith.constant 0 : i32
    %c0_i32_1 = arith.constant 0 : i32
    return %c0_i32, %c0_i32_0 : i32, i32
  }
  func.func @transform_8(%arg0: i32) -> (i32, i32) {
    %c0_i32 = arith.constant 0 : i32
    %c0_i32_0 = arith.constant 0 : i32
    %c0_i32_1 = arith.constant 0 : i32
    return %c0_i32, %c0_i32_0 : i32, i32
  }
  func.func @transform_9(%arg0: i32) -> (i32, i32) {
    %c0_i32 = arith.constant 0 : i32
    %c0_i32_0 = arith.constant 0 : i32
    %c0_i32_1 = arith.constant 0 : i32
    return %c0_i32, %c0_i32_0 : i32, i32
  }
}

</mosaic_0001>

<bundles_post_ra>
// kernel: actor_forward.1
= control target key start
LH: loop header
LB: loop body
LE: loop exit
PB: predicated region body
PF: predicated region fallthrough
CT: control target
= control target key end

     0   :  { %14 = vsyncpa [#allocation5], 0  ;;  %s10479_s0 = inlined_call_operand.vmem [shape: bf16[512,128], index: 0, kind: input, shape index: {}]   ;;  %s10480_s1 = inlined_call_operand.vmem [shape: bf16[128,64], index: 1, kind: input, shape index: {}]   ;;  %s10481_s2 = inlined_call_operand.vmem [shape: bf16[1024,128], index: 2, kind: input, shape index: {}]   ;;  %s10482_s3 = inlined_call_operand.vmem [shape: bf16[2048,256], index: 3, kind: input, shape index: {}]   ;;  %s10483_s4 = inlined_call_operand.vmem [shape: f32[1,256], index: 4, kind: input, shape index: {}]   ;;  %s10484_s5 = inlined_call_operand.vmem [shape: bf16[256,128], index: 5, kind: input, shape index: {}]   ;;  %s10485_s6 = inlined_call_operand.vmem [shape: f32[1,128], index: 6, kind: input, shape index: {}]   ;;  %s10486_s7 = inlined_call_operand.vmem [shape: bf16[128,4], index: 7, kind: input, shape index: {}]   ;;  %s10487_s8 = inlined_call_operand.vmem [shape: f32[1,4], index: 8, kind: input, shape index: {}]   ;;  %s10488_s9 = inlined_call_operand.hbm [shape: f32[2,4], index: 9, kind: output, shape index: {}]  }
   0x1   :  { %v41_v0 = vld [vmem:[%s10482_s3] sm:$0xff]  ;;  %v43_v1 = vld [vmem:[%s10482_s3 + $0x8] sm:$0xff]  ;;  %v45_v2 = vld [vmem:[%s10482_s3 + $0x10] sm:$0xff] }
   0x2   :  { %42 = vst [vmem:[#allocation2] sm:$0xff] %v41_v0  ;;  %v47_v3 = vld [vmem:[%s10482_s3 + $0x18] sm:$0xff]  ;;  %v49_v4 = vld [vmem:[%s10482_s3 + $0x20] sm:$0xff]  ;;  %v51_v5 = vld [vmem:[%s10482_s3 + $0x28] sm:$0xff] }
   0x3   :  { %44 = vst [vmem:[#allocation2 + $0x8] sm:$0xff] %v43_v1  ;;  %v53_v6 = vld [vmem:[%s10482_s3 + $0x30] sm:$0xff]  ;;  %v55_v7 = vld [vmem:[%s10482_s3 + $0x38] sm:$0xff]  ;;  %v57_v8 = vld [vmem:[%s10482_s3 + $0x40] sm:$0xff] }
   0x4   :  { %46 = vst [vmem:[#allocation2 + $0x10] sm:$0xff] %v45_v2  ;;  %v59_v9 = vld [vmem:[%s10482_s3 + $0x48] sm:$0xff]  ;;  %v61_v10 = vld [vmem:[%s10482_s3 + $0x50] sm:$0xff]  ;;  %v63_v11 = vld [vmem:[%s10482_s3 + $0x58] sm:$0xff] }
   0x5   :  { %48 = vst [vmem:[#allocation2 + $0x18] sm:$0xff] %v47_v3  ;;  %v65_v12 = vld [vmem:[%s10482_s3 + $0x60] sm:$0xff]  ;;  %v67_v13 = vld [vmem:[%s10482_s3 + $0x68] sm:$0xff]  ;;  %v69_v14 = vld [vmem:[%s10482_s3 + $0x70] sm:$0xff] }
   0x6   :  { %50 = vst [vmem:[#allocation2 + $0x20] sm:$0xff] %v49_v4  ;;  %v71_v15 = vld [vmem:[%s10482_s3 + $0x78] sm:$0xff]  ;;  %v73_v16 = vld [vmem:[%s10482_s3 + $0x80] sm:$0xff]  ;;  %v75_v17 = vld [vmem:[%s10482_s3 + $0x88] sm:$0xff] }
   0x7   :  { %52 = vst [vmem:[#allocation2 + $0x28] sm:$0xff] %v51_v5  ;;  %v77_v18 = vld [vmem:[%s10482_s3 + $0x90] sm:$0xff]  ;;  %v79_v19 = vld [vmem:[%s10482_s3 + $0x98] sm:$0xff]  ;;  %v81_v20 = vld [vmem:[%s10482_s3 + $0xa0] sm:$0xff] }
   0x8   :  { %54 = vst [vmem:[#allocation2 + $0x30] sm:$0xff] %v53_v6  ;;  %v83_v21 = vld [vmem:[%s10482_s3 + $0xa8] sm:$0xff]  ;;  %v85_v22 = vld [vmem:[%s10482_s3 + $0xb0] sm:$0xff]  ;;  %v87_v23 = vld [vmem:[%s10482_s3 + $0xb8] sm:$0xff] }
   0x9   :  { %56 = vst [vmem:[#allocation2 + $0x38] sm:$0xff] %v55_v7  ;;  %v89_v24 = vld [vmem:[%s10482_s3 + $0xc0] sm:$0xff]  ;;  %v91_v25 = vld [vmem:[%s10482_s3 + $0xc8] sm:$0xff]  ;;  %v93_v26 = vld [vmem:[%s10482_s3 + $0xd0] sm:$0xff] }
   0xa   :  { %58 = vst [vmem:[#allocation2 + $0x40] sm:$0xff] %v57_v8  ;;  %v95_v27 = vld [vmem:[%s10482_s3 + $0xd8] sm:$0xff]  ;;  %v97_v28 = vld [vmem:[%s10482_s3 + $0xe0] sm:$0xff]  ;;  %v99_v29 = vld [vmem:[%s10482_s3 + $0xe8] sm:$0xff] }
   0xb   :  { %60 = vst [vmem:[#allocation2 + $0x48] sm:$0xff] %v59_v9  ;;  %v101_v30 = vld [vmem:[%s10482_s3 + $0xf0] sm:$0xff]  ;;  %v103_v31 = vld [vmem:[%s10482_s3 + $0xf8] sm:$0xff]  ;;  %v105_v32 = vld [vmem:[%s10482_s3 + $0x100] sm:$0xff] }
   0xc   :  { %62 = vst [vmem:[#allocation2 + $0x50] sm:$0xff] %v61_v10  ;;  %v107_v33 = vld [vmem:[%s10482_s3 + $0x108] sm:$0xff]  ;;  %v109_v34 = vld [vmem:[%s10482_s3 + $0x110] sm:$0xff]  ;;  %v111_v35 = vld [vmem:[%s10482_s3 + $0x118] sm:$0xff] }
   0xd   :  { %64 = vst [vmem:[#allocation2 + $0x58] sm:$0xff] %v63_v11  ;;  %v113_v36 = vld [vmem:[%s10482_s3 + $0x120] sm:$0xff]  ;;  %v115_v37 = vld [vmem:[%s10482_s3 + $0x128] sm:$0xff]  ;;  %v117_v38 = vld [vmem:[%s10482_s3 + $0x130] sm:$0xff] }
   0xe   :  { %66 = vst [vmem:[#allocation2 + $0x60] sm:$0xff] %v65_v12  ;;  %v119_v39 = vld [vmem:[%s10482_s3 + $0x138] sm:$0xff]  ;;  %v121_v40 = vld [vmem:[%s10482_s3 + $0x140] sm:$0xff]  ;;  %v123_v41 = vld [vmem:[%s10482_s3 + $0x148] sm:$0xff] }
   0xf   :  { %68 = vst [vmem:[#allocation2 + $0x68] sm:$0xff] %v67_v13  ;;  %v125_v42 = vld [vmem:[%s10482_s3 + $0x150] sm:$0xff]  ;;  %v127_v43 = vld [vmem:[%s10482_s3 + $0x158] sm:$0xff]  ;;  %v129_v44 = vld [vmem:[%s10482_s3 + $0x160] sm:$0xff] }
  0x10   :  { %70 = vst [vmem:[#allocation2 + $0x70] sm:$0xff] %v69_v14  ;;  %v131_v45 = vld [vmem:[%s10482_s3 + $0x168] sm:$0xff]  ;;  %v133_v46 = vld [vmem:[%s10482_s3 + $0x170] sm:$0xff]  ;;  %v135_v47 = vld [vmem:[%s10482_s3 + $0x178] sm:$0xff] }
  0x11   :  { %72 = vst [vmem:[#allocation2 + $0x78] sm:$0xff] %v71_v15  ;;  %v137_v48 = vld [vmem:[%s10482_s3 + $0x180] sm:$0xff]  ;;  %v139_v49 = vld [vmem:[%s10482_s3 + $0x188] sm:$0xff]  ;;  %v141_v50 = vld [vmem:[%s10482_s3 + $0x190] sm:$0xff] }
  0x12   :  { %74 = vst [vmem:[#allocation2 + $0x80] sm:$0xff] %v73_v16  ;;  %v143_v51 = vld [vmem:[%s10482_s3 + $0x198] sm:$0xff]  ;;  %v145_v52 = vld [vmem:[%s10482_s3 + $0x1a0] sm:$0xff]  ;;  %v147_v53 = vld [vmem:[%s10482_s3 + $0x1a8] sm:$0xff] }
  0x13   :  { %76 = vst [vmem:[#allocation2 + $0x88] sm:$0xff] %v75_v17  ;;  %v149_v54 = vld [vmem:[%s10482_s3 + $0x1b0] sm:$0xff]  ;;  %v151_v55 = vld [vmem:[%s10482_s3 + $0x1b8] sm:$0xff]  ;;  %v153_v56 = vld [vmem:[%s10482_s3 + $0x1c0] sm:$0xff] }
  0x14   :  { %78 = vst [vmem:[#allocation2 + $0x90] sm:$0xff] %v77_v18  ;;  %v155_v57 = vld [vmem:[%s10482_s3 + $0x1c8] sm:$0xff]  ;;  %v157_v58 = vld [vmem:[%s10482_s3 + $0x1d0] sm:$0xff]  ;;  %v159_v59 = vld [vmem:[%s10482_s3 + $0x1d8] sm:$0xff] }
  0x15   :  { %80 = vst [vmem:[#allocation2 + $0x98] sm:$0xff] %v79_v19  ;;  %v161_v60 = vld [vmem:[%s10482_s3 + $0x1e0] sm:$0xff]  ;;  %v163_v61 = vld [vmem:[%s10482_s3 + $0x1e8] sm:$0xff]  ;;  %v165_v62 = vld [vmem:[%s10482_s3 + $0x1f0] sm:$0xff] }
  0x16   :  { %82 = vst [vmem:[#allocation2 + $0xa0] sm:$0xff] %v81_v20  ;;  %v167_v63 = vld [vmem:[%s10482_s3 + $0x1f8] sm:$0xff]  ;;  %v169_v0 = vld [vmem:[%s10482_s3 + $0x200] sm:$0xff]  ;;  %v171_v1 = vld [vmem:[%s10482_s3 + $0x208] sm:$0xff] }
  0x17   :  { %84 = vst [vmem:[#allocation2 + $0xa8] sm:$0xff] %v83_v21  ;;  %v173_v2 = vld [vmem:[%s10482_s3 + $0x210] sm:$0xff]  ;;  %v175_v3 = vld [vmem:[%s10482_s3 + $0x218] sm:$0xff]  ;;  %v177_v4 = vld [vmem:[%s10482_s3 + $0x220] sm:$0xff] }
  0x18   :  { %86 = vst [vmem:[#allocation2 + $0xb0] sm:$0xff] %v85_v22  ;;  %v179_v5 = vld [vmem:[%s10482_s3 + $0x228] sm:$0xff]  ;;  %v181_v6 = vld [vmem:[%s10482_s3 + $0x230] sm:$0xff]  ;;  %v183_v7 = vld [vmem:[%s10482_s3 + $0x238] sm:$0xff] }
  0x19   :  { %88 = vst [vmem:[#allocation2 + $0xb8] sm:$0xff] %v87_v23  ;;  %v185_v8 = vld [vmem:[%s10482_s3 + $0x240] sm:$0xff]  ;;  %v187_v9 = vld [vmem:[%s10482_s3 + $0x248] sm:$0xff]  ;;  %v189_v10 = vld [vmem:[%s10482_s3 + $0x250] sm:$0xff] }
  0x1a   :  { %90 = vst [vmem:[#allocation2 + $0xc0] sm:$0xff] %v89_v24  ;;  %v191_v11 = vld [vmem:[%s10482_s3 + $0x258] sm:$0xff]  ;;  %v193_v12 = vld [vmem:[%s10482_s3 + $0x260] sm:$0xff]  ;;  %v195_v13 = vld [vmem:[%s10482_s3 + $0x268] sm:$0xff] }
  0x1b   :  { %92 = vst [vmem:[#allocation2 + $0xc8] sm:$0xff] %v91_v25  ;;  %v197_v14 = vld [vmem:[%s10482_s3 + $0x270] sm:$0xff]  ;;  %v199_v15 = vld [vmem:[%s10482_s3 + $0x278] sm:$0xff]  ;;  %v201_v16 = vld [vmem:[%s10482_s3 + $0x280] sm:$0xff] }
  0x1c   :  { %94 = vst [vmem:[#allocation2 + $0xd0] sm:$0xff] %v93_v26  ;;  %v203_v17 = vld [vmem:[%s10482_s3 + $0x288] sm:$0xff]  ;;  %v205_v18 = vld [vmem:[%s10482_s3 + $0x290] sm:$0xff]  ;;  %v207_v19 = vld [vmem:[%s10482_s3 + $0x298] sm:$0xff] }
  0x1d   :  { %96 = vst [vmem:[#allocation2 + $0xd8] sm:$0xff] %v95_v27  ;;  %v209_v20 = vld [vmem:[%s10482_s3 + $0x2a0] sm:$0xff]  ;;  %v211_v21 = vld [vmem:[%s10482_s3 + $0x2a8] sm:$0xff]  ;;  %v213_v22 = vld [vmem:[%s10482_s3 + $0x2b0] sm:$0xff] }
  0x1e   :  { %98 = vst [vmem:[#allocation2 + $0xe0] sm:$0xff] %v97_v28  ;;  %v215_v23 = vld [vmem:[%s10482_s3 + $0x2b8] sm:$0xff]  ;;  %v217_v24 = vld [vmem:[%s10482_s3 + $0x2c0] sm:$0xff]  ;;  %v219_v25 = vld [vmem:[%s10482_s3 + $0x2c8] sm:$0xff] }
  0x1f   :  { %100 = vst [vmem:[#allocation2 + $0xe8] sm:$0xff] %v99_v29  ;;  %v221_v26 = vld [vmem:[%s10482_s3 + $0x2d0] sm:$0xff]  ;;  %v223_v27 = vld [vmem:[%s10482_s3 + $0x2d8] sm:$0xff]  ;;  %v225_v28 = vld [vmem:[%s10482_s3 + $0x2e0] sm:$0xff] }
  0x20   :  { %102 = vst [vmem:[#allocation2 + $0xf0] sm:$0xff] %v101_v30  ;;  %v227_v29 = vld [vmem:[%s10482_s3 + $0x2e8] sm:$0xff]  ;;  %v229_v30 = vld [vmem:[%s10482_s3 + $0x2f0] sm:$0xff] }
  0x21   :  { %104 = vst [vmem:[#allocation2 + $0xf8] sm:$0xff] %v103_v31  ;;  %v231_v31 = vld [vmem:[%s10482_s3 + $0x2f8] sm:$0xff] }
  0x22   :  { %106 = vst [vmem:[#allocation2 + $0x100] sm:$0xff] %v105_v32  ;;  %v233_v32 = vld [vmem:[%s10482_s3 + $0x300] sm:$0xff] }
  0x23   :  { %108 = vst [vmem:[#allocation2 + $0x108] sm:$0xff] %v107_v33  ;;  %v235_v33 = vld [vmem:[%s10482_s3 + $0x308] sm:$0xff] }
  0x24   :  { %110 = vst [vmem:[#allocation2 + $0x110] sm:$0xff] %v109_v34  ;;  %v237_v34 = vld [vmem:[%s10482_s3 + $0x310] sm:$0xff] }
  0x25   :  { %112 = vst [vmem:[#allocation2 + $0x118] sm:$0xff] %v111_v35  ;;  %v239_v35 = vld [vmem:[%s10482_s3 + $0x318] sm:$0xff] }
  0x26   :  { %114 = vst [vmem:[#allocation2 + $0x120] sm:$0xff] %v113_v36  ;;  %v241_v36 = vld [vmem:[%s10482_s3 + $0x320] sm:$0xff] }
  0x27   :  { %116 = vst [vmem:[#allocation2 + $0x128] sm:$0xff] %v115_v37  ;;  %v243_v37 = vld [vmem:[%s10482_s3 + $0x328] sm:$0xff] }
  0x28   :  { %118 = vst [vmem:[#allocation2 + $0x130] sm:$0xff] %v117_v38  ;;  %v245_v38 = vld [vmem:[%s10482_s3 + $0x330] sm:$0xff] }
  0x29   :  { %120 = vst [vmem:[#allocation2 + $0x138] sm:$0xff] %v119_v39  ;;  %v247_v39 = vld [vmem:[%s10482_s3 + $0x338] sm:$0xff] }
  0x2a   :  { %122 = vst [vmem:[#allocation2 + $0x140] sm:$0xff] %v121_v40  ;;  %v249_v40 = vld [vmem:[%s10482_s3 + $0x340] sm:$0xff] }
  0x2b   :  { %124 = vst [vmem:[#allocation2 + $0x148] sm:$0xff] %v123_v41  ;;  %v251_v41 = vld [vmem:[%s10482_s3 + $0x348] sm:$0xff] }
  0x2c   :  { %126 = vst [vmem:[#allocation2 + $0x150] sm:$0xff] %v125_v42  ;;  %v253_v42 = vld [vmem:[%s10482_s3 + $0x350] sm:$0xff] }
  0x2d   :  { %128 = vst [vmem:[#allocation2 + $0x158] sm:$0xff] %v127_v43  ;;  %v255_v43 = vld [vmem:[%s10482_s3 + $0x358] sm:$0xff] }
  0x2e   :  { %130 = vst [vmem:[#allocation2 + $0x160] sm:$0xff] %v129_v44  ;;  %v257_v44 = vld [vmem:[%s10482_s3 + $0x360] sm:$0xff] }
  0x2f   :  { %132 = vst [vmem:[#allocation2 + $0x168] sm:$0xff] %v131_v45  ;;  %v259_v45 = vld [vmem:[%s10482_s3 + $0x368] sm:$0xff] }
  0x30   :  { %134 = vst [vmem:[#allocation2 + $0x170] sm:$0xff] %v133_v46  ;;  %v261_v46 = vld [vmem:[%s10482_s3 + $0x370] sm:$0xff] }
  0x31   :  { %136 = vst [vmem:[#allocation2 + $0x178] sm:$0xff] %v135_v47  ;;  %v263_v47 = vld [vmem:[%s10482_s3 + $0x378] sm:$0xff] }
  0x32   :  { %138 = vst [vmem:[#allocation2 + $0x180] sm:$0xff] %v137_v48  ;;  %v265_v48 = vld [vmem:[%s10482_s3 + $0x380] sm:$0xff] }
  0x33   :  { %140 = vst [vmem:[#allocation2 + $0x188] sm:$0xff] %v139_v49  ;;  %v267_v49 = vld [vmem:[%s10482_s3 + $0x388] sm:$0xff] }
  0x34   :  { %142 = vst [vmem:[#allocation2 + $0x190] sm:$0xff] %v141_v50  ;;  %v269_v50 = vld [vmem:[%s10482_s3 + $0x390] sm:$0xff] }
  0x35   :  { %144 = vst [vmem:[#allocation2 + $0x198] sm:$0xff] %v143_v51  ;;  %v271_v51 = vld [vmem:[%s10482_s3 + $0x398] sm:$0xff] }
  0x36   :  { %146 = vst [vmem:[#allocation2 + $0x1a0] sm:$0xff] %v145_v52  ;;  %v273_v52 = vld [vmem:[%s10482_s3 + $0x3a0] sm:$0xff] }
  0x37   :  { %148 = vst [vmem:[#allocation2 + $0x1a8] sm:$0xff] %v147_v53  ;;  %v275_v53 = vld [vmem:[%s10482_s3 + $0x3a8] sm:$0xff] }
  0x38   :  { %150 = vst [vmem:[#allocation2 + $0x1b0] sm:$0xff] %v149_v54  ;;  %v277_v54 = vld [vmem:[%s10482_s3 + $0x3b0] sm:$0xff] }
  0x39   :  { %152 = vst [vmem:[#allocation2 + $0x1b8] sm:$0xff] %v151_v55  ;;  %v279_v55 = vld [vmem:[%s10482_s3 + $0x3b8] sm:$0xff] }
  0x3a   :  { %154 = vst [vmem:[#allocation2 + $0x1c0] sm:$0xff] %v153_v56  ;;  %v281_v56 = vld [vmem:[%s10482_s3 + $0x3c0] sm:$0xff] }
  0x3b   :  { %156 = vst [vmem:[#allocation2 + $0x1c8] sm:$0xff] %v155_v57  ;;  %v283_v57 = vld [vmem:[%s10482_s3 + $0x3c8] sm:$0xff] }
  0x3c   :  { %158 = vst [vmem:[#allocation2 + $0x1d0] sm:$0xff] %v157_v58  ;;  %v285_v58 = vld [vmem:[%s10482_s3 + $0x3d0] sm:$0xff] }
  0x3d   :  { %160 = vst [vmem:[#allocation2 + $0x1d8] sm:$0xff] %v159_v59  ;;  %v287_v59 = vld [vmem:[%s10482_s3 + $0x3d8] sm:$0xff] }
  0x3e   :  { %162 = vst [vmem:[#allocation2 + $0x1e0] sm:$0xff] %v161_v60  ;;  %v289_v60 = vld [vmem:[%s10482_s3 + $0x3e0] sm:$0xff] }
  0x3f   :  { %164 = vst [vmem:[#allocation2 + $0x1e8] sm:$0xff] %v163_v61  ;;  %v291_v61 = vld [vmem:[%s10482_s3 + $0x3e8] sm:$0xff] }
  0x40   :  { %166 = vst [vmem:[#allocation2 + $0x1f0] sm:$0xff] %v165_v62  ;;  %v293_v62 = vld [vmem:[%s10482_s3 + $0x3f0] sm:$0xff] }
  0x41   :  { %168 = vst [vmem:[#allocation2 + $0x1f8] sm:$0xff] %v167_v63  ;;  %v295_v63 = vld [vmem:[%s10482_s3 + $0x3f8] sm:$0xff] }
  0x42   :  { %170 = vst [vmem:[#allocation2 + $0x200] sm:$0xff] %v169_v0  ;;  %v297_v0 = vld [vmem:[%s10482_s3 + $0x400] sm:$0xff] }
  0x43   :  { %172 = vst [vmem:[#allocation2 + $0x208] sm:$0xff] %v171_v1  ;;  %v299_v1 = vld [vmem:[%s10482_s3 + $0x408] sm:$0xff] }
  0x44   :  { %174 = vst [vmem:[#allocation2 + $0x210] sm:$0xff] %v173_v2  ;;  %v301_v2 = vld [vmem:[%s10482_s3 + $0x410] sm:$0xff] }
  0x45   :  { %176 = vst [vmem:[#allocation2 + $0x218] sm:$0xff] %v175_v3  ;;  %v303_v3 = vld [vmem:[%s10482_s3 + $0x418] sm:$0xff] }
  0x46   :  { %178 = vst [vmem:[#allocation2 + $0x220] sm:$0xff] %v177_v4  ;;  %v305_v4 = vld [vmem:[%s10482_s3 + $0x420] sm:$0xff] }
  0x47   :  { %180 = vst [vmem:[#allocation2 + $0x228] sm:$0xff] %v179_v5  ;;  %v307_v5 = vld [vmem:[%s10482_s3 + $0x428] sm:$0xff] }
  0x48   :  { %182 = vst [vmem:[#allocation2 + $0x230] sm:$0xff] %v181_v6  ;;  %v309_v6 = vld [vmem:[%s10482_s3 + $0x430] sm:$0xff] }
  0x49   :  { %184 = vst [vmem:[#allocation2 + $0x238] sm:$0xff] %v183_v7  ;;  %v311_v7 = vld [vmem:[%s10482_s3 + $0x438] sm:$0xff] }
  0x4a   :  { %186 = vst [vmem:[#allocation2 + $0x240] sm:$0xff] %v185_v8  ;;  %v313_v8 = vld [vmem:[%s10482_s3 + $0x440] sm:$0xff] }
  0x4b   :  { %188 = vst [vmem:[#allocation2 + $0x248] sm:$0xff] %v187_v9  ;;  %v315_v9 = vld [vmem:[%s10482_s3 + $0x448] sm:$0xff] }
  0x4c   :  { %190 = vst [vmem:[#allocation2 + $0x250] sm:$0xff] %v189_v10  ;;  %v317_v10 = vld [vmem:[%s10482_s3 + $0x450] sm:$0xff] }
  0x4d   :  { %192 = vst [vmem:[#allocation2 + $0x258] sm:$0xff] %v191_v11  ;;  %v319_v11 = vld [vmem:[%s10482_s3 + $0x458] sm:$0xff] }
  0x4e   :  { %194 = vst [vmem:[#allocation2 + $0x260] sm:$0xff] %v193_v12  ;;  %v321_v12 = vld [vmem:[%s10482_s3 + $0x460] sm:$0xff] }
  0x4f   :  { %196 = vst [vmem:[#allocation2 + $0x268] sm:$0xff] %v195_v13  ;;  %v323_v13 = vld [vmem:[%s10482_s3 + $0x468] sm:$0xff] }
  0x50   :  { %198 = vst [vmem:[#allocation2 + $0x270] sm:$0xff] %v197_v14  ;;  %v325_v14 = vld [vmem:[%s10482_s3 + $0x470] sm:$0xff] }
  0x51   :  { %200 = vst [vmem:[#allocation2 + $0x278] sm:$0xff] %v199_v15  ;;  %v327_v15 = vld [vmem:[%s10482_s3 + $0x478] sm:$0xff] }
  0x52   :  { %202 = vst [vmem:[#allocation2 + $0x280] sm:$0xff] %v201_v16  ;;  %v329_v16 = vld [vmem:[%s10482_s3 + $0x480] sm:$0xff] }
  0x53   :  { %204 = vst [vmem:[#allocation2 + $0x288] sm:$0xff] %v203_v17  ;;  %v331_v17 = vld [vmem:[%s10482_s3 + $0x488] sm:$0xff] }
  0x54   :  { %206 = vst [vmem:[#allocation2 + $0x290] sm:$0xff] %v205_v18  ;;  %v333_v18 = vld [vmem:[%s10482_s3 + $0x490] sm:$0xff] }
  0x55   :  { %208 = vst [vmem:[#allocation2 + $0x298] sm:$0xff] %v207_v19  ;;  %v335_v19 = vld [vmem:[%s10482_s3 + $0x498] sm:$0xff] }
  0x56   :  { %210 = vst [vmem:[#allocation2 + $0x2a0] sm:$0xff] %v209_v20  ;;  %v337_v20 = vld [vmem:[%s10482_s3 + $0x4a0] sm:$0xff] }
  0x57   :  { %212 = vst [vmem:[#allocation2 + $0x2a8] sm:$0xff] %v211_v21  ;;  %v339_v21 = vld [vmem:[%s10482_s3 + $0x4a8] sm:$0xff] }
  0x58   :  { %214 = vst [vmem:[#allocation2 + $0x2b0] sm:$0xff] %v213_v22  ;;  %v341_v22 = vld [vmem:[%s10482_s3 + $0x4b0] sm:$0xff] }
  0x59   :  { %216 = vst [vmem:[#allocation2 + $0x2b8] sm:$0xff] %v215_v23  ;;  %v343_v23 = vld [vmem:[%s10482_s3 + $0x4b8] sm:$0xff] }
  0x5a   :  { %218 = vst [vmem:[#allocation2 + $0x2c0] sm:$0xff] %v217_v24  ;;  %v345_v24 = vld [vmem:[%s10482_s3 + $0x4c0] sm:$0xff] }
  0x5b   :  { %220 = vst [vmem:[#allocation2 + $0x2c8] sm:$0xff] %v219_v25  ;;  %v347_v25 = vld [vmem:[%s10482_s3 + $0x4c8] sm:$0xff] }
  0x5c   :  { %222 = vst [vmem:[#allocation2 + $0x2d0] sm:$0xff] %v221_v26  ;;  %v349_v26 = vld [vmem:[%s10482_s3 + $0x4d0] sm:$0xff] }
  0x5d   :  { %224 = vst [vmem:[#allocation2 + $0x2d8] sm:$0xff] %v223_v27  ;;  %v351_v27 = vld [vmem:[%s10482_s3 + $0x4d8] sm:$0xff] }
  0x5e   :  { %226 = vst [vmem:[#allocation2 + $0x2e0] sm:$0xff] %v225_v28  ;;  %v353_v28 = vld [vmem:[%s10482_s3 + $0x4e0] sm:$0xff] }
  0x5f   :  { %228 = vst [vmem:[#allocation2 + $0x2e8] sm:$0xff] %v227_v29  ;;  %v355_v29 = vld [vmem:[%s10482_s3 + $0x4e8] sm:$0xff] }
  0x60   :  { %230 = vst [vmem:[#allocation2 + $0x2f0] sm:$0xff] %v229_v30  ;;  %v357_v30 = vld [vmem:[%s10482_s3 + $0x4f0] sm:$0xff] }
  0x61   :  { %232 = vst [vmem:[#allocation2 + $0x2f8] sm:$0xff] %v231_v31  ;;  %v359_v31 = vld [vmem:[%s10482_s3 + $0x4f8] sm:$0xff] }
  0x62   :  { %234 = vst [vmem:[#allocation2 + $0x300] sm:$0xff] %v233_v32  ;;  %v361_v32 = vld [vmem:[%s10482_s3 + $0x500] sm:$0xff] }
  0x63   :  { %236 = vst [vmem:[#allocation2 + $0x308] sm:$0xff] %v235_v33  ;;  %v363_v33 = vld [vmem:[%s10482_s3 + $0x508] sm:$0xff] }
  0x64   :  { %238 = vst [vmem:[#allocation2 + $0x310] sm:$0xff] %v237_v34  ;;  %v365_v34 = vld [vmem:[%s10482_s3 + $0x510] sm:$0xff] }
  0x65   :  { %240 = vst [vmem:[#allocation2 + $0x318] sm:$0xff] %v239_v35  ;;  %v367_v35 = vld [vmem:[%s10482_s3 + $0x518] sm:$0xff] }
  0x66   :  { %242 = vst [vmem:[#allocation2 + $0x320] sm:$0xff] %v241_v36  ;;  %v369_v36 = vld [vmem:[%s10482_s3 + $0x520] sm:$0xff] }
  0x67   :  { %244 = vst [vmem:[#allocation2 + $0x328] sm:$0xff] %v243_v37  ;;  %v371_v37 = vld [vmem:[%s10482_s3 + $0x528] sm:$0xff] }
  0x68   :  { %246 = vst [vmem:[#allocation2 + $0x330] sm:$0xff] %v245_v38  ;;  %v373_v38 = vld [vmem:[%s10482_s3 + $0x530] sm:$0xff] }
  0x69   :  { %248 = vst [vmem:[#allocation2 + $0x338] sm:$0xff] %v247_v39  ;;  %v375_v39 = vld [vmem:[%s10482_s3 + $0x538] sm:$0xff] }
  0x6a   :  { %250 = vst [vmem:[#allocation2 + $0x340] sm:$0xff] %v249_v40  ;;  %v377_v40 = vld [vmem:[%s10482_s3 + $0x540] sm:$0xff] }
  0x6b   :  { %252 = vst [vmem:[#allocation2 + $0x348] sm:$0xff] %v251_v41  ;;  %v379_v41 = vld [vmem:[%s10482_s3 + $0x548] sm:$0xff] }
  0x6c   :  { %254 = vst [vmem:[#allocation2 + $0x350] sm:$0xff] %v253_v42  ;;  %v381_v42 = vld [vmem:[%s10482_s3 + $0x550] sm:$0xff] }
  0x6d   :  { %256 = vst [vmem:[#allocation2 + $0x358] sm:$0xff] %v255_v43  ;;  %v383_v43 = vld [vmem:[%s10482_s3 + $0x558] sm:$0xff] }
  0x6e   :  { %258 = vst [vmem:[#allocation2 + $0x360] sm:$0xff] %v257_v44  ;;  %v385_v44 = vld [vmem:[%s10482_s3 + $0x560] sm:$0xff] }
  0x6f   :  { %260 = vst [vmem:[#allocation2 + $0x368] sm:$0xff] %v259_v45  ;;  %v387_v45 = vld [vmem:[%s10482_s3 + $0x568] sm:$0xff] }
  0x70   :  { %262 = vst [vmem:[#allocation2 + $0x370] sm:$0xff] %v261_v46  ;;  %v389_v46 = vld [vmem:[%s10482_s3 + $0x570] sm:$0xff] }
  0x71   :  { %264 = vst [vmem:[#allocation2 + $0x378] sm:$0xff] %v263_v47  ;;  %v391_v47 = vld [vmem:[%s10482_s3 + $0x578] sm:$0xff] }
  0x72   :  { %266 = vst [vmem:[#allocation2 + $0x380] sm:$0xff] %v265_v48  ;;  %v393_v48 = vld [vmem:[%s10482_s3 + $0x580] sm:$0xff] }
  0x73   :  { %268 = vst [vmem:[#allocation2 + $0x388] sm:$0xff] %v267_v49  ;;  %v395_v49 = vld [vmem:[%s10482_s3 + $0x588] sm:$0xff] }
  0x74   :  { %270 = vst [vmem:[#allocation2 + $0x390] sm:$0xff] %v269_v50  ;;  %v397_v50 = vld [vmem:[%s10482_s3 + $0x590] sm:$0xff] }
  0x75   :  { %272 = vst [vmem:[#allocation2 + $0x398] sm:$0xff] %v271_v51  ;;  %v399_v51 = vld [vmem:[%s10482_s3 + $0x598] sm:$0xff] }
  0x76   :  { %274 = vst [vmem:[#allocation2 + $0x3a0] sm:$0xff] %v273_v52  ;;  %v401_v52 = vld [vmem:[%s10482_s3 + $0x5a0] sm:$0xff] }
  0x77   :  { %276 = vst [vmem:[#allocation2 + $0x3a8] sm:$0xff] %v275_v53  ;;  %v403_v53 = vld [vmem:[%s10482_s3 + $0x5a8] sm:$0xff] }
  0x78   :  { %278 = vst [vmem:[#allocation2 + $0x3b0] sm:$0xff] %v277_v54  ;;  %v405_v54 = vld [vmem:[%s10482_s3 + $0x5b0] sm:$0xff] }
  0x79   :  { %280 = vst [vmem:[#allocation2 + $0x3b8] sm:$0xff] %v279_v55  ;;  %v407_v55 = vld [vmem:[%s10482_s3 + $0x5b8] sm:$0xff] }
  0x7a   :  { %282 = vst [vmem:[#allocation2 + $0x3c0] sm:$0xff] %v281_v56  ;;  %v409_v56 = vld [vmem:[%s10482_s3 + $0x5c0] sm:$0xff] }
  0x7b   :  { %284 = vst [vmem:[#allocation2 + $0x3c8] sm:$0xff] %v283_v57  ;;  %v411_v57 = vld [vmem:[%s10482_s3 + $0x5c8] sm:$0xff] }
  0x7c   :  { %286 = vst [vmem:[#allocation2 + $0x3d0] sm:$0xff] %v285_v58  ;;  %v413_v58 = vld [vmem:[%s10482_s3 + $0x5d0] sm:$0xff] }
  0x7d   :  { %288 = vst [vmem:[#allocation2 + $0x3d8] sm:$0xff] %v287_v59  ;;  %v415_v59 = vld [vmem:[%s10482_s3 + $0x5d8] sm:$0xff] }
  0x7e   :  { %290 = vst [vmem:[#allocation2 + $0x3e0] sm:$0xff] %v289_v60  ;;  %v417_v60 = vld [vmem:[%s10482_s3 + $0x5e0] sm:$0xff] }
  0x7f   :  { %292 = vst [vmem:[#allocation2 + $0x3e8] sm:$0xff] %v291_v61  ;;  %v419_v61 = vld [vmem:[%s10482_s3 + $0x5e8] sm:$0xff] }
  0x80   :  { %294 = vst [vmem:[#allocation2 + $0x3f0] sm:$0xff] %v293_v62  ;;  %v421_v62 = vld [vmem:[%s10482_s3 + $0x5f0] sm:$0xff] }
  0x81   :  { %296 = vst [vmem:[#allocation2 + $0x3f8] sm:$0xff] %v295_v63  ;;  %v423_v63 = vld [vmem:[%s10482_s3 + $0x5f8] sm:$0xff] }
  0x82   :  { %298 = vst [vmem:[#allocation2 + $0x400] sm:$0xff] %v297_v0  ;;  %v425_v0 = vld [vmem:[%s10482_s3 + $0x600] sm:$0xff] }
  0x83   :  { %300 = vst [vmem:[#allocation2 + $0x408] sm:$0xff] %v299_v1  ;;  %v427_v1 = vld [vmem:[%s10482_s3 + $0x608] sm:$0xff] }
  0x84   :  { %302 = vst [vmem:[#allocation2 + $0x410] sm:$0xff] %v301_v2  ;;  %v429_v2 = vld [vmem:[%s10482_s3 + $0x610] sm:$0xff] }
  0x85   :  { %304 = vst [vmem:[#allocation2 + $0x418] sm:$0xff] %v303_v3  ;;  %v431_v3 = vld [vmem:[%s10482_s3 + $0x618] sm:$0xff] }
  0x86   :  { %306 = vst [vmem:[#allocation2 + $0x420] sm:$0xff] %v305_v4  ;;  %v433_v4 = vld [vmem:[%s10482_s3 + $0x620] sm:$0xff] }
  0x87   :  { %308 = vst [vmem:[#allocation2 + $0x428] sm:$0xff] %v307_v5  ;;  %v435_v5 = vld [vmem:[%s10482_s3 + $0x628] sm:$0xff] }
  0x88   :  { %310 = vst [vmem:[#allocation2 + $0x430] sm:$0xff] %v309_v6  ;;  %v437_v6 = vld [vmem:[%s10482_s3 + $0x630] sm:$0xff] }
  0x89   :  { %312 = vst [vmem:[#allocation2 + $0x438] sm:$0xff] %v311_v7  ;;  %v439_v7 = vld [vmem:[%s10482_s3 + $0x638] sm:$0xff] }
  0x8a   :  { %314 = vst [vmem:[#allocation2 + $0x440] sm:$0xff] %v313_v8  ;;  %v441_v8 = vld [vmem:[%s10482_s3 + $0x640] sm:$0xff] }
  0x8b   :  { %316 = vst [vmem:[#allocation2 + $0x448] sm:$0xff] %v315_v9  ;;  %v443_v9 = vld [vmem:[%s10482_s3 + $0x648] sm:$0xff] }
  0x8c   :  { %318 = vst [vmem:[#allocation2 + $0x450] sm:$0xff] %v317_v10  ;;  %v445_v10 = vld [vmem:[%s10482_s3 + $0x650] sm:$0xff] }
  0x8d   :  { %320 = vst [vmem:[#allocation2 + $0x458] sm:$0xff] %v319_v11  ;;  %v447_v11 = vld [vmem:[%s10482_s3 + $0x658] sm:$0xff] }
  0x8e   :  { %322 = vst [vmem:[#allocation2 + $0x460] sm:$0xff] %v321_v12  ;;  %v449_v12 = vld [vmem:[%s10482_s3 + $0x660] sm:$0xff] }
  0x8f   :  { %324 = vst [vmem:[#allocation2 + $0x468] sm:$0xff] %v323_v13  ;;  %v451_v13 = vld [vmem:[%s10482_s3 + $0x668] sm:$0xff] }
  0x90   :  { %326 = vst [vmem:[#allocation2 + $0x470] sm:$0xff] %v325_v14  ;;  %v453_v14 = vld [vmem:[%s10482_s3 + $0x670] sm:$0xff] }
  0x91   :  { %328 = vst [vmem:[#allocation2 + $0x478] sm:$0xff] %v327_v15  ;;  %v455_v15 = vld [vmem:[%s10482_s3 + $0x678] sm:$0xff] }
  0x92   :  { %330 = vst [vmem:[#allocation2 + $0x480] sm:$0xff] %v329_v16  ;;  %v457_v16 = vld [vmem:[%s10482_s3 + $0x680] sm:$0xff] }
  0x93   :  { %332 = vst [vmem:[#allocation2 + $0x488] sm:$0xff] %v331_v17  ;;  %v459_v17 = vld [vmem:[%s10482_s3 + $0x688] sm:$0xff] }
  0x94   :  { %334 = vst [vmem:[#allocation2 + $0x490] sm:$0xff] %v333_v18  ;;  %v461_v18 = vld [vmem:[%s10482_s3 + $0x690] sm:$0xff] }
  0x95   :  { %336 = vst [vmem:[#allocation2 + $0x498] sm:$0xff] %v335_v19  ;;  %v463_v19 = vld [vmem:[%s10482_s3 + $0x698] sm:$0xff] }
  0x96   :  { %338 = vst [vmem:[#allocation2 + $0x4a0] sm:$0xff] %v337_v20  ;;  %v465_v20 = vld [vmem:[%s10482_s3 + $0x6a0] sm:$0xff] }
  0x97   :  { %340 = vst [vmem:[#allocation2 + $0x4a8] sm:$0xff] %v339_v21  ;;  %v467_v21 = vld [vmem:[%s10482_s3 + $0x6a8] sm:$0xff] }
  0x98   :  { %342 = vst [vmem:[#allocation2 + $0x4b0] sm:$0xff] %v341_v22  ;;  %v469_v22 = vld [vmem:[%s10482_s3 + $0x6b0] sm:$0xff] }
  0x99   :  { %344 = vst [vmem:[#allocation2 + $0x4b8] sm:$0xff] %v343_v23  ;;  %v471_v23 = vld [vmem:[%s10482_s3 + $0x6b8] sm:$0xff] }
  0x9a   :  { %346 = vst [vmem:[#allocation2 + $0x4c0] sm:$0xff] %v345_v24  ;;  %v473_v24 = vld [vmem:[%s10482_s3 + $0x6c0] sm:$0xff] }
  0x9b   :  { %348 = vst [vmem:[#allocation2 + $0x4c8] sm:$0xff] %v347_v25  ;;  %v475_v25 = vld [vmem:[%s10482_s3 + $0x6c8] sm:$0xff] }
  0x9c   :  { %350 = vst [vmem:[#allocation2 + $0x4d0] sm:$0xff] %v349_v26  ;;  %v477_v26 = vld [vmem:[%s10482_s3 + $0x6d0] sm:$0xff] }
  0x9d   :  { %352 = vst [vmem:[#allocation2 + $0x4d8] sm:$0xff] %v351_v27  ;;  %v479_v27 = vld [vmem:[%s10482_s3 + $0x6d8] sm:$0xff] }
  0x9e   :  { %354 = vst [vmem:[#allocation2 + $0x4e0] sm:$0xff] %v353_v28  ;;  %v481_v28 = vld [vmem:[%s10482_s3 + $0x6e0] sm:$0xff] }
  0x9f   :  { %356 = vst [vmem:[#allocation2 + $0x4e8] sm:$0xff] %v355_v29  ;;  %v483_v29 = vld [vmem:[%s10482_s3 + $0x6e8] sm:$0xff] }
  0xa0   :  { %358 = vst [vmem:[#allocation2 + $0x4f0] sm:$0xff] %v357_v30  ;;  %v485_v30 = vld [vmem:[%s10482_s3 + $0x6f0] sm:$0xff] }
  0xa1   :  { %360 = vst [vmem:[#allocation2 + $0x4f8] sm:$0xff] %v359_v31  ;;  %v487_v31 = vld [vmem:[%s10482_s3 + $0x6f8] sm:$0xff] }
  0xa2   :  { %362 = vst [vmem:[#allocation2 + $0x500] sm:$0xff] %v361_v32  ;;  %v489_v32 = vld [vmem:[%s10482_s3 + $0x700] sm:$0xff] }
  0xa3   :  { %364 = vst [vmem:[#allocation2 + $0x508] sm:$0xff] %v363_v33  ;;  %v491_v33 = vld [vmem:[%s10482_s3 + $0x708] sm:$0xff] }
  0xa4   :  { %366 = vst [vmem:[#allocation2 + $0x510] sm:$0xff] %v365_v34  ;;  %v493_v34 = vld [vmem:[%s10482_s3 + $0x710] sm:$0xff] }
  0xa5   :  { %368 = vst [vmem:[#allocation2 + $0x518] sm:$0xff] %v367_v35  ;;  %v495_v35 = vld [vmem:[%s10482_s3 + $0x718] sm:$0xff] }
  0xa6   :  { %370 = vst [vmem:[#allocation2 + $0x520] sm:$0xff] %v369_v36  ;;  %v497_v36 = vld [vmem:[%s10482_s3 + $0x720] sm:$0xff] }
  0xa7   :  { %372 = vst [vmem:[#allocation2 + $0x528] sm:$0xff] %v371_v37  ;;  %v499_v37 = vld [vmem:[%s10482_s3 + $0x728] sm:$0xff] }
  0xa8   :  { %374 = vst [vmem:[#allocation2 + $0x530] sm:$0xff] %v373_v38  ;;  %v501_v38 = vld [vmem:[%s10482_s3 + $0x730] sm:$0xff] }
  0xa9   :  { %376 = vst [vmem:[#allocation2 + $0x538] sm:$0xff] %v375_v39  ;;  %v503_v39 = vld [vmem:[%s10482_s3 + $0x738] sm:$0xff] }
  0xaa   :  { %378 = vst [vmem:[#allocation2 + $0x540] sm:$0xff] %v377_v40  ;;  %v505_v40 = vld [vmem:[%s10482_s3 + $0x740] sm:$0xff] }
  0xab   :  { %380 = vst [vmem:[#allocation2 + $0x548] sm:$0xff] %v379_v41  ;;  %v507_v41 = vld [vmem:[%s10482_s3 + $0x748] sm:$0xff] }
  0xac   :  { %382 = vst [vmem:[#allocation2 + $0x550] sm:$0xff] %v381_v42  ;;  %v509_v42 = vld [vmem:[%s10482_s3 + $0x750] sm:$0xff] }
  0xad   :  { %384 = vst [vmem:[#allocation2 + $0x558] sm:$0xff] %v383_v43  ;;  %v511_v43 = vld [vmem:[%s10482_s3 + $0x758] sm:$0xff] }
  0xae   :  { %386 = vst [vmem:[#allocation2 + $0x560] sm:$0xff] %v385_v44  ;;  %v513_v44 = vld [vmem:[%s10482_s3 + $0x760] sm:$0xff] }
  0xaf   :  { %388 = vst [vmem:[#allocation2 + $0x568] sm:$0xff] %v387_v45  ;;  %v515_v45 = vld [vmem:[%s10482_s3 + $0x768] sm:$0xff] }
  0xb0   :  { %390 = vst [vmem:[#allocation2 + $0x570] sm:$0xff] %v389_v46  ;;  %v517_v46 = vld [vmem:[%s10482_s3 + $0x770] sm:$0xff] }
  0xb1   :  { %392 = vst [vmem:[#allocation2 + $0x578] sm:$0xff] %v391_v47  ;;  %v519_v47 = vld [vmem:[%s10482_s3 + $0x778] sm:$0xff] }
  0xb2   :  { %394 = vst [vmem:[#allocation2 + $0x580] sm:$0xff] %v393_v48  ;;  %v521_v48 = vld [vmem:[%s10482_s3 + $0x780] sm:$0xff] }
  0xb3   :  { %396 = vst [vmem:[#allocation2 + $0x588] sm:$0xff] %v395_v49  ;;  %v523_v49 = vld [vmem:[%s10482_s3 + $0x788] sm:$0xff] }
  0xb4   :  { %398 = vst [vmem:[#allocation2 + $0x590] sm:$0xff] %v397_v50  ;;  %v525_v50 = vld [vmem:[%s10482_s3 + $0x790] sm:$0xff] }
  0xb5   :  { %400 = vst [vmem:[#allocation2 + $0x598] sm:$0xff] %v399_v51  ;;  %v527_v51 = vld [vmem:[%s10482_s3 + $0x798] sm:$0xff] }
  0xb6   :  { %402 = vst [vmem:[#allocation2 + $0x5a0] sm:$0xff] %v401_v52  ;;  %v529_v52 = vld [vmem:[%s10482_s3 + $0x7a0] sm:$0xff] }
  0xb7   :  { %404 = vst [vmem:[#allocation2 + $0x5a8] sm:$0xff] %v403_v53  ;;  %v531_v53 = vld [vmem:[%s10482_s3 + $0x7a8] sm:$0xff] }
  0xb8   :  { %406 = vst [vmem:[#allocation2 + $0x5b0] sm:$0xff] %v405_v54  ;;  %v533_v54 = vld [vmem:[%s10482_s3 + $0x7b0] sm:$0xff] }
  0xb9   :  { %408 = vst [vmem:[#allocation2 + $0x5b8] sm:$0xff] %v407_v55  ;;  %v535_v55 = vld [vmem:[%s10482_s3 + $0x7b8] sm:$0xff] }
  0xba   :  { %410 = vst [vmem:[#allocation2 + $0x5c0] sm:$0xff] %v409_v56  ;;  %v537_v56 = vld [vmem:[%s10482_s3 + $0x7c0] sm:$0xff] }
  0xbb   :  { %412 = vst [vmem:[#allocation2 + $0x5c8] sm:$0xff] %v411_v57  ;;  %v539_v57 = vld [vmem:[%s10482_s3 + $0x7c8] sm:$0xff] }
  0xbc   :  { %414 = vst [vmem:[#allocation2 + $0x5d0] sm:$0xff] %v413_v58  ;;  %v541_v58 = vld [vmem:[%s10482_s3 + $0x7d0] sm:$0xff] }
  0xbd   :  { %416 = vst [vmem:[#allocation2 + $0x5d8] sm:$0xff] %v415_v59  ;;  %v543_v59 = vld [vmem:[%s10482_s3 + $0x7d8] sm:$0xff] }
  0xbe   :  { %418 = vst [vmem:[#allocation2 + $0x5e0] sm:$0xff] %v417_v60  ;;  %v545_v60 = vld [vmem:[%s10482_s3 + $0x7e0] sm:$0xff] }
  0xbf   :  { %420 = vst [vmem:[#allocation2 + $0x5e8] sm:$0xff] %v419_v61  ;;  %v547_v61 = vld [vmem:[%s10482_s3 + $0x7e8] sm:$0xff] }
  0xc0   :  { %422 = vst [vmem:[#allocation2 + $0x5f0] sm:$0xff] %v421_v62  ;;  %v549_v62 = vld [vmem:[%s10482_s3 + $0x7f0] sm:$0xff] }
  0xc1   :  { %424 = vst [vmem:[#allocation2 + $0x5f8] sm:$0xff] %v423_v63  ;;  %v551_v63 = vld [vmem:[%s10482_s3 + $0x7f8] sm:$0xff] }
  0xc2   :  { %426 = vst [vmem:[#allocation2 + $0x600] sm:$0xff] %v425_v0 }
  0xc3   :  { %428 = vst [vmem:[#allocation2 + $0x608] sm:$0xff] %v427_v1 }
  0xc4   :  { %430 = vst [vmem:[#allocation2 + $0x610] sm:$0xff] %v429_v2 }
  0xc5   :  { %432 = vst [vmem:[#allocation2 + $0x618] sm:$0xff] %v431_v3 }
  0xc6   :  { %434 = vst [vmem:[#allocation2 + $0x620] sm:$0xff] %v433_v4 }
  0xc7   :  { %436 = vst [vmem:[#allocation2 + $0x628] sm:$0xff] %v435_v5 }
  0xc8   :  { %438 = vst [vmem:[#allocation2 + $0x630] sm:$0xff] %v437_v6 }
  0xc9   :  { %440 = vst [vmem:[#allocation2 + $0x638] sm:$0xff] %v439_v7 }
  0xca   :  { %442 = vst [vmem:[#allocation2 + $0x640] sm:$0xff] %v441_v8 }
  0xcb   :  { %444 = vst [vmem:[#allocation2 + $0x648] sm:$0xff] %v443_v9 }
  0xcc   :  { %446 = vst [vmem:[#allocation2 + $0x650] sm:$0xff] %v445_v10 }
  0xcd   :  { %448 = vst [vmem:[#allocation2 + $0x658] sm:$0xff] %v447_v11 }
  0xce   :  { %450 = vst [vmem:[#allocation2 + $0x660] sm:$0xff] %v449_v12 }
  0xcf   :  { %452 = vst [vmem:[#allocation2 + $0x668] sm:$0xff] %v451_v13 }
  0xd0   :  { %454 = vst [vmem:[#allocation2 + $0x670] sm:$0xff] %v453_v14 }
  0xd1   :  { %456 = vst [vmem:[#allocation2 + $0x678] sm:$0xff] %v455_v15 }
  0xd2   :  { %458 = vst [vmem:[#allocation2 + $0x680] sm:$0xff] %v457_v16 }
  0xd3   :  { %460 = vst [vmem:[#allocation2 + $0x688] sm:$0xff] %v459_v17 }
  0xd4   :  { %462 = vst [vmem:[#allocation2 + $0x690] sm:$0xff] %v461_v18 }
  0xd5   :  { %464 = vst [vmem:[#allocation2 + $0x698] sm:$0xff] %v463_v19 }
  0xd6   :  { %466 = vst [vmem:[#allocation2 + $0x6a0] sm:$0xff] %v465_v20 }
  0xd7   :  { %468 = vst [vmem:[#allocation2 + $0x6a8] sm:$0xff] %v467_v21 }
  0xd8   :  { %470 = vst [vmem:[#allocation2 + $0x6b0] sm:$0xff] %v469_v22 }
  0xd9   :  { %472 = vst [vmem:[#allocation2 + $0x6b8] sm:$0xff] %v471_v23 }
  0xda   :  { %474 = vst [vmem:[#allocation2 + $0x6c0] sm:$0xff] %v473_v24 }
  0xdb   :  { %476 = vst [vmem:[#allocation2 + $0x6c8] sm:$0xff] %v475_v25 }
  0xdc   :  { %478 = vst [vmem:[#allocation2 + $0x6d0] sm:$0xff] %v477_v26 }
  0xdd   :  { %480 = vst [vmem:[#allocation2 + $0x6d8] sm:$0xff] %v479_v27 }
  0xde   :  { %482 = vst [vmem:[#allocation2 + $0x6e0] sm:$0xff] %v481_v28 }
  0xdf   :  { %484 = vst [vmem:[#allocation2 + $0x6e8] sm:$0xff] %v483_v29 }
  0xe0   :  { %486 = vst [vmem:[#allocation2 + $0x6f0] sm:$0xff] %v485_v30 }
  0xe1   :  { %488 = vst [vmem:[#allocation2 + $0x6f8] sm:$0xff] %v487_v31 }
  0xe2   :  { %490 = vst [vmem:[#allocation2 + $0x700] sm:$0xff] %v489_v32 }
  0xe3   :  { %492 = vst [vmem:[#allocation2 + $0x708] sm:$0xff] %v491_v33 }
  0xe4   :  { %494 = vst [vmem:[#allocation2 + $0x710] sm:$0xff] %v493_v34 }
  0xe5   :  { %496 = vst [vmem:[#allocation2 + $0x718] sm:$0xff] %v495_v35 }
  0xe6   :  { %498 = vst [vmem:[#allocation2 + $0x720] sm:$0xff] %v497_v36 }
  0xe7   :  { %500 = vst [vmem:[#allocation2 + $0x728] sm:$0xff] %v499_v37 }
  0xe8   :  { %502 = vst [vmem:[#allocation2 + $0x730] sm:$0xff] %v501_v38 }
  0xe9   :  { %504 = vst [vmem:[#allocation2 + $0x738] sm:$0xff] %v503_v39 }
  0xea   :  { %506 = vst [vmem:[#allocation2 + $0x740] sm:$0xff] %v505_v40 }
  0xeb   :  { %508 = vst [vmem:[#allocation2 + $0x748] sm:$0xff] %v507_v41 }
  0xec   :  { %510 = vst [vmem:[#allocation2 + $0x750] sm:$0xff] %v509_v42 }
  0xed   :  { %512 = vst [vmem:[#allocation2 + $0x758] sm:$0xff] %v511_v43 }
  0xee   :  { %514 = vst [vmem:[#allocation2 + $0x760] sm:$0xff] %v513_v44 }
  0xef   :  { %516 = vst [vmem:[#allocation2 + $0x768] sm:$0xff] %v515_v45 }
  0xf0   :  { %518 = vst [vmem:[#allocation2 + $0x770] sm:$0xff] %v517_v46 }
  0xf1   :  { %520 = vst [vmem:[#allocation2 + $0x778] sm:$0xff] %v519_v47 }
  0xf2   :  { %522 = vst [vmem:[#allocation2 + $0x780] sm:$0xff] %v521_v48 }
  0xf3   :  { %524 = vst [vmem:[#allocation2 + $0x788] sm:$0xff] %v523_v49 }
  0xf4   :  { %526 = vst [vmem:[#allocation2 + $0x790] sm:$0xff] %v525_v50 }
  0xf5   :  { %528 = vst [vmem:[#allocation2 + $0x798] sm:$0xff] %v527_v51 }
  0xf6   :  { %530 = vst [vmem:[#allocation2 + $0x7a0] sm:$0xff] %v529_v52 }
  0xf7   :  { %532 = vst [vmem:[#allocation2 + $0x7a8] sm:$0xff] %v531_v53 }
  0xf8   :  { %534 = vst [vmem:[#allocation2 + $0x7b0] sm:$0xff] %v533_v54 }
  0xf9   :  { %536 = vst [vmem:[#allocation2 + $0x7b8] sm:$0xff] %v535_v55 }
  0xfa   :  { %538 = vst [vmem:[#allocation2 + $0x7c0] sm:$0xff] %v537_v56 }
  0xfb   :  { %540 = vst [vmem:[#allocation2 + $0x7c8] sm:$0xff] %v539_v57 }
  0xfc   :  { %542 = vst [vmem:[#allocation2 + $0x7d0] sm:$0xff] %v541_v58 }
  0xfd   :  { %544 = vst [vmem:[#allocation2 + $0x7d8] sm:$0xff] %v543_v59 }
  0xfe   :  { %546 = vst [vmem:[#allocation2 + $0x7e0] sm:$0xff] %v545_v60 }
  0xff   :  { %548 = vst [vmem:[#allocation2 + $0x7e8] sm:$0xff] %v547_v61 }
 0x100   :  { %550 = vst [vmem:[#allocation2 + $0x7f0] sm:$0xff] %v549_v62 }
 0x101   :  { %552 = vst [vmem:[#allocation2 + $0x7f8] sm:$0xff] %v551_v63 }
 0x102   :  { %558 = vsyncadd [#allocation3], 32768  ;;  %v6992_v0 = vld [vmem:[%s10480_s1 + $0x38] sm:$0xff]  ;;  %v6991_v1 = vld [vmem:[%s10480_s1 + $0x30] sm:$0xff]  ;;  %s7551_s12 = smov 64   ;;  %vm1176_vm0 = vcmask 523264  }
 0x103   :  { %879 = vmatpush.bf16.msra.mxu0 %v6992_v0  ;;  %7337 = vmatpush.bf16.msra.mxu2 %v6992_v0  ;;  %v6990_v2 = vld [vmem:[%s10480_s1 + $0x28] sm:$0xff]  ;;  %v6989_v3 = vld [vmem:[%s10480_s1 + $0x20] sm:$0xff]  ;;  %v6988_v4 = vld [vmem:[%s10480_s1 + $0x18] sm:$0xff] }
 0x104   :  { %7338 = vmatpush.bf16.msra.mxu3 %v6992_v0  ;;  %v6987_v5 = vld [vmem:[%s10480_s1 + $0x10] sm:$0xff]  ;;  %v6986_v6 = vld [vmem:[%s10480_s1 + $0x8] sm:$0xff]  ;;  %v6985_v7 = vld [vmem:[%s10480_s1] sm:$0xff] }
 0x105   :  { %v6953_v8 = vld [vmem:[%s10479_s0] sm:$0xff]  ;;  %v6982_v9 = vld [vmem:[%s10479_s0 + $0xe8] sm:$0xff]  ;;  %v6983_v11 = vld [vmem:[%s10479_s0 + $0xf0] sm:$0xff] }
 0x106   :  { %v6954_v10 = vld [vmem:[%s10479_s0 + $0x8] sm:$0xff]  ;;  %v6955_v12 = vld [vmem:[%s10479_s0 + $0x10] sm:$0xff]  ;;  %v6956_v13 = vld [vmem:[%s10479_s0 + $0x18] sm:$0xff] }
 0x107   :  { %880 = vmatpush.bf16.msra.mxu0 %v6991_v1  ;;  %7339 = vmatpush.bf16.msra.mxu2 %v6991_v1  ;;  %v6957_v14 = vld [vmem:[%s10479_s0 + $0x20] sm:$0xff]  ;;  %v6958_v15 = vld [vmem:[%s10479_s0 + $0x28] sm:$0xff]  ;;  %v6959_v16 = vld [vmem:[%s10479_s0 + $0x30] sm:$0xff] }
 0x108   :  { %7340 = vmatpush.bf16.msra.mxu3 %v6991_v1  ;;  %v6960_v17 = vld [vmem:[%s10479_s0 + $0x38] sm:$0xff]  ;;  %v6961_v18 = vld [vmem:[%s10479_s0 + $0x40] sm:$0xff]  ;;  %v6962_v23 = vld [vmem:[%s10479_s0 + $0x48] sm:$0xff] }
 0x109   :  { %v6963_v27 = vld [vmem:[%s10479_s0 + $0x50] sm:$0xff]  ;;  %v6964_v30 = vld [vmem:[%s10479_s0 + $0x58] sm:$0xff]  ;;  %v6965_v33 = vld [vmem:[%s10479_s0 + $0x60] sm:$0xff] }
 0x10a   :  { %v6966_v36 = vld [vmem:[%s10479_s0 + $0x68] sm:$0xff]  ;;  %v6967_v39 = vld [vmem:[%s10479_s0 + $0x70] sm:$0xff]  ;;  %v6968_v42 = vld [vmem:[%s10479_s0 + $0x78] sm:$0xff] }
 0x10b   :  { %881 = vmatpush.bf16.msra.mxu0 %v6990_v2  ;;  %7341 = vmatpush.bf16.msra.mxu2 %v6990_v2  ;;  %v6969_v45 = vld [vmem:[%s10479_s0 + $0x80] sm:$0xff]  ;;  %v6970_v48 = vld [vmem:[%s10479_s0 + $0x88] sm:$0xff]  ;;  %v6971_v51 = vld [vmem:[%s10479_s0 + $0x90] sm:$0xff] }
 0x10c   :  { %7342 = vmatpush.bf16.msra.mxu3 %v6990_v2  ;;  %v6972_v54 = vld [vmem:[%s10479_s0 + $0x98] sm:$0xff]  ;;  %v6973_v57 = vld [vmem:[%s10479_s0 + $0xa0] sm:$0xff]  ;;  %v6974_v60 = vld [vmem:[%s10479_s0 + $0xa8] sm:$0xff] }
 0x10d   :  { %v6975_v63 = vld [vmem:[%s10479_s0 + $0xb0] sm:$0xff]  ;;  %v6976_v2 = vld [vmem:[%s10479_s0 + $0xb8] sm:$0xff] }
 0x10f   :  { %882 = vmatpush.bf16.msra.mxu0 %v6989_v3  ;;  %7343 = vmatpush.bf16.msra.mxu2 %v6989_v3 }
 0x110   :  { %7344 = vmatpush.bf16.msra.mxu3 %v6989_v3 }
 0x113   :  { %883 = vmatpush.bf16.msra.mxu0 %v6988_v4  ;;  %7345 = vmatpush.bf16.msra.mxu2 %v6988_v4 }
 0x114   :  { %7346 = vmatpush.bf16.msra.mxu3 %v6988_v4 }
 0x117   :  { %884 = vmatpush.bf16.msra.mxu0 %v6987_v5  ;;  %7347 = vmatpush.bf16.msra.mxu2 %v6987_v5 }
 0x118   :  { %7348 = vmatpush.bf16.msra.mxu3 %v6987_v5  ;;  %v6977_v5 = vld [vmem:[%s10479_s0 + $0xc0] sm:$0xff] }
 0x11b   :  { %885 = vmatpush.bf16.msra.mxu0 %v6986_v6  ;;  %7349 = vmatpush.bf16.msra.mxu2 %v6986_v6 }
 0x11c   :  { %7350 = vmatpush.bf16.msra.mxu3 %v6986_v6 }
 0x11f   :  { %886 = vmatpush.bf16.msra.mxu0 %v6985_v7  ;;  %7351 = vmatpush.bf16.msra.mxu2 %v6985_v7 }
 0x120   :  { %7352 = vmatpush.bf16.msra.mxu3 %v6985_v7  ;;  %v6984_v7 = vld [vmem:[%s10479_s0 + $0xf8] sm:$0xff] }
 0x122   :  { %887 = vmatmul.bf16.vlgmr.msra.gmra.mxu0 %v6953_v8  ;;  %1032 = vmatmul.bf16.vlgmr.msra.gmra.mxu2 %v6982_v9  ;;  %v6978_v9 = vld [vmem:[%s10479_s0 + $0xc8] sm:$0xff] }
 0x123   :  { %1042 = vmatmul.bf16.vlgmr.msra.gmra.mxu3 %v6984_v7 }
 0x132   :  { %892 = vmatmul.bf16.gmra.mxu0 %v6954_v10  ;;  %1037 = vmatmul.bf16.gmra.mxu2 %v6983_v11 }
 0x142   :  { %897 = vmatmul.bf16.gmra.mxu0 %v6955_v12  ;;  %v6979_v12 = vld [vmem:[%s10479_s0 + $0xd0] sm:$0xff] }
 0x152   :  { %902 = vmatmul.bf16.gmra.mxu0 %v6956_v13 }
 0x162   :  { %907 = vmatmul.bf16.gmra.mxu0 %v6957_v14 }
 0x172   :  { %912 = vmatmul.bf16.gmra.mxu0 %v6958_v15  ;;  %v6980_v15 = vld [vmem:[%s10479_s0 + $0xd8] sm:$0xff] }
 0x182   :  { %917 = vmatmul.bf16.gmra.mxu0 %v6959_v16 }
 0x192   :  { %922 = vmatmul.bf16.gmra.mxu0 %v6960_v17 }
 0x19f   :  { %v8429_v19 = vpop.f32.mrf.mxu0 }
 0x1a2   :  { %927 = vmatmul.bf16.gmra.mxu0 %v6961_v18 }
 0x1a5   :  { %v8431_v20 = vpop.f32.mrf.mxu2 }
 0x1a7   :  { %v8433_v21 = vpop.f32.mrf.mxu0 }
 0x1ad   :  { %v8435_v22 = vpop.f32.mrf.mxu2 }
 0x1af   :  { %v8440_v24 = vpop.f32.mrf.mxu0 }
 0x1b2   :  { %932 = vmatmul.bf16.gmra.mxu0 %v6962_v23  ;;  %v6981_v23 = vld [vmem:[%s10479_s0 + $0xe0] sm:$0xff] }
 0x1b5   :  { %v1038_v25 = vpop.f32.mrf.mxu2 }
 0x1b6   :  { %1164 = vrot.lane.b32.xlu1 %v1038_v25, %s7551_s12 }
 0x1b7   :  { %v8443_v26 = vpop.f32.mrf.mxu0 }
 0x1bf   :  { %v898_v28 = vpop.f32.mrf.mxu0 }
 0x1c0   :  { %1052 = vrot.lane.b32.xlu0 %v898_v28, %s7551_s12 }
 0x1c2   :  { %937 = vmatmul.bf16.gmra.mxu0 %v6963_v27 }
 0x1c7   :  { %v900_v29 = vpop.f32.mrf.mxu0 }
 0x1c8   :  { %1054 = vrot.lane.b32.xlu0 %v900_v29, %s7551_s12 }
 0x1cf   :  { %v903_v31 = vpop.f32.mrf.mxu0 }
 0x1d0   :  { %1056 = vrot.lane.b32.xlu1 %v903_v31, %s7551_s12 }
 0x1d2   :  { %942 = vmatmul.bf16.gmra.mxu0 %v6964_v30 }
 0x1d7   :  { %v905_v32 = vpop.f32.mrf.mxu0 }
 0x1d8   :  { %1058 = vrot.lane.b32.xlu1 %v905_v32, %s7551_s12 }
 0x1df   :  { %v8458_v34 = vpop.f32.mrf.mxu0 }
 0x1e2   :  { %947 = vmatmul.bf16.gmra.mxu0 %v6965_v33 }
 0x1e7   :  { %v8460_v35 = vpop.f32.mrf.mxu0 }
 0x1ef   :  { %v8465_v37 = vpop.f32.mrf.mxu0 }
 0x1f2   :  { %952 = vmatmul.bf16.gmra.mxu0 %v6966_v36 }
 0x1f7   :  { %v8467_v38 = vpop.f32.mrf.mxu0 }
 0x1ff   :  { %v918_v40 = vpop.f32.mrf.mxu0 }
 0x200   :  { %1068 = vrot.lane.b32.xlu2 %v918_v40, %s7551_s12 }
 0x202   :  { %957 = vmatmul.bf16.gmra.mxu0 %v6967_v39 }
 0x207   :  { %v920_v41 = vpop.f32.mrf.mxu0 }
 0x208   :  { %1070 = vrot.lane.b32.xlu2 %v920_v41, %s7551_s12 }
 0x20f   :  { %v923_v43 = vpop.f32.mrf.mxu0 }
 0x210   :  { %1072 = vrot.lane.b32.xlu0 %v923_v43, %s7551_s12 }
 0x212   :  { %962 = vmatmul.bf16.gmra.mxu0 %v6968_v42 }
 0x217   :  { %v925_v44 = vpop.f32.mrf.mxu0 }
 0x218   :  { %1074 = vrot.lane.b32.xlu1 %v925_v44, %s7551_s12 }
 0x21f   :  { %v8482_v46 = vpop.f32.mrf.mxu0 }
 0x222   :  { %967 = vmatmul.bf16.gmra.mxu0 %v6969_v45 }
 0x227   :  { %v8484_v47 = vpop.f32.mrf.mxu0 }
 0x228   :  { %v8567_v31 = vpop.permute.xlu1 %1164 }
 0x22f   :  { %v8489_v49 = vpop.f32.mrf.mxu0 }
 0x232   :  { %972 = vmatmul.bf16.gmra.mxu0 %v6970_v48  ;;  %v1053_v33 = vpop.permute.xlu0 %1052 }
 0x237   :  { %v8491_v50 = vpop.f32.mrf.mxu0 }
 0x23a   :  { %v1055_v41 = vpop.permute.xlu0 %1054 }
 0x23f   :  { %v938_v52 = vpop.f32.mrf.mxu0 }
 0x240   :  { %1084 = vrot.lane.b32.xlu2 %v938_v52, %s7551_s12 }
 0x242   :  { %977 = vmatmul.bf16.gmra.mxu0 %v6971_v51  ;;  %v1057_v39 = vpop.permute.xlu1 %1056 }
 0x247   :  { %v940_v53 = vpop.f32.mrf.mxu0 }
 0x248   :  { %1086 = vrot.lane.b32.xlu0 %v940_v53, %s7551_s12 }
 0x24a   :  { %v1059_v43 = vpop.permute.xlu1 %1058 }
 0x24f   :  { %v943_v55 = vpop.f32.mrf.mxu0 }
 0x250   :  { %1088 = vrot.lane.b32.xlu1 %v943_v55, %s7551_s12 }
 0x252   :  { %982 = vmatmul.bf16.gmra.mxu0 %v6972_v54 }
 0x257   :  { %v945_v56 = vpop.f32.mrf.mxu0 }
 0x258   :  { %1090 = vrot.lane.b32.xlu2 %v945_v56, %s7551_s12 }
 0x25a   :  { %v1069_v40 = vpop.permute.xlu2 %1068 }
 0x25f   :  { %v8506_v58 = vpop.f32.mrf.mxu0 }
 0x262   :  { %987 = vmatmul.bf16.gmra.mxu0 %v6973_v57  ;;  %v1071_v44 = vpop.permute.xlu2 %1070  ;;  %v8583_v57 = vsel %vm1176_vm0, %v8458_v34, %v1069_v40 }
 0x263   :  { %v8579_v55 = vsel %vm1176_vm0, %v8460_v35, %v1071_v44 }
 0x264   :  { %v1218_v35 = vadd.f32 %v8579_v55, %v8583_v57 }
 0x267   :  { %v8508_v59 = vpop.f32.mrf.mxu0 }
 0x26f   :  { %v8513_v61 = vpop.f32.mrf.mxu0 }
 0x272   :  { %992 = vmatmul.bf16.gmra.mxu0 %v6974_v60 }
 0x277   :  { %v8515_v62 = vpop.f32.mrf.mxu0 }
 0x27f   :  { %v958_v0 = vpop.f32.mrf.mxu0 }
 0x280   :  { %1100 = vrot.lane.b32.xlu0 %v958_v0, %s7551_s12 }
 0x282   :  { %997 = vmatmul.bf16.gmra.mxu0 %v6975_v63  ;;  %v1073_v45 = vpop.permute.xlu0 %1072 }
 0x283   :  { %v8587_v60 = vsel %vm1176_vm0, %v8465_v37, %v1073_v45  ;;  %v8660_v45 = vpop.f32.mrf.mxu3 }
 0x284   :  { %v1313_v44 = vmul.f32 %v8587_v60, %v8587_v60 }
 0x287   :  { %v960_v1 = vpop.f32.mrf.mxu0 }
 0x288   :  { %1102 = vrot.lane.b32.xlu1 %v960_v1, %s7551_s12 }
 0x28a   :  { %v1075_v51 = vpop.permute.xlu1 %1074 }
 0x28f   :  { %v963_v3 = vpop.f32.mrf.mxu0 }
 0x290   :  { %1104 = vrot.lane.b32.xlu2 %v963_v3, %s7551_s12 }
 0x292   :  { %1002 = vmatmul.bf16.gmra.mxu0 %v6976_v2  ;;  %v8599_v2 = vsel %vm1176_vm0, %v8467_v38, %v1075_v51 }
 0x293   :  { %10531 = vst [vmem:[#allocation9_spill] sm:$0xff] %v8599_v2 }
 0x297   :  { %v965_v4 = vpop.f32.mrf.mxu0 }
 0x298   :  { %1106 = vrot.lane.b32.xlu0 %v965_v4, %s7551_s12 }
 0x29a   :  { %v1085_v52 = vpop.permute.xlu2 %1084 }
 0x29b   :  { %v8603_v34 = vsel %vm1176_vm0, %v8482_v46, %v1085_v52 }
 0x29c   :  { %v1298_v46 = vmul.f32 %v8603_v34, %v8603_v34 }
 0x29f   :  { %v8530_v6 = vpop.f32.mrf.mxu0 }
 0x2a2   :  { %1007 = vmatmul.bf16.gmra.mxu0 %v6977_v5  ;;  %v8616_v5 = vsel %vm1176_vm0, %v8433_v21, %v1055_v41  ;;  %v1297_v41 = vmul.f32 %v8583_v57, %v8583_v57 }
 0x2a3   :  { %v1304_v40 = vmul.f32 %v8616_v5, %v8616_v5 }
 0x2a7   :  { %v8535_v8 = vpop.f32.mrf.mxu0 }
 0x2af   :  { %v8540_v10 = vpop.f32.mrf.mxu0 }
 0x2b2   :  { %1012 = vmatmul.bf16.gmra.mxu0 %v6978_v9  ;;  %v1091_v63 = vpop.permute.xlu2 %1090  ;;  %v7552_v9 = vmov 32.0  }
 0x2b3   :  { %7356 = vrcp.f32 %v7552_v9 }
 0x2b7   :  { %v8542_v11 = vpop.f32.mrf.mxu0 }
 0x2ba   :  { %v1087_v53 = vpop.permute.xlu0 %1086 }
 0x2bb   :  { %v8591_v0 = vsel %vm1176_vm0, %v8484_v47, %v1087_v53  ;;  %v1219_v47 = vadd.f32 %v1218_v35, %v8587_v60 }
 0x2bc   :  { %v1306_v3 = vmul.f32 %v8591_v0, %v8591_v0 }
 0x2bd   :  { %v1220_v38 = vadd.f32 %v1219_v47, %v8599_v2 }
 0x2be   :  { %v1346_v21 = vadd.f32 %v1306_v3, %v1298_v46 }
 0x2bf   :  { %v978_v13 = vpop.f32.mrf.mxu0 }
 0x2c0   :  { %1116 = vrot.lane.b32.xlu1 %v978_v13, %s7551_s12  ;;  %v8629_v13 = vsel %vm1176_vm0, %v8440_v24, %v1057_v39 }
 0x2c1   :  { %v1312_v53 = vmul.f32 %v8629_v13, %v8629_v13 }
 0x2c2   :  { %1017 = vmatmul.bf16.gmra.mxu0 %v6979_v12  ;;  %v1089_v56 = vpop.permute.xlu1 %1088  ;;  %v8625_v12 = vsel %vm1176_vm0, %v8429_v19, %v1053_v33  ;;  %v8643_v19 = vsel %vm1176_vm0, %v8443_v26, %v1059_v43  ;;  %v8648_v33 = vpop.eup %7356 }
 0x2c3   :  { %v8607_v37 = vsel %vm1176_vm0, %v8489_v49, %v1089_v56  ;;  %10533 = vst [vmem:[#allocation11_spill] sm:$0xff] %v8643_v19  ;;  %v1282_v51 = vmul.f32 32.0, %v8648_v33  ;;  %v1296_v52 = vmul.f32 %v8625_v12, %v8625_v12  ;;  %vm1286_vm1 = vweird.f32 %v8648_v33 }
 0x2c4   :  { %v1314_v49 = vmul.f32 %v8607_v37, %v8607_v37 }
 0x2c5   :  { %v1328_v9 = vadd.f32 %v1304_v40, %v1296_v52 }
 0x2c7   :  { %v980_v14 = vpop.f32.mrf.mxu0 }
 0x2c8   :  { %1118 = vrot.lane.b32.xlu2 %v980_v14, %s7551_s12  ;;  %v1209_v14 = vadd.f32 %v8616_v5, %v8625_v12 }
 0x2ca   :  { %v1210_v24 = vadd.f32 %v1209_v14, %v8629_v13 }
 0x2cf   :  { %v983_v16 = vpop.f32.mrf.mxu0 }
 0x2d0   :  { %1120 = vrot.lane.b32.xlu0 %v983_v16, %s7551_s12 }
 0x2d2   :  { %1022 = vmatmul.bf16.gmra.mxu0 %v6980_v15  ;;  %v8635_v15 = vsel %vm1176_vm0, %v8491_v50, %v1091_v63  ;;  %v1211_v50 = vadd.f32 %v1210_v24, %v8643_v19 }
 0x2d3   :  { %10532 = vst [vmem:[#allocation10_spill] sm:$0xff] %v8635_v15 }
 0x2d4   :  { %v1212_v56 = vrot.slane %v1211_v50, 4 }
 0x2d7   :  { %v985_v17 = vpop.f32.mrf.mxu0 }
 0x2d8   :  { %1122 = vrot.lane.b32.xlu1 %v985_v17, %s7551_s12 }
 0x2df   :  { %v8554_v18 = vpop.f32.mrf.mxu0 }
 0x2e2   :  { %1027 = vmatmul.bf16.gmra.mxu0 %v6981_v23  ;;  %v1221_v23 = vrot.slane %v1220_v38, 4 }
 0x2e4   :  { %v1222_v39 = vadd.f32 %v1221_v23, %v1220_v38  ;;  %v1321_v38 = vmul.f32 %v8599_v2, %v8599_v2 }
 0x2e6   :  { %v1223_v3 = vrot.slane %v1222_v39, 2 }
 0x2e7   :  { %v8559_v25 = vpop.f32.mrf.mxu0 }
 0x2ea   :  { %v8637_v16 = vpop.permute.xlu2 %1104 }
 0x2ef   :  { %v8561_v27 = vpop.f32.mrf.mxu0 }
 0x2f2   :  { %v8593_v1 = vpop.permute.xlu0 %1100 }
 0x2f7   :  { %v8563_v28 = vpop.f32.mrf.mxu0 }
 0x2fa   :  { %v1103_v7 = vpop.permute.xlu1 %1102 }
 0x2ff   :  { %v998_v29 = vpop.f32.mrf.mxu0 }
 0x300   :  { %1132 = vrot.lane.b32.xlu2 %v998_v29, %s7551_s12  ;;  %v1347_v29 = vadd.f32 %v1346_v21, %v1314_v49  ;;  %v1320_v21 = vmul.f32 %v8643_v19, %v8643_v19 }
 0x307   :  { %v1000_v30 = vpop.f32.mrf.mxu0 }
 0x308   :  { %1134 = vrot.lane.b32.xlu0 %v1000_v30, %s7551_s12  ;;  %v1322_v30 = vmul.f32 %v8635_v15, %v8635_v15 }
 0x30a   :  { %v8639_v17 = vpop.permute.xlu0 %1106  ;;  %v1348_v26 = vadd.f32 %v1347_v29, %v1322_v30  ;;  %v1329_v30 = vadd.f32 %v1328_v9, %v1312_v53 }
 0x30c   :  { %v1349_v46 = vrot.slane %v1348_v26, 4  ;;  %v1330_v52 = vadd.f32 %v1329_v30, %v1320_v21 }
 0x30f   :  { %v1003_v32 = vpop.f32.mrf.mxu0 }
 0x310   :  { %1136 = vrot.lane.b32.xlu1 %v1003_v32, %s7551_s12 }
 0x317   :  { %v1005_v36 = vpop.f32.mrf.mxu0 }
 0x318   :  { %1138 = vrot.lane.b32.xlu2 %v1005_v36, %s7551_s12  ;;  %v1305_v36 = vmul.f32 %v8579_v55, %v8579_v55 }
 0x31a   :  { %v1337_v63 = vadd.f32 %v1305_v36, %v1297_v41  ;;  %v1283_v36 = vsub.f32 1.0, %v1282_v51  ;;  %v8688_v41 = vsel %vm1176_vm0, %v8508_v59, %v1103_v7 }
 0x31c   :  { %v1338_v14 = vadd.f32 %v1337_v63, %v1313_v44  ;;  %v1045_v63 = vpop.f32.mrf.mxu3 }
 0x31e   :  { %v1339_v40 = vadd.f32 %v1338_v14, %v1321_v38  ;;  %v8715_v38 = vsel %vm1176_vm0, %v8515_v62, %v8639_v17 }
 0x31f   :  { %v8571_v42 = vpop.f32.mrf.mxu0  ;;  %10537 = vst [vmem:[#allocation15_spill] sm:$0xff] %v8715_v38 }
 0x322   :  { %v1119_v35 = vpop.permute.xlu2 %1118 }
 0x323   :  { %v8677_v23 = vsel %vm1176_vm0, %v8535_v8, %v1119_v35  ;;  %v1224_v8 = vadd.f32 %v1223_v3, %v1222_v39  ;;  %v1284_v39 = vmul.f32 %v8648_v33, %v1283_v36  ;;  %v8710_v3 = vsel %vm1176_vm0, %v8513_v61, %v8637_v16 }
 0x324   :  { %10536 = vst [vmem:[#allocation14_spill] sm:$0xff] %v8710_v3  ;;  %v1307_v61 = vmul.f32 %v8688_v41, %v8688_v41 }
 0x325   :  { %v1225_v35 = vrot.slane %v1224_v8, 1  ;;  %v1285_v21 = vadd.f32 %v8648_v33, %v1284_v39 }
 0x327   :  { %v8573_v48 = vpop.f32.mrf.mxu0  ;;  %v1226_v16 = vadd.f32 %v1225_v35, %v1224_v8  ;;  %v8735_v8 = vsel %vm1286_vm1, %v8648_v33, %v1285_v21  ;;  %v1323_v33 = vmul.f32 %v8715_v38, %v8715_v38 }
 0x328   :  { %10538 = vst [vmem:[#allocation16_spill] sm:$0xff] %v8735_v8 }
 0x32f   :  { %v8575_v54 = vpop.f32.mrf.mxu0 }
 0x332   :  { %v1117_v43 = vpop.permute.xlu1 %1116 }
 0x333   :  { %v8671_v49 = vsel %vm1176_vm0, %v8530_v6, %v1117_v43  ;;  %v1350_v43 = vadd.f32 %v1349_v46, %v1348_v26  ;;  %v1340_v26 = vrot.slane %v1339_v40, 4 }
 0x334   :  { %v1245_v6 = vadd.f32 %v8677_v23, %v8671_v49  ;;  %v1300_v17 = vmul.f32 %v8671_v49, %v8671_v49 }
 0x337   :  { %v8612_v4 = vpop.f32.mrf.mxu0 }
 0x33f   :  { %v1018_v32 = vpop.f32.mrf.mxu0 }
 0x340   :  { %1148 = vrot.lane.b32.xlu0 %v1018_v32, %s7551_s12  ;;  %v1213_v32 = vadd.f32 %v1212_v56, %v1211_v50  ;;  %v8694_v50 = vsel %vm1176_vm0, %v8506_v58, %v8593_v1  ;;  %v1227_v56 = vadd.f32 %v8591_v0, %v8603_v34  ;;  %v1351_v58 = vrot.slane %v1350_v43, 2 }
 0x341   :  { %v1236_v59 = vadd.f32 %v8688_v41, %v8694_v50 }
 0x342   :  { %v1121_v47 = vpop.permute.xlu0 %1120  ;;  %v1214_v51 = vrot.slane %v1213_v32, 2  ;;  %v1352_v30 = vadd.f32 %v1351_v58, %v1350_v43  ;;  %v1315_v58 = vmul.f32 %v8710_v3, %v8710_v3 }
 0x343   :  { %v8681_v29 = vsel %vm1176_vm0, %v8540_v10, %v1121_v47  ;;  %v1331_v47 = vrot.slane %v1330_v52, 4  ;;  %v1237_v9 = vadd.f32 %v1236_v59, %v8710_v3  ;;  %v8738_v59 = vmul.f32 %v8735_v8, %v1226_v16 }
 0x344   :  { %10534 = vst [vmem:[#allocation12_spill] sm:$0xff] %v8681_v29  ;;  %v1246_v44 = vadd.f32 %v1245_v6, %v8681_v29  ;;  %v1215_v14 = vadd.f32 %v1214_v51, %v1213_v32  ;;  %v1308_v32 = vmul.f32 %v8677_v23, %v8677_v23 }
 0x345   :  { %v1238_v62 = vadd.f32 %v1237_v9, %v8715_v38  ;;  %v1332_v36 = vadd.f32 %v1331_v47, %v1330_v52  ;;  %v1353_v52 = vrot.slane %v1352_v30, 1 }
 0x346   :  { %v1216_v43 = vrot.slane %v1215_v14, 1 }
 0x347   :  { %v1020_v24 = vpop.f32.mrf.mxu0  ;;  %v1239_v39 = vrot.slane %v1238_v62, 4 }
 0x348   :  { %1150 = vrot.lane.b32.xlu1 %v1020_v24, %s7551_s12  ;;  %v1341_v24 = vadd.f32 %v1340_v26, %v1339_v40  ;;  %v1316_v40 = vmul.f32 %v8681_v29, %v8681_v29  ;;  %v1364_v26 = vadd.f32 %v1308_v32, %v1300_v17  ;;  %v1217_v21 = vadd.f32 %v1216_v43, %v1215_v14 }
 0x349   :  { %v1240_v16 = vadd.f32 %v1239_v39, %v1238_v62 }
 0x34a   :  { %v1123_v10 = vpop.permute.xlu1 %1122  ;;  %v8751_v2 = vmul.f32 %v8735_v8, %v1217_v21 }
 0x34b   :  { %v8698_v53 = vsel %vm1176_vm0, %v8542_v11, %v1123_v10  ;;  %v1228_v11 = vadd.f32 %v1227_v56, %v8607_v37  ;;  %v1299_v10 = vmul.f32 %v8694_v50, %v8694_v50 }
 0x34c   :  { %10535 = vst [vmem:[#allocation13_spill] sm:$0xff] %v8698_v53  ;;  %v1247_v7 = vadd.f32 %v1246_v44, %v8698_v53 }
 0x34d   :  { %v1229_v44 = vadd.f32 %v1228_v11, %v8635_v15  ;;  %v1355_v51 = vadd.f32 %v1307_v61, %v1299_v10  ;;  %v1333_v11 = vrot.slane %v1332_v36, 2  ;;  %v1354_v10 = vadd.f32 %v1353_v52, %v1352_v30 }
 0x34e   :  { %v1248_v1 = vrot.slane %v1247_v7, 4 }
 0x34f   :  { %v1023_v46 = vpop.f32.mrf.mxu0  ;;  %v1230_v35 = vrot.slane %v1229_v44, 4  ;;  %v1356_v9 = vadd.f32 %v1355_v51, %v1315_v58  ;;  %v1334_v15 = vadd.f32 %v1333_v11, %v1332_v36 }
 0x350   :  { %1170 = vrot.lane.b32.xlu1 %v1045_v63, %s7551_s12  ;;  %1152 = vrot.lane.b32.xlu2 %v1023_v46, %s7551_s12  ;;  %v1249_v6 = vadd.f32 %v1248_v1, %v1247_v7  ;;  %v1342_v7 = vrot.slane %v1341_v24, 2  ;;  %v1324_v63 = vmul.f32 %v8698_v53, %v8698_v53  ;;  %v1040_v1 = vpop.f32.mrf.mxu2  ;;  %v1365_v46 = vadd.f32 %v1364_v26, %v1316_v40 }
 0x351   :  { %v1231_v53 = vadd.f32 %v1230_v35, %v1229_v44  ;;  %v1357_v38 = vadd.f32 %v1356_v9, %v1323_v33  ;;  %v1241_v26 = vrot.slane %v1240_v16, 2  ;;  %v1335_v14 = vrot.slane %v1334_v15, 1 }
 0x352   :  { %v1250_v56 = vrot.slane %v1249_v6, 2  ;;  %v1343_v61 = vadd.f32 %v1342_v7, %v1341_v24  ;;  %v1366_v17 = vadd.f32 %v1365_v46, %v1324_v63 }
 0x353   :  { %v1358_v58 = vrot.slane %v1357_v38, 4  ;;  %v1232_v24 = vrot.slane %v1231_v53, 2  ;;  %v1242_v36 = vadd.f32 %v1241_v26, %v1240_v16  ;;  %v1336_v43 = vadd.f32 %v1335_v14, %v1334_v15 }
 0x354   :  { %v1251_v32 = vadd.f32 %v1250_v56, %v1249_v6  ;;  %v1344_v40 = vrot.slane %v1343_v61, 1  ;;  %v1367_v19 = vrot.slane %v1366_v17, 4 }
 0x355   :  { %v1359_v44 = vadd.f32 %v1358_v58, %v1357_v38  ;;  %v1233_v52 = vadd.f32 %v1232_v24, %v1231_v53  ;;  %v1243_v56 = vrot.slane %v1242_v36, 1  ;;  %v8769_v35 = vmul.f32 %v1336_v43, %v8735_v8 }
 0x356   :  { %v1252_v51 = vrot.slane %v1251_v32, 1  ;;  %v1368_v30 = vadd.f32 %v1367_v19, %v1366_v17  ;;  %v1345_v6 = vadd.f32 %v1344_v40, %v1343_v61 }
 0x357   :  { %v1025_v47 = vpop.f32.mrf.mxu0  ;;  %v1234_v33 = vrot.slane %v1233_v52, 1  ;;  %v1244_v15 = vadd.f32 %v1243_v56, %v1242_v36 }
 0x358   :  { %1416 = vrot.lane.b32.xlu1 %v8738_v59, %s7551_s12  ;;  %1166 = vrot.lane.b32.xlu2 %v1040_v1, %s7551_s12  ;;  %v8754_v1 = vmul.f32 %v1354_v10, %v8735_v8  ;;  %v1253_v62 = vadd.f32 %v1252_v51, %v1251_v32  ;;  %v8766_v39 = vmul.f32 %v1345_v6, %v8735_v8  ;;  %v1369_v63 = vrot.slane %v1368_v30, 2 }
 0x359   :  { %1154 = vrot.lane.b32.xlu0 %v1025_v47, %s7551_s12  ;;  %v1235_v53 = vadd.f32 %v1234_v33, %v1233_v52  ;;  %v8778_v47 = vmul.f32 %v8735_v8, %v1244_v15 }
 0x35a   :  { %v8763_v7 = vmul.f32 %v8735_v8, %v1253_v62  ;;  %v1370_v19 = vadd.f32 %v1369_v63, %v1368_v30  ;;  %v1133_v10 = vpop.permute.xlu2 %1132 }
 0x35b   :  { %v8781_v46 = vmul.f32 %v8735_v8, %v1235_v53  ;;  %v8803_v26 = vsel %vm1176_vm0, %v8554_v18, %v1133_v10 }
 0x35c   :  { %v1371_v11 = vrot.slane %v1370_v19, 1  ;;  %v1301_v14 = vmul.f32 %v8803_v26, %v8803_v26 }
 0x35e   :  { %v1372_v21 = vadd.f32 %v1371_v11, %v1370_v19 }
 0x360   :  { %1471 = vrot.lane.b32.xlu1 %v8754_v1, %s7551_s12  ;;  %1410 = vrot.lane.b32.xlu2 %v8751_v2, %s7551_s12  ;;  %v8788_v16 = vmul.f32 %v1372_v21, %v8735_v8 }
 0x361   :  { %1168 = vrot.lane.b32.xlu0 %v8660_v45, %s7551_s12  ;;  %v1360_v45 = vrot.slane %v1359_v44, 2 }
 0x363   :  { %v1361_v38 = vadd.f32 %v1360_v45, %v1359_v44 }
 0x365   :  { %v1362_v9 = vrot.slane %v1361_v38, 1 }
 0x367   :  { %v1363_v61 = vadd.f32 %v1362_v9, %v1361_v38 }
 0x368   :  { %1434 = vrot.lane.b32.xlu1 %v8763_v7, %s7551_s12  ;;  %1465 = vrot.lane.b32.xlu2 %v8766_v39, %s7551_s12 }
 0x369   :  { %1459 = vrot.lane.b32.xlu0 %v8769_v35, %s7551_s12  ;;  %v8791_v17 = vmul.f32 %v1363_v61, %v8735_v8 }
 0x370   :  { %1428 = vrot.lane.b32.xlu2 %v8778_v47, %s7551_s12 }
 0x371   :  { %1422 = vrot.lane.b32.xlu0 %v8781_v46, %s7551_s12 }
 0x372   :  { %v1139_v51 = vpop.permute.xlu2 %1138 }
 0x373   :  { %v8813_v62 = vsel %vm1176_vm0, %v8563_v28, %v1139_v51 }
 0x374   :  { %10539 = vst [vmem:[#allocation17_spill] sm:$0xff] %v8813_v62  ;;  %v1325_v44 = vmul.f32 %v8813_v62, %v8813_v62 }
 0x378   :  { %1483 = vrot.lane.b32.xlu2 %v8788_v16, %s7551_s12 }
 0x379   :  { %1477 = vrot.lane.b32.xlu0 %v8791_v17, %s7551_s12 }
 0x37a   :  { %v1135_v32 = vpop.permute.xlu0 %1134 }
 0x37b   :  { %v8799_v40 = vsel %vm1176_vm0, %v8559_v25, %v1135_v32 }
 0x37c   :  { %v1309_v58 = vmul.f32 %v8799_v40, %v8799_v40  ;;  %v1254_v24 = vadd.f32 %v8799_v40, %v8803_v26 }
 0x37e   :  { %v1373_v18 = vadd.f32 %v1309_v58, %v1301_v14  ;;  %v1028_v14 = vpop.f32.mrf.mxu0 }
 0x382   :  { %v1137_v30 = vpop.permute.xlu1 %1136 }
 0x383   :  { %v8817_v25 = vsel %vm1176_vm0, %v8561_v27, %v1137_v30 }
 0x384   :  { %10540 = vst [vmem:[#allocation18_spill] sm:$0xff] %v8817_v25  ;;  %v1255_v6 = vadd.f32 %v1254_v24, %v8817_v25  ;;  %v1317_v36 = vmul.f32 %v8817_v25, %v8817_v25 }
 0x386   :  { %v1256_v43 = vadd.f32 %v1255_v6, %v8813_v62  ;;  %v1374_v52 = vadd.f32 %v1373_v18, %v1317_v36 }
 0x388   :  { %v1257_v56 = vrot.slane %v1256_v43, 4  ;;  %v1375_v63 = vadd.f32 %v1374_v52, %v1325_v44  ;;  %v1030_v52 = vpop.f32.mrf.mxu0 }
 0x38a   :  { %v1258_v28 = vadd.f32 %v1257_v56, %v1256_v43  ;;  %v1376_v33 = vrot.slane %v1375_v63, 4 }
 0x38c   :  { %v1259_v45 = vrot.slane %v1258_v28, 2  ;;  %v1377_v15 = vadd.f32 %v1376_v33, %v1375_v63 }
 0x38e   :  { %v1260_v27 = vadd.f32 %v1259_v45, %v1258_v28  ;;  %v1378_v19 = vrot.slane %v1377_v15, 2 }
 0x390   :  { %v1261_v53 = vrot.slane %v1260_v27, 1  ;;  %v1379_v38 = vadd.f32 %v1378_v19, %v1377_v15 }
 0x392   :  { %v1262_v11 = vadd.f32 %v1261_v53, %v1260_v27  ;;  %v1380_v9 = vrot.slane %v1379_v38, 1  ;;  %v8868_v27 = vsel %vm1176_vm0, %v1028_v14, %v8567_v31 }
 0x394   :  { %v8826_v21 = vmul.f32 %v8735_v8, %v1262_v11  ;;  %v1381_v61 = vadd.f32 %v1380_v9, %v1379_v38 }
 0x396   :  { %1440 = vrot.lane.b32.xlu0 %v8826_v21, %s7551_s12  ;;  %v8831_v10 = vmul.f32 %v1381_v61, %v8735_v8  ;;  %v1303_v61 = vmul.f32 %v8868_v27, %v8868_v27 }
 0x398   :  { %1489 = vrot.lane.b32.xlu1 %v8831_v10, %s7551_s12 }
 0x3aa   :  { %v1153_v51 = vpop.permute.xlu2 %1152 }
 0x3ab   :  { %v8851_v44 = vsel %vm1176_vm0, %v8575_v54, %v1153_v51 }
 0x3ac   :  { %10541 = vst [vmem:[#allocation19_spill] sm:$0xff] %v8851_v44 }
 0x3b2   :  { %v1149_v58 = vpop.permute.xlu0 %1148 }
 0x3b3   :  { %v8841_v30 = vsel %vm1176_vm0, %v8571_v42, %v1149_v58  ;;  %v1318_v42 = vmul.f32 %v8851_v44, %v8851_v44 }
 0x3b4   :  { %v1302_v6 = vmul.f32 %v8841_v30, %v8841_v30 }
 0x3ba   :  { %v1151_v32 = vpop.permute.xlu1 %1150 }
 0x3bb   :  { %v8837_v24 = vsel %vm1176_vm0, %v8573_v48, %v1151_v32  ;;  %v1167_v48 = vpop.permute.xlu2 %1166 }
 0x3bc   :  { %v1310_v18 = vmul.f32 %v8837_v24, %v8837_v24  ;;  %v1263_v36 = vadd.f32 %v8837_v24, %v8841_v30  ;;  %v8861_v33 = vsel %vm1176_vm0, %v1030_v52, %v1167_v48 }
 0x3bd   :  { %v1311_v38 = vmul.f32 %v8861_v33, %v8861_v33  ;;  %v1272_v32 = vadd.f32 %v8861_v33, %v8868_v27 }
 0x3be   :  { %v1382_v43 = vadd.f32 %v1310_v18, %v1302_v6  ;;  %v1264_v56 = vadd.f32 %v1263_v36, %v8851_v44 }
 0x3bf   :  { %v1391_v18 = vadd.f32 %v1311_v38, %v1303_v61 }
 0x3c0   :  { %v1383_v45 = vadd.f32 %v1382_v43, %v1318_v42 }
 0x3cb   :  { %v1155_v63 = vpop.permute.xlu0 %1154 }
 0x3cc   :  { %v8858_v28 = vsel %vm1176_vm0, %v8612_v4, %v1155_v63  ;;  %v1171_v4 = vpop.permute.xlu1 %1170 }
 0x3cd   :  { %10542 = vst [vmem:[#allocation20_spill] sm:$0xff] %v8858_v28  ;;  %v1265_v54 = vadd.f32 %v1264_v56, %v8858_v28  ;;  %v1326_v15 = vmul.f32 %v8858_v28, %v8858_v28  ;;  %v8878_v51 = vsel %vm1176_vm0, %v8435_v22, %v1171_v4 }
 0x3ce   :  { %10543 = vst [vmem:[#allocation21_spill] sm:$0xff] %v8878_v51  ;;  %v1327_v42 = vmul.f32 %v8878_v51, %v8878_v51 }
 0x3cf   :  { %v1266_v19 = vrot.slane %v1265_v54, 4  ;;  %v1384_v53 = vadd.f32 %v1383_v45, %v1326_v15 }
 0x3d1   :  { %v1267_v11 = vadd.f32 %v1266_v19, %v1265_v54  ;;  %v1385_v9 = vrot.slane %v1384_v53, 4 }
 0x3d3   :  { %v1268_v31 = vrot.slane %v1267_v11, 2  ;;  %v1386_v58 = vadd.f32 %v1385_v9, %v1384_v53  ;;  %v1169_v14 = vpop.permute.xlu0 %1168 }
 0x3d4   :  { %v8882_v6 = vsel %vm1176_vm0, %v8431_v20, %v1169_v14 }
 0x3d5   :  { %10544 = vst [vmem:[#allocation22_spill] sm:$0xff] %v8882_v6  ;;  %v1273_v36 = vadd.f32 %v1272_v32, %v8882_v6  ;;  %v1319_v43 = vmul.f32 %v8882_v6, %v8882_v6  ;;  %v1269_v48 = vadd.f32 %v1268_v31, %v1267_v11  ;;  %v1387_v52 = vrot.slane %v1386_v58, 2 }
 0x3d7   :  { %v1274_v22 = vadd.f32 %v1273_v36, %v8878_v51  ;;  %v1392_v56 = vadd.f32 %v1391_v18, %v1319_v43  ;;  %v1270_v63 = vrot.slane %v1269_v48, 1  ;;  %v1388_v45 = vadd.f32 %v1387_v52, %v1386_v58 }
 0x3d9   :  { %v1275_v54 = vrot.slane %v1274_v22, 4  ;;  %v1393_v15 = vadd.f32 %v1392_v56, %v1327_v42  ;;  %v1271_v19 = vadd.f32 %v1270_v63, %v1269_v48  ;;  %v1389_v20 = vrot.slane %v1388_v45, 1 }
 0x3db   :  { %v1276_v53 = vadd.f32 %v1275_v54, %v1274_v22  ;;  %v1394_v38 = vrot.slane %v1393_v15, 4  ;;  %v1294_v4 = vmul.f32 %v8735_v8, %v1271_v19  ;;  %v1390_v9 = vadd.f32 %v1389_v20, %v1388_v45  ;;  %v1411_v22 = vpop.permute.xlu2 %1410  ;;  %v1460_v56 = vpop.permute.xlu0 %1459 }
 0x3dc   :  { %v1462_v63 = vadd.f32 %v1460_v56, %v8769_v35  ;;  %v1413_v45 = vadd.f32 %v1411_v22, %v8751_v2 }
 0x3dd   :  { %1446 = vrot.lane.b32.xlu2 %v1294_v4, %s7551_s12  ;;  %v1406_v11 = vmul.f32 %v1390_v9, %v8735_v8  ;;  %v1277_v61 = vrot.slane %v1276_v53, 2  ;;  %v1395_v32 = vadd.f32 %v1394_v38, %v1393_v15  ;;  %v1417_v15 = vpop.permute.xlu1 %1416 }
 0x3de   :  { %v1463_v54 = vadd.f32 %v1462_v63, %v8766_v39  ;;  %v1414_v20 = vadd.f32 %v1413_v45, %v8738_v59 }
 0x3df   :  { %1495 = vrot.lane.b32.xlu0 %v1406_v11, %s7551_s12  ;;  %v1278_v31 = vadd.f32 %v1277_v61, %v1276_v53  ;;  %v1396_v14 = vrot.slane %v1395_v32, 2 }
 0x3e0   :  { %v1419_v9 = vadd.f32 %v1417_v15, %v1414_v20 }
 0x3e1   :  { %v1279_v58 = vrot.slane %v1278_v31, 1  ;;  %v1397_v18 = vadd.f32 %v1396_v14, %v1395_v32 }
 0x3e2   :  { %v1420_v32 = vadd.f32 %v1419_v9, %v8781_v46 }
 0x3e3   :  { %v1280_v36 = vadd.f32 %v1279_v58, %v1278_v31  ;;  %v1398_v43 = vrot.slane %v1397_v18, 1  ;;  %v1466_v19 = vpop.permute.xlu2 %1465  ;;  %v1423_v38 = vpop.permute.xlu0 %1422 }
 0x3e4   :  { %v1468_v53 = vadd.f32 %v1466_v19, %v1463_v54  ;;  %v1425_v14 = vadd.f32 %v1423_v38, %v1420_v32 }
 0x3e5   :  { %v1295_v48 = vmul.f32 %v8735_v8, %v1280_v36  ;;  %v1399_v52 = vadd.f32 %v1398_v43, %v1397_v18  ;;  %v1472_v31 = vpop.permute.xlu1 %1471 }
 0x3e6   :  { %v1469_v61 = vadd.f32 %v1468_v53, %v8754_v1  ;;  %v1426_v2 = vadd.f32 %v1425_v14, %v8778_v47 }
 0x3e7   :  { %1452 = vrot.lane.b32.xlu1 %v1295_v48, %s7551_s12  ;;  %v1407_v42 = vmul.f32 %v1399_v52, %v8735_v8 }
 0x3e8   :  { %v1474_v58 = vadd.f32 %v1472_v31, %v1469_v61 }
 0x3e9   :  { %1501 = vrot.lane.b32.xlu2 %v1407_v42, %s7551_s12 }
 0x3ea   :  { %v1475_v39 = vadd.f32 %v1474_v58, %v8791_v17 }
 0x3eb   :  { %v1429_v18 = vpop.permute.xlu2 %1428  ;;  %v1478_v35 = vpop.permute.xlu0 %1477 }
 0x3ec   :  { %v1480_v36 = vadd.f32 %v1478_v35, %v1475_v39  ;;  %v1431_v43 = vadd.f32 %v1429_v18, %v1426_v2 }
 0x3ed   :  { %v1435_v52 = vpop.permute.xlu1 %1434 }
 0x3ee   :  { %v1481_v59 = vadd.f32 %v1480_v36, %v8788_v16  ;;  %v1432_v22 = vadd.f32 %v1431_v43, %v8763_v7 }
 0x3f0   :  { %v1437_v63 = vadd.f32 %v1435_v52, %v1432_v22  ;;  %v7008_v52 = vld [vmem:[%s10481_s2 + $0x78] sm:$0xff] }
 0x3f1   :  { %2782 = vmatpush.bf16.msrb.mxu2 %v7008_v52 }
 0x3f2   :  { %v1438_v15 = vadd.f32 %v1437_v63, %v8826_v21 }
 0x3f3   :  { %v1484_v56 = vpop.permute.xlu2 %1483 }
 0x3f4   :  { %v1486_v1 = vadd.f32 %v1484_v56, %v1481_v59  ;;  %v7000_v56 = vld [vmem:[%s10481_s2 + $0x38] sm:$0xff] }
 0x3f5   :  { %2763 = vmatpush.bf16.msra.mxu1 %v7000_v56 }
 0x3f6   :  { %v1487_v54 = vadd.f32 %v1486_v1, %v8831_v10  ;;  %v7016_v1 = vld [vmem:[%s10481_s2 + $0xb8] sm:$0xff] }
 0x3f7   :  { %2801 = vmatpush.bf16.msrb.mxu3 %v7016_v1 }
 0x408   :  { %v1441_v46 = vpop.permute.xlu0 %1440 }
 0x409   :  { %v1443_v47 = vadd.f32 %v1441_v46, %v1438_v15  ;;  %v6999_v15 = vld [vmem:[%s10481_s2 + $0x30] sm:$0xff] }
 0x40a   :  { %v1490_v45 = vpop.permute.xlu1 %1489  ;;  %2764 = vmatpush.bf16.msra.mxu1 %v6999_v15 }
 0x40b   :  { %v1492_v19 = vadd.f32 %v1490_v45, %v1487_v54  ;;  %v1444_v38 = vadd.f32 %v1443_v47, %v1294_v4  ;;  %v7007_v54 = vld [vmem:[%s10481_s2 + $0x70] sm:$0xff] }
 0x40c   :  { %2783 = vmatpush.bf16.msrb.mxu2 %v7007_v54 }
 0x40d   :  { %v1493_v20 = vadd.f32 %v1492_v19, %v1406_v11 }
 0x437   :  { %v1447_v17 = vpop.permute.xlu2 %1446 }
 0x438   :  { %v1449_v61 = vadd.f32 %v1447_v17, %v1444_v38  ;;  %v7006_v17 = vld [vmem:[%s10481_s2 + $0x68] sm:$0xff] }
 0x439   :  { %2784 = vmatpush.bf16.msrb.mxu2 %v7006_v17 }
 0x43a   :  { %v1450_v32 = vadd.f32 %v1449_v61, %v1295_v48  ;;  %v7005_v61 = vld [vmem:[%s10481_s2 + $0x60] sm:$0xff] }
 0x43d   :  { %2785 = vmatpush.bf16.msrb.mxu2 %v7005_v61 }
 0x443   :  { %v1502_v7 = vpop.permute.xlu2 %1501 }
 0x451   :  { %v1496_v53 = vpop.permute.xlu0 %1495 }
 0x452   :  { %v1498_v9 = vadd.f32 %v1496_v53, %v1493_v20  ;;  %v7015_v20 = vld [vmem:[%s10481_s2 + $0xb0] sm:$0xff]  ;;  %v6998_v53 = vld [vmem:[%s10481_s2 + $0x28] sm:$0xff] }
 0x453   :  { %2802 = vmatpush.bf16.msrb.mxu3 %v7015_v20  ;;  %2765 = vmatpush.bf16.msra.mxu1 %v6998_v53 }
 0x454   :  { %v1499_v16 = vadd.f32 %v1498_v9, %v1407_v42 }
 0x456   :  { %v1504_v14 = vadd.f32 %v1502_v7, %v1499_v16  ;;  %v6997_v16 = vld [vmem:[%s10481_s2 + $0x20] sm:$0xff] }
 0x457   :  { %2766 = vmatpush.bf16.msra.mxu1 %v6997_v16 }
 0x458   :  { %v1505_v35 = vmul.f32 0.0625, %v1504_v14 }
 0x459   :  { %v1453_v31 = vpop.permute.xlu1 %1452 }
 0x45a   :  { %v1455_v58 = vadd.f32 %v1453_v31, %v1450_v32 }
 0x45c   :  { %v1456_v18 = vmul.f32 0.0625, %v1455_v58 }
 0x45e   :  { %v1506_v2 = vmul.f32 %v1456_v18, %v1456_v18  ;;  %1520 = vrot.lane.b32.xlu0 %v1456_v18, %s7551_s12 }
 0x460   :  { %v1507_v21 = vsub.f32 %v1505_v35, %v1506_v2 }
 0x462   :  { %v1508_v10 = vadd.f32 1e-05, %v1507_v21 }
 0x464   :  { %7358 = vrsqrt.f32 %v1508_v10  ;;  %vm1515_vm3 = vweird.f32 %v1508_v10 }
 0x46a   :  { %v7359_v11 = vpop.eup %7358 }
 0x46b   :  { %v1510_v39 = vmul.f32 %v7359_v11, %v1508_v10  ;;  %vm1516_vm2 = vweird.f32 %v7359_v11 }
 0x46c   :  { %vm1517_vm4 = vmor %vm1515_vm3, %vm1516_vm2 }
 0x46d   :  { %v1511_v36 = vmul.f32 %v7359_v11, %v1510_v39 }
 0x46f   :  { %v1512_v4 = vmul.f32 0.5, %v1511_v36 }
 0x471   :  { %v1513_v43 = vsub.f32 1.5, %v1512_v4  ;;  %v7012_v4 = vld [vmem:[%s10481_s2 + $0x98] sm:$0xff] }
 0x473   :  { %v1514_v42 = vmul.f32 %v7359_v11, %v1513_v43 }
 0x475   :  { %v1518_v48 = vsel %vm1517_vm4, %v7359_v11, %v1514_v42 }
 0x476   :  { %1525 = vrot.lane.b32.xlu1 %v1518_v48, %s7551_s12 }
 0x4d0   :  { %v1521_v59 = vpop.permute.xlu0 %1520 }
 0x4d1   :  { %v1523_v63 = vsel %vm1176_vm0, %v1456_v18, %v1521_v59 }
 0x4d2   :  { %v8923_v45 = vperm.slane %v1523_v63, 0 }
 0x4d4   :  { %v1534_v47 = vsub.f32 %v8671_v49, %v8923_v45  ;;  %v1535_v9 = vsub.f32 %v8803_v26, %v8923_v45  ;;  %v7014_v49 = vld [vmem:[%s10481_s2 + $0xa8] sm:$0xff]  ;;  %v1531_v32 = vsub.f32 %v8583_v57, %v8923_v45  ;;  %v1532_v7 = vsub.f32 %v8603_v34, %v8923_v45  ;;  %v7013_v57 = vld [vmem:[%s10481_s2 + $0xa0] sm:$0xff]  ;;  %v7004_v34 = vld [vmem:[%s10481_s2 + $0x58] sm:$0xff] }
 0x4d5   :  { %v1533_v14 = vsub.f32 %v8694_v50, %v8923_v45  ;;  %2803 = vmatpush.bf16.msrb.mxu3 %v7014_v49  ;;  %v1542_v18 = vsub.f32 %v8677_v23, %v8923_v45  ;;  %v6996_v50 = vld [vmem:[%s10481_s2 + $0x18] sm:$0xff]  ;;  %v1536_v2 = vsub.f32 %v8841_v30, %v8923_v45  ;;  %v1537_v10 = vsub.f32 %v8868_v27, %v8923_v45 }
 0x4d6   :  { %v1539_v39 = vsub.f32 %v8579_v55, %v8923_v45  ;;  %2786 = vmatpush.bf16.msrb.mxu2 %v7004_v34  ;;  %v1543_v27 = vsub.f32 %v8799_v40, %v8923_v45  ;;  %2767 = vmatpush.bf16.msra.mxu1 %v6996_v50  ;;  %v7003_v55 = vld [vmem:[%s10481_s2 + $0x50] sm:$0xff]  ;;  %v1540_v40 = vsub.f32 %v8591_v0, %v8923_v45  ;;  %v7002_v0 = vld [vmem:[%s10481_s2 + $0x48] sm:$0xff] }
 0x4d7   :  { %v1541_v1 = vsub.f32 %v8688_v41, %v8923_v45  ;;  %v6994_v41 = vld [vmem:[%s10481_s2 + $0x8] sm:$0xff]  ;;  %v1544_v53 = vsub.f32 %v8837_v24, %v8923_v45  ;;  %v1545_v61 = vsub.f32 %v8861_v33, %v8923_v45  ;;  %v7001_v24 = vld [vmem:[%s10481_s2 + $0x40] sm:$0xff] }
 0x4d8   :  { %v6993_v33 = vld [vmem:[%s10481_s2] sm:$0xff] }
 0x4d9   :  { %2804 = vmatpush.bf16.msrb.mxu3 %v7013_v57 }
 0x4da   :  { %2787 = vmatpush.bf16.msrb.mxu2 %v7003_v55 }
 0x4dd   :  { %2805 = vmatpush.bf16.msrb.mxu3 %v7012_v4 }
 0x4de   :  { %2788 = vmatpush.bf16.msrb.mxu2 %v7002_v0 }
 0x4e2   :  { %2789 = vmatpush.bf16.msrb.mxu2 %v7001_v24 }
 0x4e8   :  { %v1526_v22 = vpop.permute.xlu1 %1525 }
 0x4e9   :  { %v1528_v46 = vsel %vm1176_vm0, %v1518_v48, %v1526_v22  ;;  %v6995_v48 = vld [vmem:[%s10481_s2 + $0x10] sm:$0xff] }
 0x4ea   :  { %v8931_v19 = vperm.slane %v1528_v46, 0  ;;  %v7011_v46 = vld [vmem:[%s10481_s2 + $0x90] sm:$0xff]  ;;  %2768 = vmatpush.bf16.msra.mxu1 %v6995_v48 }
 0x4eb   :  { %2806 = vmatpush.bf16.msrb.mxu3 %v7011_v46 }
 0x4ec   :  { %v8945_v38 = vmul.f32 %v8931_v19, %v1534_v47  ;;  %v8961_v26 = vmul.f32 %v8931_v19, %v1535_v9  ;;  %v8969_v58 = vmul.f32 %v8931_v19, %v1531_v32  ;;  %v8977_v35 = vmul.f32 %v8931_v19, %v1532_v7  ;;  %v7010_v32 = vld [vmem:[%s10481_s2 + $0x88] sm:$0xff] }
 0x4ed   :  { %v8988_v21 = vmul.f32 %v8931_v19, %v1533_v14  ;;  %v8994_v11 = vmul.f32 %v8931_v19, %v1542_v18  ;;  %v8999_v36 = vmul.f32 %v8931_v19, %v1536_v2  ;;  %v9008_v43 = vmul.f32 %v8931_v19, %v1537_v10 }
 0x4ee   :  { %10545 = vst [vmem:[#allocation23_spill] sm:$0xff] %v8945_v38  ;;  %v5541_v31 = vmul.f32 -1.442695, %v8945_v38  ;;  %v5542_v23 = vmul.f32 -1.442695, %v8961_v26  ;;  %v9018_v52 = vmul.f32 %v8931_v19, %v1539_v39  ;;  %v9024_v22 = vmul.f32 %v8931_v19, %v1543_v27  ;;  %2769 = vmatpush.bf16.msra.mxu1 %v6994_v41  ;;  %v10556_v41 = vld [vmem:[#allocation9_spill] sm:$0xff] }
 0x4ef   :  { %10546 = vst [vmem:[#allocation24_spill] sm:$0xff] %v8961_v26  ;;  %v5538_v30 = vmul.f32 -1.442695, %v8969_v58  ;;  %v5539_v42 = vmul.f32 -1.442695, %v8977_v35  ;;  %v9037_v15 = vmul.f32 %v8931_v19, %v1540_v40  ;;  %v9044_v20 = vmul.f32 %v8931_v19, %v1541_v1  ;;  %2807 = vmatpush.bf16.msrb.mxu3 %v7010_v32  ;;  %v7039_v26 = vld [vmem:[%s10481_s2 + $0x170] sm:$0xff] }
 0x4f0   :  { %10547 = vst [vmem:[#allocation25_spill] sm:$0xff] %v8988_v21  ;;  %7360 = vpow2.f32 %v5541_v31  ;;  %v5540_v59 = vmul.f32 -1.442695, %v8988_v21  ;;  %v5549_v56 = vmul.f32 -1.442695, %v8994_v11  ;;  %v9061_v7 = vmul.f32 %v8931_v19, %v1544_v53 }
 0x4f1   :  { %10548 = vst [vmem:[#allocation26_spill] sm:$0xff] %v8994_v11  ;;  %7362 = vpow2.f32 %v5542_v23  ;;  %v5543_v63 = vmul.f32 -1.442695, %v8999_v36  ;;  %v5544_v47 = vmul.f32 -1.442695, %v9008_v43  ;;  %v9068_v57 = vmul.f32 %v8931_v19, %v1545_v61 }
 0x4f2   :  { %10549 = vst [vmem:[#allocation27_spill] sm:$0xff] %v8999_v36  ;;  %7364 = vpow2.f32 %v5538_v30  ;;  %v5546_v17 = vmul.f32 -1.442695, %v9018_v52  ;;  %v5550_v9 = vmul.f32 -1.442695, %v9024_v22  ;;  %v1530_v23 = vsub.f32 %v8625_v12, %v8923_v45  ;;  %v7009_v30 = vld [vmem:[%s10481_s2 + $0x80] sm:$0xff]  ;;  %2770 = vmatpush.bf16.msra.mxu1 %v6993_v33 }
 0x4f3   :  { %10550 = vst [vmem:[#allocation28_spill] sm:$0xff] %v9008_v43  ;;  %7366 = vpow2.f32 %v5539_v42  ;;  %v5547_v31 = vmul.f32 -1.442695, %v9037_v15  ;;  %v5548_v18 = vmul.f32 -1.442695, %v9044_v20  ;;  %v1538_v10 = vsub.f32 %v8616_v5, %v8923_v45  ;;  %2808 = vmatpush.bf16.msrb.mxu3 %v7009_v30 }
 0x4f4   :  { %10551 = vst [vmem:[#allocation29_spill] sm:$0xff] %v9024_v22  ;;  %7368 = vpow2.f32 %v5540_v59  ;;  %v5551_v5 = vmul.f32 -1.442695, %v9061_v7  ;;  %v5552_v59 = vmul.f32 -1.442695, %v9068_v57  ;;  %v9121_v30 = vmul.f32 %v8931_v19, %v1530_v23 }
 0x4f5   :  { %10552 = vst [vmem:[#allocation30_spill] sm:$0xff] %v9044_v20  ;;  %7370 = vpow2.f32 %v5549_v56 }
 0x4f6   :  { %v7361_v54 = vpop.eup %7360  ;;  %7372 = vpow2.f32 %v5543_v63  ;;  %10553 = vst [vmem:[#allocation31_spill] sm:$0xff] %v9061_v7 }
 0x4f7   :  { %v7363_v49 = vpop.eup %7362  ;;  %v9052_v16 = vadd.f32 1.0, %v7361_v54  ;;  %7374 = vpow2.f32 %v5544_v47  ;;  %10554 = vst [vmem:[#allocation32_spill] sm:$0xff] %v9068_v57  ;;  %v10555_v54 = vld [vmem:[#allocation11_spill] sm:$0xff] }
 0x4f8   :  { %v7365_v14 = vpop.eup %7364  ;;  %7376 = vpow2.f32 %v5546_v17  ;;  %v9071_v50 = vadd.f32 1.0, %v7363_v49  ;;  %v10558_v49 = vld [vmem:[#allocation10_spill] sm:$0xff]  ;;  %v7040_v57 = vld [vmem:[%s10481_s2 + $0x178] sm:$0xff] }
 0x4f9   :  { %v7367_v34 = vpop.eup %7366  ;;  %7378 = vpow2.f32 %v5550_v9  ;;  %v9097_v63 = vadd.f32 1.0, %v7365_v14  ;;  %2858 = vmatpush.bf16.msra.mxu3 %v7040_v57  ;;  %v7022_v57 = vld [vmem:[%s10481_s2 + $0xe8] sm:$0xff] }
 0x4fa   :  { %v7369_v2 = vpop.eup %7368  ;;  %7380 = vrcp.f32 %v9052_v16 }
 0x4fb   :  { %v7371_v4 = vpop.eup %7370  ;;  %7382 = vpow2.f32 %v5547_v31  ;;  %v9146_v48 = vadd.f32 1.0, %v7369_v2  ;;  %vm1743_vm5 = vweird.f32 %v9097_v63 }
 0x4fc   :  { %v7373_v42 = vpop.eup %7372  ;;  %7384 = vpow2.f32 %v5548_v18  ;;  %v9106_v53 = vadd.f32 1.0, %v7371_v4 }
 0x4fd   :  { %v7375_v40 = vpop.eup %7374  ;;  %7386 = vrcp.f32 %v9071_v50  ;;  %v9112_v31 = vadd.f32 1.0, %v7373_v42  ;;  %2859 = vmatpush.bf16.msra.mxu3 %v7039_v26 }
 0x4fe   :  { %v7377_v46 = vpop.eup %7376  ;;  %10557 = vst [vmem:[#allocation11_spill] sm:$0xff] %v9106_v53  ;;  %7388 = vpow2.f32 %v5551_v5  ;;  %v9118_v0 = vadd.f32 1.0, %v7375_v40  ;;  %v9129_v5 = vmul.f32 %v8931_v19, %v1538_v10  ;;  %v1794_v10 = vand.u32 2147483648, %v9052_v16 }
 0x4ff   :  { %v7379_v9 = vpop.eup %7378  ;;  %10560 = vst [vmem:[#allocation9_spill] sm:$0xff] %v9112_v31  ;;  %7390 = vpow2.f32 %v5552_v59  ;;  %v9125_v56 = vadd.f32 1.0, %v7377_v46  ;;  %v9140_v46 = vadd.f32 1.0, %v7367_v34  ;;  %v1809_v59 = vand.u32 2147483648, %v9071_v50 }
 0x500   :  { %v9114_v33 = vpop.eup %7380  ;;  %10562 = vst [vmem:[#allocation10_spill] sm:$0xff] %v9118_v0  ;;  %7392 = vrcp.f32 %v9097_v63  ;;  %v9135_v23 = vadd.f32 1.0, %v7379_v9  ;;  %v5537_v9 = vmul.f32 -1.442695, %v9121_v30  ;;  %v5545_v55 = vmul.f32 -1.442695, %v9129_v5 }
 0x501   :  { %v7383_v4 = vpop.eup %7382  ;;  %7394 = vrcp.f32 %v9106_v53  ;;  %v1784_v1 = vmul.f32 %v9114_v33, %v9052_v16  ;;  %v1824_v17 = vand.u32 2147483648, %v9112_v31  ;;  %v9165_v34 = vor.u32 1.1754944e-38, %v1794_v10 }
 0x502   :  { %v7385_v42 = vpop.eup %7384  ;;  %7396 = vrcp.f32 %v9112_v31  ;;  %v9151_v24 = vadd.f32 1.0, %v7383_v4  ;;  %v9173_v8 = vor.u32 1.1754944e-38, %v1809_v59  ;;  %v1914_v10 = vand.u32 2147483648, %v9106_v53 }
 0x503   :  { %v9138_v18 = vpop.eup %7386  ;;  %7398 = vrcp.f32 %v9118_v0  ;;  %v9156_v12 = vadd.f32 1.0, %v7385_v42  ;;  %v1785_v4 = vsub.f32 1.0, %v1784_v1  ;;  %v9185_v36 = vor.u32 1.1754944e-38, %v1824_v17  ;;  %v7024_v1 = vld [vmem:[%s10481_s2 + $0xf8] sm:$0xff] }
 0x504   :  { %v7389_v40 = vpop.eup %7388  ;;  %7400 = vrcp.f32 %v9125_v56  ;;  %v1799_v2 = vmul.f32 %v9138_v18, %v9071_v50  ;;  %10563 = vst [vmem:[#allocation33_spill] sm:$0xff] %v9173_v8  ;;  %2820 = vmatpush.bf16.msrb.mxu1 %v7024_v1  ;;  %v1747_v1 = vand.u32 2147483647, %v9097_v63  ;;  %v1869_v21 = vand.u32 2147483648, %v9125_v56 }
 0x505   :  { %v7391_v61 = vpop.eup %7390  ;;  %7402 = vrcp.f32 %v9135_v23  ;;  %v9170_v42 = vadd.f32 1.0, %v7389_v40  ;;  %10566 = vst [vmem:[#allocation36_spill] sm:$0xff] %v9185_v36  ;;  %v1786_v17 = vmul.f32 %v9114_v33, %v1785_v4  ;;  %v7031_v4 = vld [vmem:[%s10481_s2 + $0x130] sm:$0xff]  ;;  %vm1863_vm8 = vweird.f32 %v9125_v56 }
 0x506   :  { %v9162_v27 = vpop.eup %7392  ;;  %7404 = vrcp.f32 %v9140_v46  ;;  %v9178_v7 = vadd.f32 1.0, %v7391_v61  ;;  %v1800_v40 = vsub.f32 1.0, %v1799_v2  ;;  %v7032_v61 = vld [vmem:[%s10481_s2 + $0x138] sm:$0xff]  ;;  %vm9264_vm7 = vcmp.eq.f32.partialorder %v1747_v1, 8.507059e+37 }
 0x507   :  { %v9168_v39 = vpop.eup %7394  ;;  %7406 = vrcp.f32 %v9146_v48  ;;  %v1739_v11 = vmul.f32 %v9162_v27, %v9097_v63  ;;  %2839 = vmatpush.bf16.msra.mxu2 %v7032_v61  ;;  %v9228_v61 = vor.u32 1.1754944e-38, %v1914_v10  ;;  %vm1744_vm6 = vweird.f32 %v9162_v27 }
 0x508   :  { %v9176_v43 = vpop.eup %7396  ;;  %7408 = vrcp.f32 %v9151_v24  ;;  %v9203_v2 = vmul.f32 %v9168_v39, %v9106_v53  ;;  %v9237_v8 = vmul.f32 %v9138_v18, %v1800_v40  ;;  %v1749_v40 = vand.u32 2147483648, %v9097_v63  ;;  %vm1745_vm12 = vmor %vm1743_vm5, %vm1744_vm6 }
 0x509   :  { %10564 = vst [vmem:[#allocation34_spill] sm:$0xff] %v9176_v43  ;;  %v9183_v47 = vpop.eup %7398  ;;  %7410 = vrcp.f32 %v9156_v12  ;;  %v9222_v22 = vmul.f32 %v9176_v43, %v9112_v31  ;;  %v1740_v31 = vsub.f32 1.0, %v1739_v11  ;;  %vm1758_vm10 = vweird.f32 %v9140_v46 }
 0x50a   :  { %10565 = vst [vmem:[#allocation35_spill] sm:$0xff] %v9183_v47  ;;  %v9198_v51 = vpop.eup %7400  ;;  %7412 = vpow2.f32 %v5537_v9  ;;  %v7023_v9 = vld [vmem:[%s10481_s2 + $0xf0] sm:$0xff]  ;;  %v1750_v14 = vor.u32 1.1754944e-38, %v1749_v40  ;;  %vm1878_vm0 = vweird.f32 %v9151_v24 }
 0x50b   :  { %v9206_v36 = vpop.eup %7402  ;;  %7414 = vpow2.f32 %v5545_v55  ;;  %v9226_v55 = vmul.f32 %v9183_v47, %v9118_v0  ;;  %10568 = vst [vmem:[#allocation38_spill] sm:$0xff] %v9228_v61  ;;  %v1859_v0 = vmul.f32 %v9198_v51, %v9125_v56  ;;  %v9245_v47 = vadd.f32 %v9114_v33, %v1786_v17  ;;  %2840 = vmatpush.bf16.msra.mxu2 %v7031_v4  ;;  %v7030_v17 = vld [vmem:[%s10481_s2 + $0x128] sm:$0xff] }
 0x50c   :  { %v9218_v59 = vpop.eup %7404  ;;  %7416 = vrcp.f32 %v9170_v42  ;;  %v9250_v43 = vmul.f32 %v9206_v36, %v9135_v23  ;;  %v1741_v11 = vmul.f32 %v9162_v27, %v1740_v31  ;;  %2821 = vmatpush.bf16.msrb.mxu1 %v7023_v9  ;;  %v1867_v31 = vand.u32 2147483647, %v9125_v56  ;;  %v7038_v4 = vld [vmem:[%s10481_s2 + $0x168] sm:$0xff] }
 0x50d   :  { %10567 = vst [vmem:[#allocation37_spill] sm:$0xff] %v9226_v55  ;;  %v9234_v38 = vpop.eup %7406  ;;  %v1860_v61 = vsub.f32 1.0, %v1859_v0  ;;  %v1754_v0 = vmul.f32 %v9218_v59, %v9140_v46  ;;  %vm1864_vm9 = vweird.f32 %v9198_v51  ;;  %vm1759_vm11 = vweird.f32 %v9218_v59  ;;  %2860 = vmatpush.bf16.msra.mxu3 %v7038_v4 }
 0x50e   :  { %v9242_v10 = vpop.eup %7408  ;;  %v1742_v1 = vadd.f32 %v9162_v27, %v1741_v11  ;;  %vm9301_vm13 = vcmp.eq.f32.partialorder %v1867_v31, 8.507059e+37  ;;  %vm1865_vm14 = vmor %vm1863_vm8, %vm1864_vm9 }
 0x50f   :  { %v9253_v6 = vpop.eup %7410  ;;  %v1861_v62 = vmul.f32 %v9198_v51, %v1860_v61  ;;  %v1755_v29 = vsub.f32 1.0, %v1754_v0  ;;  %2841 = vmatpush.bf16.msra.mxu2 %v7030_v17  ;;  %v7021_v61 = vld [vmem:[%s10481_s2 + $0xe0] sm:$0xff]  ;;  %vm9340_vm2 = vmor %vm1758_vm10, %vm1759_vm11  ;;  %vm1879_vm4 = vweird.f32 %v9242_v10  ;;  %vm1788_vm10 = vweird.f32 %v9052_v16 }
 0x510   :  { %10569 = vst [vmem:[#allocation39_spill] sm:$0xff] %v9253_v6  ;;  %v7413_v28 = vpop.eup %7412  ;;  %2822 = vmatpush.bf16.msrb.mxu1 %v7022_v57  ;;  %v1870_v57 = vor.u32 1.1754944e-38, %v1869_v21  ;;  %v7037_v17 = vld [vmem:[%s10481_s2 + $0x160] sm:$0xff]  ;;  %v1746_v3 = vsel %vm1745_vm12, %v9162_v27, %v1742_v1  ;;  %vm1880_vm12 = vmor %vm1878_vm0, %vm1879_vm4  ;;  %vm1774_vm4 = vweird.f32 %v9234_v38 }
 0x511   :  { %v7415_v9 = vpop.eup %7414  ;;  %v9275_v44 = vadd.f32 1.0, %v7413_v28  ;;  %v7029_v28 = vld [vmem:[%s10481_s2 + $0x120] sm:$0xff]  ;;  %v1862_v53 = vadd.f32 %v9198_v51, %v1861_v62  ;;  %v1751_v21 = vsel %vm9264_vm7, %v1750_v14, %v1746_v3  ;;  %v1756_v4 = vmul.f32 %v9218_v59, %v1755_v29  ;;  %2861 = vmatpush.bf16.msra.mxu3 %v7037_v17 }
 0x512   :  { %v9280_v25 = vadd.f32 1.0, %v7415_v9  ;;  %v9283_v26 = vpop.eup %7416  ;;  %v2204_v27 = vmul.f32 %v1751_v21, %v8969_v58  ;;  %v1762_v62 = vand.u32 2147483647, %v9140_v46  ;;  %v1874_v29 = vmul.f32 %v9242_v10, %v9151_v24 }
 0x513   :  { %7418 = vrcp.f32 %v9275_v44  ;;  %v1734_v32 = vand.u32 2147483648, %v9275_v44  ;;  %v1732_v0 = vand.u32 2147483647, %v9275_v44  ;;  %v1866_v6 = vsel %vm1865_vm14, %v9198_v51, %v1862_v53  ;;  %2842 = vmatpush.bf16.msra.mxu2 %v7029_v28 }
 0x514   :  { %7420 = vrcp.f32 %v9280_v25  ;;  %v1854_v40 = vand.u32 2147483648, %v9280_v25  ;;  %v1852_v9 = vand.u32 2147483647, %v9280_v25  ;;  %2823 = vmatpush.bf16.msrb.mxu1 %v7021_v61  ;;  %vm1728_vm15 = vweird.f32 %v9275_v44 }
 0x515   :  { %v9312_v63 = vor.u32 1.1754944e-38, %v1734_v32  ;;  %v1764_v32 = vand.u32 2147483648, %v9140_v46  ;;  %v1871_v3 = vsel %vm9301_vm13, %v1870_v57, %v1866_v6  ;;  %v1757_v20 = vadd.f32 %v9218_v59, %v1756_v4 }
 0x516   :  { %v9314_v31 = vor.u32 1.1754944e-38, %v1854_v40  ;;  %vm1848_vm1 = vweird.f32 %v9280_v25  ;;  %v2212_v58 = vmul.f32 %v1871_v3, %v9018_v52  ;;  %vm1763_vm3 = vcmp.eq.f32.partialorder %v1762_v62, 8.507059e+37 }
 0x517   :  { %v1765_v6 = vor.u32 1.1754944e-38, %v1764_v32  ;;  %vm9346_vm6 = vcmp.eq.f32.partialorder %v1732_v0, 8.507059e+37  ;;  %v1761_v52 = vsel %vm9340_vm2, %v9218_v59, %v1757_v20  ;;  %v1875_v46 = vsub.f32 1.0, %v1874_v29 }
 0x518   :  { %vm1789_vm7 = vweird.f32 %v9114_v33  ;;  %vm9355_vm9 = vcmp.eq.f32.partialorder %v1852_v9, 8.507059e+37  ;;  %v2236_v40 = vpack.c.bf16 %v2212_v58, %v2204_v27  ;;  %v1882_v0 = vand.u32 2147483647, %v9151_v24 }
 0x519   :  { %v7419_v51 = vpop.eup %7418  ;;  %v1766_v11 = vsel %vm1763_vm3, %v1765_v6, %v1761_v52  ;;  %v1876_v17 = vmul.f32 %v9242_v10, %v1875_v46  ;;  %v1884_v21 = vand.u32 2147483648, %v9151_v24  ;;  %v10580_v9 = vsub.f32 %v8629_v13, %v8923_v45 }
 0x51a   :  { %v7421_v53 = vpop.eup %7420  ;;  %v1724_v14 = vmul.f32 %v7419_v51, %v9275_v44  ;;  %vm1729_vm5 = vweird.f32 %v7419_v51  ;;  %2790 = vmatmul.bf16.vlgmr.msrb.gmra.mxu2 %v2236_v40  ;;  %v2205_v4 = vmul.f32 %v1766_v11, %v8977_v35  ;;  %v10581_v27 = vsub.f32 %v10555_v54, %v8923_v45 }
 0x51b   :  { %v1844_v28 = vmul.f32 %v7421_v53, %v9280_v25  ;;  %vm1849_vm8 = vweird.f32 %v7421_v53  ;;  %v9368_v62 = vmul.f32 %v8931_v19, %v10580_v9  ;;  %v1877_v20 = vadd.f32 %v9242_v10, %v1876_v17  ;;  %vm1730_vm0 = vmor %vm1728_vm15, %vm1729_vm5 }
 0x51c   :  { %v1725_v57 = vsub.f32 1.0, %v1724_v14  ;;  %v9374_v32 = vmul.f32 %v8931_v19, %v10581_v27  ;;  %vm1883_vm11 = vcmp.eq.f32.partialorder %v1882_v0, 8.507059e+37  ;;  %v1885_v29 = vor.u32 1.1754944e-38, %v1884_v21  ;;  %vm1850_vm2 = vmor %vm1848_vm1, %vm1849_vm8 }
 0x51d   :  { %v1845_v59 = vsub.f32 1.0, %v1844_v28  ;;  %v5553_v13 = vmul.f32 -1.442695, %v9368_v62  ;;  %v10582_v54 = vsub.f32 %v8587_v60, %v8923_v45  ;;  %vm1803_vm13 = vweird.f32 %v9071_v50  ;;  %vm9439_vm15 = vmor %vm1788_vm10, %vm1789_vm7 }
 0x51e   :  { %v1726_v3 = vmul.f32 %v7419_v51, %v1725_v57  ;;  %v5561_v35 = vmul.f32 -1.442695, %v9374_v32  ;;  %v1881_v14 = vsel %vm1880_vm12, %v9242_v10, %v1877_v20  ;;  %v10583_v52 = vsub.f32 %v10556_v41, %v8923_v45 }
 0x51f   :  { %v1846_v58 = vmul.f32 %v7421_v53, %v1845_v59  ;;  %v9387_v56 = vmul.f32 %v8931_v19, %v10582_v54  ;;  %v10584_v46 = vsub.f32 %v8607_v37, %v8923_v45  ;;  %v10585_v60 = vand.u32 2147483647, %v9052_v16 }
 0x520   :  { %v1727_v6 = vadd.f32 %v7419_v51, %v1726_v3  ;;  %v9395_v24 = vmul.f32 %v8931_v19, %v10583_v52  ;;  %v1886_v10 = vsel %vm1883_vm11, %v1885_v29, %v1881_v14  ;;  %7422 = vpow2.f32 %v5553_v13  ;;  %v7028_v13 = vld [vmem:[%s10481_s2 + $0x118] sm:$0xff] }
 0x521   :  { %v9401_v28 = vmul.f32 %v8931_v19, %v10584_v46  ;;  %vm9405_vm14 = vcmp.eq.f32.partialorder %v10585_v60, 8.507059e+37  ;;  %v1847_v41 = vadd.f32 %v7421_v53, %v1846_v58  ;;  %v5554_v11 = vmul.f32 -1.442695, %v9387_v56  ;;  %2843 = vmatpush.bf16.msra.mxu2 %v7028_v13 }
 0x522   :  { %v1731_v57 = vsel %vm1730_vm0, %v7419_v51, %v1727_v6  ;;  %v2213_v37 = vmul.f32 %v1886_v10, %v9037_v15  ;;  %7424 = vpow2.f32 %v5561_v35  ;;  %v5562_v17 = vmul.f32 -1.442695, %v9395_v24  ;;  %v7019_v10 = vld [vmem:[%s10481_s2 + $0xd0] sm:$0xff] }
 0x523   :  { %v1736_v44 = vsel %vm9346_vm6, %v9312_v63, %v1731_v57  ;;  %v1851_v0 = vsel %vm1850_vm2, %v7421_v53, %v1847_v41  ;;  %7426 = vpow2.f32 %v5554_v11  ;;  %v10588_v21 = vsub.f32 %v10558_v49, %v8923_v45  ;;  %v7027_v41 = vld [vmem:[%s10481_s2 + $0x110] sm:$0xff]  ;;  %v7026_v49 = vld [vmem:[%s10481_s2 + $0x108] sm:$0xff] }
 0x524   :  { %v1856_v25 = vsel %vm9355_vm9, %v9314_v31, %v1851_v0  ;;  %v2203_v15 = vmul.f32 %v1736_v44, %v9121_v30  ;;  %v2237_v59 = vpack.c.bf16 %v2213_v37, %v2205_v4  ;;  %7428 = vpow2.f32 %v5562_v17  ;;  %v7035_v11 = vld [vmem:[%s10481_s2 + $0x150] sm:$0xff] }
 0x525   :  { %v9425_v51 = vmul.f32 %v8931_v19, %v10588_v21  ;;  %v1920_v9 = vsub.f32 1.0, %v9250_v43  ;;  %v2211_v63 = vmul.f32 %v1856_v25, %v9129_v5  ;;  %v5555_v53 = vmul.f32 -1.442695, %v9401_v28  ;;  %v10595_v37 = vld [vmem:[#allocation39_spill] sm:$0xff]  ;;  %2844 = vmatpush.bf16.msra.mxu2 %v7027_v41 }
 0x526   :  { %v9445_v30 = vadd.f32 %v9138_v18, %v9237_v8  ;;  %vm1804_vm1 = vweird.f32 %v9138_v18  ;;  %v10591_v43 = vand.u32 2147483648, %v9135_v23  ;;  %2809 = vmatmul.bf16.vlgmr.msrb.gmra.mxu3 %v2237_v59  ;;  %v1769_v31 = vmul.f32 %v9234_v38, %v9146_v48  ;;  %v7423_v61 = vpop.eup %7422 }
 0x527   :  { %v5563_v1 = vmul.f32 -1.442695, %v9425_v51  ;;  %v1791_v16 = vsel %vm9439_vm15, %v9114_v33, %v9245_v47  ;;  %v2235_v8 = vpack.c.bf16 %v2211_v63, %v2203_v15  ;;  %7430 = vpow2.f32 %v5555_v53  ;;  %v7020_v47 = vld [vmem:[%s10481_s2 + $0xd8] sm:$0xff]  ;;  %vm9478_vm3 = vmor %vm1803_vm13, %vm1804_vm1 }
 0x528   :  { %v9450_v5 = vor.u32 1.1754944e-38, %v10591_v43  ;;  %v7425_v27 = vpop.eup %7424  ;;  %v10592_v3 = vsub.f32 1.0, %v9203_v2  ;;  %v9463_v58 = vadd.f32 1.0, %v7423_v61  ;;  %v7036_v33 = vld [vmem:[%s10481_s2 + $0x158] sm:$0xff]  ;;  %v1921_v6 = vmul.f32 %v9206_v36, %v1920_v9  ;;  %2824 = vmatpush.bf16.msrb.mxu1 %v7020_v47  ;;  %v7018_v43 = vld [vmem:[%s10481_s2 + $0xc8] sm:$0xff] }
 0x529   :  { %7432 = vpow2.f32 %v5563_v1  ;;  %v7427_v2 = vpop.eup %7426  ;;  %2771 = vmatmul.bf16.vlgmr.msra.gmra.mxu1 %v2235_v8  ;;  %v9485_v14 = vadd.f32 1.0, %v7425_v27  ;;  %v9490_v46 = vsel %vm9405_vm14, %v9165_v34, %v1791_v16  ;;  %v1770_v40 = vsub.f32 1.0, %v1769_v31  ;;  %2862 = vmatpush.bf16.msra.mxu3 %v7036_v33  ;;  %v7034_v8 = vld [vmem:[%s10481_s2 + $0x148] sm:$0xff] }
 0x52a   :  { %v1906_v20 = vmul.f32 %v9168_v39, %v10592_v3  ;;  %7434 = vrcp.f32 %v9178_v7  ;;  %v7429_v52 = vpop.eup %7428  ;;  %v9505_v34 = vmul.f32 %v9283_v26, %v9170_v42  ;;  %v1779_v57 = vand.u32 2147483648, %v9146_v48  ;;  %2845 = vmatpush.bf16.msra.mxu2 %v7026_v49 }
 0x52b   :  { %7436 = vrcp.f32 %v9463_v58  ;;  %v1889_v17 = vmul.f32 %v10595_v37, %v9156_v12  ;;  %v1974_v0 = vand.u32 2147483648, %v9463_v58  ;;  %v9518_v21 = vadd.f32 1.0, %v7427_v2 }
 0x52c   :  { %7438 = vrcp.f32 %v9485_v14  ;;  %v9515_v44 = vadd.f32 %v9168_v39, %v1906_v20  ;;  %v9520_v25 = vadd.f32 1.0, %v7429_v52  ;;  %v9523_v59 = vadd.f32 %v9206_v36, %v1921_v6  ;;  %2825 = vmatpush.bf16.msrb.mxu1 %v7019_v10 }
 0x52d   :  { %v7431_v15 = vpop.eup %7430  ;;  %v1972_v9 = vand.u32 2147483647, %v9463_v58  ;;  %v2094_v63 = vand.u32 2147483648, %v9485_v14  ;;  %v2092_v1 = vand.u32 2147483647, %v9485_v14  ;;  %7440 = vrcp.f32 %v9518_v21  ;;  %2863 = vmatpush.bf16.msra.mxu3 %v7035_v11 }
 0x52e   :  { %v1771_v31 = vmul.f32 %v9234_v38, %v1770_v40  ;;  %vm1773_vm5 = vweird.f32 %v9146_v48  ;;  %vm1968_vm6 = vweird.f32 %v9463_v58  ;;  %7442 = vrcp.f32 %v9520_v25 }
 0x52f   :  { %v7433_v53 = vpop.eup %7432  ;;  %v9546_v27 = vor.u32 1.1754944e-38, %v1779_v57  ;;  %v1890_v3 = vsub.f32 1.0, %v1889_v17  ;;  %v9550_v13 = vor.u32 1.1754944e-38, %v1974_v0  ;;  %vm2088_vm7 = vweird.f32 %v9485_v14  ;;  %vm9628_vm15 = vmor %vm1773_vm5, %vm1774_vm4 }
 0x530   :  { %v9539_v16 = vpop.eup %7434  ;;  %v1989_v47 = vand.u32 2147483648, %v9518_v21  ;;  %v9554_v33 = vadd.f32 1.0, %v7431_v15  ;;  %v9556_v2 = vadd.f32 1.0, %v7433_v53  ;;  %vm9562_vm8 = vcmp.eq.f32.partialorder %v1972_v9, 8.507059e+37  ;;  %2826 = vmatpush.bf16.msrb.mxu1 %v7018_v43  ;;  %v7025_v15 = vld [vmem:[%s10481_s2 + $0x100] sm:$0xff] }
 0x531   :  { %v9548_v20 = vpop.eup %7436  ;;  %v9566_v10 = vor.u32 1.1754944e-38, %v2094_v63  ;;  %v1987_v40 = vand.u32 2147483647, %v9518_v21  ;;  %v2109_v11 = vand.u32 2147483648, %v9520_v25  ;;  %vm9572_vm9 = vcmp.eq.f32.partialorder %v2092_v1, 8.507059e+37  ;;  %v7017_v9 = vld [vmem:[%s10481_s2 + $0xc0] sm:$0xff]  ;;  %2864 = vmatpush.bf16.msra.mxu3 %v7034_v8  ;;  %2846 = vmatpush.bf16.msra.mxu2 %v7025_v15 }
 0x532   :  { %v9558_v6 = vpop.eup %7438  ;;  %v1964_v52 = vmul.f32 %v9548_v20, %v9463_v58  ;;  %v2107_v0 = vand.u32 2147483647, %v9520_v25  ;;  %7444 = vrcp.f32 %v9554_v33  ;;  %v9585_v63 = vadd.f32 %v9234_v38, %v1771_v31  ;;  %v7033_v1 = vld [vmem:[%s10481_s2 + $0x140] sm:$0xff]  ;;  %v7056_v58 = vld [vmem:[%s10481_s2 + $0x1f8] sm:$0xff] }
 0x533   :  { %v2084_v57 = vmul.f32 %v9558_v6, %v9485_v14  ;;  %vm1983_vm10 = vweird.f32 %v9518_v21  ;;  %7446 = vrcp.f32 %v9556_v2  ;;  %v1891_v49 = vmul.f32 %v10595_v37, %v1890_v3  ;;  %v9593_v43 = vpop.eup %7440 }
 0x534   :  { %v1965_v53 = vsub.f32 1.0, %v1964_v52  ;;  %vm1969_vm11 = vweird.f32 %v9548_v20  ;;  %v9596_v54 = vor.u32 1.1754944e-38, %v1989_v47  ;;  %v9599_v31 = vpop.eup %7442  ;;  %v1979_v8 = vmul.f32 %v9593_v43, %v9518_v21  ;;  %2827 = vmatpush.bf16.msrb.mxu1 %v7017_v9  ;;  %v10614_v21 = vld [vmem:[#allocation11_spill] sm:$0xff] }
 0x535   :  { %v2085_v29 = vsub.f32 1.0, %v2084_v57  ;;  %vm9604_vm13 = vcmp.eq.f32.partialorder %v1987_v40, 8.507059e+37  ;;  %v9608_v3 = vor.u32 1.1754944e-38, %v2109_v11  ;;  %v2002_v60 = vand.u32 2147483647, %v9554_v33  ;;  %2865 = vmatpush.bf16.msra.mxu3 %v7033_v1  ;;  %vm9638_vm1 = vmor %vm1968_vm6, %vm1969_vm11  ;;  %2896 = vmatpush.bf16.msrb.mxu2 %v7056_v58 }
 0x536   :  { %v1966_v52 = vmul.f32 %v9548_v20, %v1965_v53  ;;  %vm2089_vm14 = vweird.f32 %v9558_v6  ;;  %v2099_v57 = vmul.f32 %v9599_v31, %v9520_v25  ;;  %vm9615_vm0 = vcmp.eq.f32.partialorder %v2107_v0, 8.507059e+37 }
 0x537   :  { %v2086_v47 = vmul.f32 %v9558_v6, %v2085_v29  ;;  %v1980_v61 = vsub.f32 1.0, %v1979_v8  ;;  %vm1984_vm2 = vweird.f32 %v9593_v43  ;;  %vm2104_vm4 = vweird.f32 %v9599_v31  ;;  %vm2090_vm6 = vmor %vm2088_vm7, %vm2089_vm14 }
 0x538   :  { %v1967_v11 = vadd.f32 %v9548_v20, %v1966_v52  ;;  %v9632_v15 = vpop.eup %7444  ;;  %v2100_v52 = vsub.f32 1.0, %v2099_v57  ;;  %vm2118_vm5 = vweird.f32 %v9556_v2  ;;  %v10608_v8 = vand.u32 2147483647, %v9146_v48 }
 0x539   :  { %v2087_v1 = vadd.f32 %v9558_v6, %v2086_v47  ;;  %v7048_v47 = vld [vmem:[%s10481_s2 + $0x1b8] sm:$0xff]  ;;  %v9658_v29 = vpop.eup %7446  ;;  %v1981_v48 = vmul.f32 %v9593_v43, %v1980_v61  ;;  %vm9670_vm11 = vcmp.eq.f32.partialorder %v2002_v60, 8.507059e+37  ;;  %v1776_v9 = vsel %vm9628_vm15, %v9234_v38, %v9585_v63 }
 0x53a   :  { %vm9648_vm12 = vcmp.eq.f32.partialorder %v10608_v8, 8.507059e+37  ;;  %v1971_v57 = vsel %vm9638_vm1, %v9548_v20, %v1967_v11  ;;  %v1994_v8 = vmul.f32 %v9632_v15, %v9554_v33  ;;  %vm1893_vm1 = vweird.f32 %v9156_v12  ;;  %v7055_v11 = vld [vmem:[%s10481_s2 + $0x1f0] sm:$0xff]  ;;  %2877 = vmatpush.bf16.msra.mxu1 %v7048_v47 }
 0x53b   :  { %v1976_v14 = vsel %vm9562_vm8, %v9550_v13, %v1971_v57  ;;  %v2091_v61 = vsel %vm2090_vm6, %v9558_v6, %v2087_v1  ;;  %v2101_v20 = vmul.f32 %v9599_v31, %v2100_v52  ;;  %v2114_v60 = vmul.f32 %v9658_v29, %v9556_v2  ;;  %v7047_v6 = vld [vmem:[%s10481_s2 + $0x1b0] sm:$0xff]  ;;  %vm1985_vm8 = vmor %vm1983_vm10, %vm1984_vm2  ;;  %2897 = vmatpush.bf16.msrb.mxu2 %v7055_v11 }
 0x53c   :  { %v2096_v38 = vsel %vm9572_vm9, %v9566_v10, %v2091_v61  ;;  %v2219_v63 = vmul.f32 %v1976_v14, %v9368_v62  ;;  %v1982_v13 = vadd.f32 %v9593_v43, %v1981_v48  ;;  %v1995_v41 = vsub.f32 1.0, %v1994_v8 }
 0x53d   :  { %vm1909_vm7 = vweird.f32 %v9168_v39  ;;  %v2227_v0 = vmul.f32 %v2096_v38, %v9374_v32  ;;  %v2102_v10 = vadd.f32 %v9599_v31, %v2101_v20  ;;  %v2115_v62 = vsub.f32 1.0, %v2114_v60 }
 0x53e   :  { %v9705_v17 = vadd.f32 %v10595_v37, %v1891_v49  ;;  %vm1924_vm9 = vweird.f32 %v9206_v36  ;;  %v1986_v1 = vsel %vm1985_vm8, %v9593_v43, %v1982_v13  ;;  %vm10613_vm14 = vweird.f32 %v9520_v25  ;;  %v7054_v25 = vld [vmem:[%s10481_s2 + $0x1e8] sm:$0xff]  ;;  %2878 = vmatpush.bf16.msra.mxu1 %v7047_v6 }
 0x53f   :  { %vm2105_vm15 = vmor %vm10613_vm14, %vm2104_vm4  ;;  %v1996_v32 = vmul.f32 %v9632_v15, %v1995_v41  ;;  %vm1999_vm6 = vweird.f32 %v9632_v15  ;;  %vm2119_vm10 = vweird.f32 %v9658_v29  ;;  %vm1908_vm2 = vweird.f32 %v10614_v21  ;;  %2898 = vmatpush.bf16.msrb.mxu2 %v7054_v25  ;;  %v10627_v41 = vld [vmem:[#allocation14_spill] sm:$0xff] }
 0x540   :  { %v2243_v52 = vpack.c.bf16 %v2227_v0, %v2219_v63  ;;  %v1991_v49 = vsel %vm9604_vm13, %v9596_v54, %v1986_v1  ;;  %v2106_v43 = vsel %vm2105_vm15, %v9599_v31, %v2102_v10  ;;  %v2116_v58 = vmul.f32 %v9658_v29, %v2115_v62  ;;  %v7046_v54 = vld [vmem:[%s10481_s2 + $0x1a8] sm:$0xff]  ;;  %vm2120_vm15 = vmor %vm2118_vm5, %vm2119_vm10  ;;  %v10632_v10 = vld [vmem:[#allocation15_spill] sm:$0xff] }
 0x541   :  { %vm1923_vm4 = vweird.f32 %v9135_v23  ;;  %v2111_v47 = vsel %vm9615_vm0, %v9608_v3, %v2106_v43  ;;  %v2220_v57 = vmul.f32 %v1991_v49, %v9387_v56  ;;  %v1997_v4 = vadd.f32 %v9632_v15, %v1996_v32  ;;  %v10634_v1 = vld [vmem:[#allocation12_spill] sm:$0xff]  ;;  %v10636_v49 = vld [vmem:[#allocation13_spill] sm:$0xff]  ;;  %vm9841_vm10 = vmor %vm1908_vm2, %vm1909_vm7 }
 0x542   :  { %vm1894_vm13 = vweird.f32 %v10595_v37  ;;  %2776 = vmatmul.bf16.gmra.mxu1 %v2243_v52  ;;  %v2228_v31 = vmul.f32 %v2111_v47, %v9395_v24  ;;  %vm10615_vm8 = vweird.f32 %v9554_v33  ;;  %v10616_v3 = vand.u32 2147483648, %v9554_v33  ;;  %v10638_v47 = vld [vmem:[#allocation18_spill] sm:$0xff]  ;;  %vm9855_vm7 = vmor %vm1923_vm4, %vm1924_vm9 }
 0x543   :  { %vm2000_vm14 = vmor %vm10615_vm8, %vm1999_vm6  ;;  %v2117_v53 = vadd.f32 %v9658_v29, %v2116_v58  ;;  %v10617_v48 = vand.u32 2147483647, %v9556_v2  ;;  %v10618_v24 = vand.u32 2147483648, %v9556_v2  ;;  %v1781_v33 = vsel %vm9648_vm12, %v9546_v27, %v1776_v9  ;;  %v7053_v2 = vld [vmem:[%s10481_s2 + $0x1e0] sm:$0xff]  ;;  %2879 = vmatpush.bf16.msra.mxu1 %v7046_v54 }
 0x544   :  { %v2005_v56 = vor.u32 1.1754944e-38, %v10616_v3  ;;  %v2001_v8 = vsel %vm2000_vm14, %v9632_v15, %v1997_v4  ;;  %v1899_v61 = vand.u32 2147483648, %v9156_v12  ;;  %v10619_v20 = vand.u32 2147483647, %v10614_v21  ;;  %vm9769_vm5 = vmor %vm1893_vm1, %vm1894_vm13  ;;  %v10640_v54 = vld [vmem:[#allocation17_spill] sm:$0xff]  ;;  %2899 = vmatpush.bf16.msrb.mxu2 %v7053_v2 }
 0x545   :  { %vm2123_vm0 = vcmp.eq.f32.partialorder %v10617_v48, 8.507059e+37  ;;  %v2125_v14 = vor.u32 1.1754944e-38, %v10618_v24  ;;  %v2244_v15 = vpack.c.bf16 %v2228_v31, %v2220_v57  ;;  %v2121_v38 = vsel %vm2120_vm15, %v9658_v29, %v2117_v53 }
 0x546   :  { %vm9758_vm6 = vcmp.eq.f32.partialorder %v10619_v20, 8.507059e+37  ;;  %v2006_v11 = vsel %vm9670_vm11, %v2005_v56, %v2001_v8  ;;  %v1897_v27 = vand.u32 2147483647, %v9156_v12  ;;  %v10624_v40 = vand.u32 2147483647, %v9071_v50  ;;  %v7045_v12 = vld [vmem:[%s10481_s2 + $0x1a0] sm:$0xff] }
 0x547   :  { %v2126_v29 = vsel %vm2123_vm0, %v2125_v14, %v2121_v38  ;;  %v2221_v63 = vmul.f32 %v2006_v11, %v9401_v28  ;;  %v1896_v13 = vsel %vm9769_vm5, %v10595_v37, %v9705_v17  ;;  %v10628_v50 = vsub.f32 %v10627_v41, %v8923_v45  ;;  %2795 = vmatmul.bf16.gmra.mxu2 %v2244_v15  ;;  %v10646_v11 = vld [vmem:[#allocation19_spill] sm:$0xff]  ;;  %v10652_v41 = vld [vmem:[#allocation38_spill] sm:$0xff] }
 0x548   :  { %vm9779_vm12 = vcmp.eq.f32.partialorder %v10624_v40, 8.507059e+37  ;;  %v10629_v0 = vand.u32 2147483647, %v9135_v23  ;;  %v2229_v37 = vmul.f32 %v2126_v29, %v9425_v51  ;;  %v10633_v62 = vsub.f32 %v10632_v10, %v8923_v45  ;;  %2880 = vmatpush.bf16.msra.mxu1 %v7045_v12  ;;  %v10649_v40 = vld [vmem:[#allocation30_spill] sm:$0xff] }
 0x549   :  { %v9795_v6 = vmul.f32 %v8931_v19, %v10628_v50  ;;  %v10635_v32 = vsub.f32 %v10634_v1, %v8923_v45  ;;  %v10637_v43 = vsub.f32 %v10636_v49, %v8923_v45  ;;  %v1900_v25 = vor.u32 1.1754944e-38, %v1899_v61 }
 0x54a   :  { %vm9799_vm11 = vcmp.eq.f32.partialorder %v10629_v0, 8.507059e+37  ;;  %v9808_v17 = vmul.f32 %v8931_v19, %v10633_v62  ;;  %v10639_v57 = vsub.f32 %v10638_v47, %v8923_v45  ;;  %v10641_v31 = vsub.f32 %v10640_v54, %v8923_v45  ;;  %v10658_v62 = vld [vmem:[#allocation34_spill] sm:$0xff]  ;;  %v7052_v54 = vld [vmem:[%s10481_s2 + $0x1d8] sm:$0xff] }
 0x54b   :  { %v9814_v52 = vmul.f32 %v8931_v19, %v10635_v32  ;;  %v9820_v58 = vmul.f32 %v8931_v19, %v10637_v43  ;;  %v5556_v51 = vmul.f32 -1.442695, %v9795_v6  ;;  %v2245_v56 = vpack.c.bf16 %v2229_v37, %v2221_v63  ;;  %v10650_v63 = vld [vmem:[#allocation20_spill] sm:$0xff]  ;;  %v10656_v37 = vld [vmem:[#allocation33_spill] sm:$0xff]  ;;  %2900 = vmatpush.bf16.msrb.mxu2 %v7052_v54 }
 0x54c   :  { %v9827_v4 = vmul.f32 %v8931_v19, %v10639_v57  ;;  %v9833_v3 = vmul.f32 %v8931_v19, %v10641_v31  ;;  %vm1898_vm1 = vcmp.eq.f32.partialorder %v1897_v27, 8.507059e+37  ;;  %v5564_v53 = vmul.f32 -1.442695, %v9808_v17  ;;  %v10648_v27 = vld [vmem:[#allocation25_spill] sm:$0xff] }
 0x54d   :  { %v5557_v48 = vmul.f32 -1.442695, %v9814_v52  ;;  %v1901_v24 = vsel %vm1898_vm1, %v1900_v25, %v1896_v13  ;;  %7448 = vpow2.f32 %v5556_v51  ;;  %v5565_v14 = vmul.f32 -1.442695, %v9820_v58  ;;  %2814 = vmatmul.bf16.gmra.mxu3 %v2245_v56  ;;  %v10660_v51 = vld [vmem:[#allocation26_spill] sm:$0xff]  ;;  %v10661_v56 = vld [vmem:[#allocation37_spill] sm:$0xff] }
 0x54e   :  { %v5558_v61 = vmul.f32 -1.442695, %v9827_v4  ;;  %v1911_v20 = vsel %vm9841_vm10, %v9168_v39, %v9515_v44  ;;  %7450 = vpow2.f32 %v5564_v53  ;;  %v5566_v15 = vmul.f32 -1.442695, %v9833_v3 }
 0x54f   :  { %v10647_v38 = vsub.f32 %v10646_v11, %v8923_v45  ;;  %v1926_v39 = vsel %vm9855_vm7, %v9206_v36, %v9523_v59  ;;  %v1935_v23 = vsub.f32 1.0, %v9505_v34  ;;  %v1949_v44 = vmul.f32 %v9539_v16, %v9178_v7  ;;  %v10653_v59 = vld [vmem:[#allocation22_spill] sm:$0xff] }
 0x550   :  { %7452 = vpow2.f32 %v5557_v48  ;;  %v2206_v2 = vmul.f32 %v1781_v33, %v10648_v27  ;;  %v2214_v29 = vmul.f32 %v1901_v24, %v10649_v40  ;;  %v10651_v13 = vsub.f32 %v10650_v63, %v8923_v45  ;;  %v7043_v27 = vld [vmem:[%s10481_s2 + $0x190] sm:$0xff] }
 0x551   :  { %v9864_v55 = vmul.f32 %v8931_v19, %v10647_v38  ;;  %7454 = vpow2.f32 %v5565_v14  ;;  %v1916_v36 = vsel %vm9758_vm6, %v10652_v41, %v1911_v20  ;;  %v10654_v50 = vsub.f32 %v10653_v59, %v8923_v45  ;;  %v10664_v20 = vld [vmem:[#allocation24_spill] sm:$0xff] }
 0x552   :  { %v9879_v12 = vmul.f32 %v8931_v19, %v10651_v13  ;;  %7456 = vpow2.f32 %v5558_v61  ;;  %v10655_v0 = vsel %vm9478_vm3, %v9138_v18, %v9445_v30  ;;  %v10657_v60 = vsub.f32 1.0, %v9222_v22  ;;  %v10659_v18 = vld [vmem:[#allocation23_spill] sm:$0xff] }
 0x553   :  { %v5559_v34 = vmul.f32 -1.442695, %v9864_v55  ;;  %v9889_v33 = vmul.f32 %v8931_v19, %v10654_v50  ;;  %v1811_v10 = vsel %vm9779_vm12, %v10656_v37, %v10655_v0  ;;  %v1944_v32 = vand.u32 2147483648, %v9170_v42  ;;  %v7449_v49 = vpop.eup %7448 }
 0x554   :  { %v1816_v1 = vmul.f32 %v10658_v62, %v10657_v60  ;;  %7458 = vpow2.f32 %v5566_v15  ;;  %v1931_v43 = vsel %vm9799_vm11, %v9450_v5, %v1926_v39  ;;  %v1936_v35 = vmul.f32 %v9283_v26, %v1935_v23  ;;  %v7451_v9 = vpop.eup %7450  ;;  %v7044_v5 = vld [vmem:[%s10481_s2 + $0x198] sm:$0xff]  ;;  %v10665_v15 = vld [vmem:[#allocation29_spill] sm:$0xff] }
 0x555   :  { %v1950_v25 = vsub.f32 1.0, %v1949_v44  ;;  %v2207_v30 = vmul.f32 %v9490_v46, %v10659_v18  ;;  %v2215_v47 = vmul.f32 %v1916_v36, %v10660_v51  ;;  %v2238_v22 = vpack.c.bf16 %v2214_v29, %v2206_v2  ;;  %v10663_v46 = vld [vmem:[#allocation35_spill] sm:$0xff]  ;;  %2881 = vmatpush.bf16.msra.mxu1 %v7044_v5  ;;  %v10666_v2 = vld [vmem:[#allocation21_spill] sm:$0xff] }
 0x556   :  { %v9910_v57 = vadd.f32 1.0, %v7449_v49  ;;  %v5567_v28 = vmul.f32 -1.442695, %v9879_v12  ;;  %v7453_v31 = vpop.eup %7452  ;;  %v10662_v53 = vsub.f32 1.0, %v10661_v56  ;;  %v9924_v8 = vadd.f32 1.0, %v7451_v9  ;;  %v7051_v44 = vld [vmem:[%s10481_s2 + $0x1d0] sm:$0xff] }
 0x557   :  { %7460 = vpow2.f32 %v5559_v34  ;;  %v5560_v24 = vmul.f32 -1.442695, %v9889_v33  ;;  %v7455_v14 = vpop.eup %7454  ;;  %v9928_v61 = vadd.f32 %v10658_v62, %v1816_v1  ;;  %v2208_v21 = vmul.f32 %v1811_v10, %v10664_v20  ;;  %2828 = vmatmul.bf16.vlgmr.msrb.gmra.mxu1 %v2238_v22  ;;  %2901 = vmatpush.bf16.msrb.mxu2 %v7051_v44  ;;  %v7050_v1 = vld [vmem:[%s10481_s2 + $0x1c8] sm:$0xff]  ;;  %v7049_v20 = vld [vmem:[%s10481_s2 + $0x1c0] sm:$0xff] }
 0x558   :  { %v9922_v48 = vmul.f32 %v10663_v46, %v10662_v53  ;;  %v2216_v11 = vmul.f32 %v1931_v43, %v10665_v15  ;;  %7462 = vrcp.f32 %v9910_v57  ;;  %v7457_v38 = vpop.eup %7456  ;;  %v9934_v39 = vadd.f32 %v9283_v26, %v1936_v35  ;;  %v7042_v49 = vld [vmem:[%s10481_s2 + $0x188] sm:$0xff] }
 0x559   :  { %v9937_v23 = vmul.f32 %v9539_v16, %v1950_v25  ;;  %7464 = vrcp.f32 %v9924_v8  ;;  %v10667_v40 = vsub.f32 %v10666_v2, %v8923_v45  ;;  %v2239_v13 = vpack.c.bf16 %v2215_v47, %v2207_v30  ;;  %2882 = vmatpush.bf16.msra.mxu1 %v7043_v27 }
 0x55a   :  { %v7459_v63 = vpop.eup %7458  ;;  %v9952_v41 = vadd.f32 1.0, %v7453_v31  ;;  %v9954_v36 = vadd.f32 1.0, %v7455_v14  ;;  %7466 = vpow2.f32 %v5567_v28  ;;  %v2017_v34 = vand.u32 2147483647, %v9910_v57 }
 0x55b   :  { %v9950_v29 = vmul.f32 %v8931_v19, %v10667_v40  ;;  %v2019_v59 = vand.u32 2147483648, %v9910_v57  ;;  %v9958_v50 = vadd.f32 1.0, %v7457_v38  ;;  %7468 = vpow2.f32 %v5560_v24  ;;  %2847 = vmatmul.bf16.vlgmr.msra.gmra.mxu2 %v2239_v13 }
 0x55c   :  { %v2240_v0 = vpack.c.bf16 %v2216_v11, %v2208_v21  ;;  %v2137_v45 = vand.u32 2147483647, %v9924_v8  ;;  %v2139_v19 = vand.u32 2147483648, %v9924_v8  ;;  %7470 = vrcp.f32 %v9952_v41  ;;  %2902 = vmatpush.bf16.msrb.mxu2 %v7050_v1  ;;  %v7041_v21 = vld [vmem:[%s10481_s2 + $0x180] sm:$0xff] }
 0x55d   :  { %v9963_v37 = vpop.eup %7460  ;;  %v2034_v10 = vand.u32 2147483648, %v9952_v41  ;;  %7472 = vrcp.f32 %v9954_v36  ;;  %v9967_v60 = vadd.f32 1.0, %v7459_v63  ;;  %v9976_v43 = vmul.f32 -1.442695, %v9950_v29  ;;  %2883 = vmatpush.bf16.msra.mxu1 %v7042_v49  ;;  %v10676_v1 = vld [vmem:[#allocation9_spill] sm:$0xff] }
 0x55e   :  { %v9978_v35 = vpop.eup %7462  ;;  %vm2013_vm3 = vweird.f32 %v9910_v57  ;;  %vm2133_vm9 = vweird.f32 %v9924_v8  ;;  %v2154_v25 = vand.u32 2147483648, %v9954_v36  ;;  %7474 = vrcp.f32 %v9958_v50  ;;  %2866 = vmatmul.bf16.vlgmr.msra.gmra.mxu3 %v2240_v0 }
 0x55f   :  { %v9984_v18 = vpop.eup %7464  ;;  %v2009_v30 = vmul.f32 %v9978_v35, %v9910_v57  ;;  %vm9988_vm2 = vcmp.eq.f32.partialorder %v2017_v34, 8.507059e+37  ;;  %v2020_v51 = vor.u32 1.1754944e-38, %v2019_v59  ;;  %v2032_v47 = vand.u32 2147483647, %v9952_v41 }
 0x560   :  { %v9993_v22 = vpop.eup %7466  ;;  %v2129_v54 = vmul.f32 %v9984_v18, %v9924_v8  ;;  %vm9997_vm4 = vcmp.eq.f32.partialorder %v2137_v45, 8.507059e+37  ;;  %v2140_v28 = vor.u32 1.1754944e-38, %v2139_v19  ;;  %v2152_v31 = vand.u32 2147483647, %v9954_v36  ;;  %2903 = vmatpush.bf16.msrb.mxu2 %v7049_v20 }
 0x561   :  { %v2049_v56 = vand.u32 2147483648, %v9958_v50  ;;  %v10003_v53 = vpop.eup %7468  ;;  %v2010_v24 = vsub.f32 1.0, %v2009_v30  ;;  %vm2014_vm13 = vweird.f32 %v9978_v35  ;;  %vm2028_vm8 = vweird.f32 %v9952_v41  ;;  %2884 = vmatpush.bf16.msra.mxu1 %v7041_v21 }
 0x562   :  { %v10007_v14 = vor.u32 1.1754944e-38, %v2034_v10  ;;  %7476 = vrcp.f32 %v9967_v60  ;;  %v10016_v15 = vpop.eup %7470  ;;  %v2130_v11 = vsub.f32 1.0, %v2129_v54  ;;  %vm2134_vm14 = vweird.f32 %v9984_v18  ;;  %vm2015_vm15 = vmor %vm2013_vm3, %vm2014_vm13 }
 0x563   :  { %vm2148_vm0 = vweird.f32 %v9954_v36  ;;  %v10020_v38 = vor.u32 1.1754944e-38, %v2154_v25  ;;  %v2047_v44 = vand.u32 2147483647, %v9958_v50  ;;  %v10023_v27 = vpop.eup %7472  ;;  %v2011_v2 = vmul.f32 %v9978_v35, %v2010_v24  ;;  %vm2135_vm7 = vmor %vm2133_vm9, %vm2134_vm14 }
 0x564   :  { %v2024_v40 = vmul.f32 %v10016_v15, %v9952_v41  ;;  %vm10029_vm6 = vcmp.eq.f32.partialorder %v2032_v47, 8.507059e+37  ;;  %vm2043_vm5 = vweird.f32 %v9958_v50  ;;  %v10034_v13 = vor.u32 1.1754944e-38, %v2049_v56  ;;  %v10037_v59 = vpop.eup %7474 }
 0x565   :  { %v2167_v34 = vand.u32 2147483647, %v9967_v60  ;;  %v2131_v0 = vmul.f32 %v9984_v18, %v2130_v11  ;;  %vm2029_vm12 = vweird.f32 %v10016_v15  ;;  %v2144_v45 = vmul.f32 %v10023_v27, %v9954_v36 }
 0x566   :  { %vm10043_vm11 = vcmp.eq.f32.partialorder %v2152_v31, 8.507059e+37  ;;  %v2169_v10 = vand.u32 2147483648, %v9967_v60  ;;  %v2012_v49 = vadd.f32 %v9978_v35, %v2011_v2  ;;  %v2025_v25 = vsub.f32 1.0, %v2024_v40 }
 0x567   :  { %vm2149_vm10 = vweird.f32 %v10023_v27  ;;  %v2039_v30 = vmul.f32 %v10037_v59, %v9958_v50  ;;  %v2132_v47 = vadd.f32 %v9984_v18, %v2131_v0  ;;  %v2145_v54 = vsub.f32 1.0, %v2144_v45  ;;  %v10677_v0 = vld [vmem:[#allocation10_spill] sm:$0xff] }
 0x568   :  { %vm2044_vm1 = vweird.f32 %v10037_v59  ;;  %v10061_v31 = vadd.f32 1.0, %v9963_v37  ;;  %v7477_v56 = vpop.eup %7476  ;;  %v2016_v24 = vsel %vm2015_vm15, %v9978_v35, %v2012_v49  ;;  %v2026_v20 = vmul.f32 %v10016_v15, %v2025_v25 }
 0x569   :  { %v2040_v57 = vsub.f32 1.0, %v2039_v30  ;;  %7478 = vpow2.f32 %v9976_v43  ;;  %vm1834_vm3 = vweird.f32 %v10663_v46  ;;  %vm1938_vm13 = vweird.f32 %v9170_v42 }
 0x56a   :  { %v2021_v37 = vsel %vm9988_vm2, %v2020_v51, %v2016_v24  ;;  %v2136_v21 = vsel %vm2135_vm7, %v9984_v18, %v2132_v47  ;;  %v2146_v35 = vmul.f32 %v10023_v27, %v2145_v54  ;;  %v2159_v11 = vmul.f32 %v7477_v56, %v9967_v60  ;;  %vm2030_vm2 = vmor %vm2028_vm8, %vm2029_vm12 }
 0x56b   :  { %v2141_v8 = vsel %vm9997_vm4, %v2140_v28, %v2136_v21  ;;  %v2222_v2 = vmul.f32 %v2021_v37, %v9795_v6  ;;  %v2027_v43 = vadd.f32 %v10016_v15, %v2026_v20  ;;  %v2041_v40 = vmul.f32 %v10037_v59, %v2040_v57  ;;  %vm2150_vm4 = vmor %vm2148_vm0, %vm2149_vm10  ;;  %v10693_v57 = vld [vmem:[#allocation36_spill] sm:$0xff] }
 0x56c   :  { %vm1833_vm9 = vweird.f32 %v10677_v0  ;;  %v2230_v9 = vmul.f32 %v2141_v8, %v9808_v17  ;;  %v2147_v18 = vadd.f32 %v10023_v27, %v2146_v35  ;;  %v2160_v51 = vsub.f32 1.0, %v2159_v11  ;;  %vm2045_vm0 = vmor %vm2043_vm5, %vm2044_vm1 }
 0x56d   :  { %v10090_v5 = vadd.f32 1.0, %v9993_v22  ;;  %v2031_v6 = vsel %vm2030_vm2, %v10016_v15, %v2027_v43  ;;  %v2042_v17 = vadd.f32 %v10037_v59, %v2041_v40  ;;  %vm2164_vm14 = vweird.f32 %v7477_v56  ;;  %v10696_v43 = vld [vmem:[#allocation27_spill] sm:$0xff] }
 0x56e   :  { %7480 = vrcp.f32 %v10061_v31  ;;  %v10678_v41 = vand.u32 2147483647, %v10676_v1  ;;  %v10681_v22 = vand.u32 2147483647, %v9170_v42  ;;  %v2246_v45 = vpack.c.bf16 %v2230_v9, %v2222_v2  ;;  %v10697_v9 = vld [vmem:[#allocation31_spill] sm:$0xff] }
 0x56f   :  { %v2036_v36 = vsel %vm10029_vm6, %v10007_v14, %v2031_v6  ;;  %v2151_v49 = vsel %vm2150_vm4, %v10023_v27, %v2147_v18  ;;  %v2161_v25 = vmul.f32 %v7477_v56, %v2160_v51  ;;  %v7479_v30 = vpop.eup %7478  ;;  %v2046_v24 = vsel %vm2045_vm0, %v10037_v59, %v2042_v17 }
 0x570   :  { %vm10101_vm8 = vcmp.eq.f32.partialorder %v10678_v41, 8.507059e+37  ;;  %vm10107_vm15 = vcmp.eq.f32.partialorder %v10681_v22, 8.507059e+37  ;;  %v2156_v47 = vsel %vm10043_vm11, %v10020_v38, %v2151_v49  ;;  %v2223_v54 = vmul.f32 %v2036_v36, %v9814_v52  ;;  %2833 = vmatmul.bf16.gmra.mxu1 %v2246_v45  ;;  %v10698_v22 = vld [vmem:[#allocation28_spill] sm:$0xff] }
 0x571   :  { %vm2048_vm6 = vcmp.eq.f32.partialorder %v2047_v44, 8.507059e+37  ;;  %vm10684_vm12 = vweird.f32 %v10658_v62  ;;  %vm10685_vm10 = vweird.f32 %v10676_v1  ;;  %v2231_v27 = vmul.f32 %v2156_v47, %v9820_v58  ;;  %v10699_v36 = vld [vmem:[#allocation32_spill] sm:$0xff] }
 0x572   :  { %vm10130_vm7 = vmor %vm10685_vm10, %vm10684_vm12  ;;  %v2051_v38 = vsel %vm2048_vm6, %v10034_v13, %v2046_v24  ;;  %v2162_v63 = vadd.f32 %v7477_v56, %v2161_v25  ;;  %vm2163_vm5 = vweird.f32 %v9967_v60  ;;  %v1832_v50 = vadd.f32 %v10663_v46, %v9922_v48 }
 0x573   :  { %v1821_v52 = vsel %vm10130_vm7, %v10658_v62, %v9928_v61  ;;  %vm2165_vm11 = vmor %vm2163_vm5, %vm2164_vm14  ;;  %v2170_v44 = vor.u32 1.1754944e-38, %v2169_v10  ;;  %7482 = vrcp.f32 %v10090_v5  ;;  %v2247_v59 = vpack.c.bf16 %v2231_v27, %v2223_v54 }
 0x574   :  { %v2166_v58 = vsel %vm2165_vm11, %v7477_v56, %v2162_v63  ;;  %vm2168_vm1 = vcmp.eq.f32.partialorder %v2167_v34, 8.507059e+37  ;;  %v2224_v13 = vmul.f32 %v2051_v38, %v9827_v4  ;;  %v10148_v19 = vpop.eup %7480  ;;  %vm10688_vm2 = vweird.f32 %v9283_v26 }
 0x575   :  { %vm10154_vm4 = vmor %vm1938_vm13, %vm10688_vm2  ;;  %vm1954_vm14 = vweird.f32 %v9539_v16  ;;  %v2171_v48 = vsel %vm2168_vm1, %v2170_v44, %v2166_v58  ;;  %v10160_v61 = vadd.f32 1.0, %v10003_v53  ;;  %v10162_v60 = vadd.f32 1.0, %v7479_v30  ;;  %2852 = vmatmul.bf16.gmra.mxu2 %v2247_v59 }
 0x576   :  { %v1941_v4 = vsel %vm10154_vm4, %v9283_v26, %v9934_v39  ;;  %v1952_v34 = vadd.f32 %v9539_v16, %v9937_v23  ;;  %v2232_v10 = vmul.f32 %v2171_v48, %v9833_v3  ;;  %v2054_v1 = vmul.f32 %v10148_v19, %v10061_v31  ;;  %vm10177_vm13 = vmor %vm1833_vm9, %vm1834_vm3 }
 0x577   :  { %v1945_v26 = vor.u32 1.1754944e-38, %v1944_v32  ;;  %vm1953_vm0 = vweird.f32 %v9178_v7  ;;  %v1959_v39 = vand.u32 2147483648, %v9178_v7  ;;  %7484 = vrcp.f32 %v10160_v61 }
 0x578   :  { %v1836_v3 = vsel %vm10177_vm13, %v10663_v46, %v1832_v50  ;;  %v1957_v23 = vand.u32 2147483647, %v9178_v7  ;;  %v2248_v56 = vpack.c.bf16 %v2232_v10, %v2224_v13  ;;  %7486 = vrcp.f32 %v10162_v60  ;;  %vm1955_vm3 = vmor %vm1953_vm0, %vm1954_vm14 }
 0x579   :  { %v10191_v20 = vpop.eup %7482  ;;  %v1826_v42 = vsel %vm10101_vm8, %v10693_v57, %v1821_v52  ;;  %v10694_v32 = vand.u32 2147483648, %v10677_v0  ;;  %v1946_v21 = vsel %vm10107_vm15, %v1945_v26, %v1941_v4  ;;  %v2055_v46 = vsub.f32 1.0, %v2054_v1 }
 0x57a   :  { %v10695_v7 = vand.u32 2147483647, %v10677_v0  ;;  %v1956_v35 = vsel %vm1955_vm3, %v9539_v16, %v1952_v34  ;;  %2871 = vmatmul.bf16.gmra.mxu3 %v2248_v56  ;;  %v2174_v11 = vmul.f32 %v10191_v20, %v10090_v5  ;;  %v1960_v2 = vor.u32 1.1754944e-38, %v1959_v39 }
 0x57b   :  { %v1840_v37 = vor.u32 1.1754944e-38, %v10694_v32  ;;  %vm1958_vm8 = vcmp.eq.f32.partialorder %v1957_v23, 8.507059e+37  ;;  %v2209_v40 = vmul.f32 %v1826_v42, %v10696_v43  ;;  %v2217_v18 = vmul.f32 %v1946_v21, %v10697_v9 }
 0x57c   :  { %vm1838_vm9 = vcmp.eq.f32.partialorder %v10695_v7, 8.507059e+37  ;;  %v2175_v51 = vsub.f32 1.0, %v2174_v11  ;;  %v1961_v17 = vsel %vm1958_vm8, %v1960_v2, %v1956_v35  ;;  %v2056_v41 = vmul.f32 %v10148_v19, %v2055_v46 }
 0x57d   :  { %v1841_v8 = vsel %vm1838_vm9, %v1840_v37, %v1836_v3  ;;  %v7485_v6 = vpop.eup %7484  ;;  %v2218_v49 = vmul.f32 %v1961_v17, %v10699_v36  ;;  %v2241_v25 = vpack.c.bf16 %v2217_v18, %v2209_v40  ;;  %v2062_v30 = vand.u32 2147483647, %v10061_v31 }
 0x57e   :  { %v7487_v0 = vpop.eup %7486  ;;  %v2176_v28 = vmul.f32 %v10191_v20, %v2175_v51  ;;  %v2069_v16 = vmul.f32 %v7485_v6, %v10160_v61  ;;  %v2210_v15 = vmul.f32 %v1841_v8, %v10698_v22  ;;  %v2057_v54 = vadd.f32 %v10148_v19, %v2056_v41 }
 0x57f   :  { %v2189_v45 = vmul.f32 %v7487_v0, %v10162_v60  ;;  %vm2059_vm15 = vweird.f32 %v10148_v19  ;;  %v2064_v24 = vand.u32 2147483648, %v10061_v31  ;;  %vm2179_vm6 = vweird.f32 %v10191_v20 }
 0x580   :  { %v2070_v47 = vsub.f32 1.0, %v2069_v16  ;;  %2885 = vmatmul.bf16.vlgmr.msra.gmra.mxu1 %v2241_v25  ;;  %v2177_v27 = vadd.f32 %v10191_v20, %v2176_v28  ;;  %vm2058_vm12 = vweird.f32 %v10061_v31  ;;  %v2184_v63 = vand.u32 2147483648, %v10090_v5 }
 0x581   :  { %v2190_v14 = vsub.f32 1.0, %v2189_v45  ;;  %v2242_v50 = vpack.c.bf16 %v2218_v49, %v2210_v15  ;;  %vm10223_vm10 = vmor %vm2058_vm12, %vm2059_vm15  ;;  %vm2178_vm7 = vweird.f32 %v10090_v5  ;;  %v2182_v59 = vand.u32 2147483647, %v10090_v5 }
 0x582   :  { %v2071_v38 = vmul.f32 %v7485_v6, %v2070_v47  ;;  %v2061_v58 = vsel %vm10223_vm10, %v10148_v19, %v2057_v54  ;;  %vm10232_vm5 = vcmp.eq.f32.partialorder %v2062_v30, 8.507059e+37  ;;  %v2065_v31 = vor.u32 1.1754944e-38, %v2064_v24  ;;  %vm10236_vm11 = vmor %vm2178_vm7, %vm2179_vm6 }
 0x583   :  { %v2191_v52 = vmul.f32 %v7487_v0, %v2190_v14  ;;  %vm2074_vm1 = vweird.f32 %v7485_v6  ;;  %v2181_v48 = vsel %vm10236_vm11, %v10191_v20, %v2177_v27  ;;  %vm2194_vm2 = vweird.f32 %v7487_v0 }
 0x584   :  { %v2072_v5 = vadd.f32 %v7485_v6, %v2071_v38  ;;  %v2185_v34 = vor.u32 1.1754944e-38, %v2184_v63  ;;  %vm2073_vm4 = vweird.f32 %v10160_v61  ;;  %v2079_v19 = vand.u32 2147483648, %v10160_v61 }
 0x585   :  { %2904 = vmatmul.bf16.vlgmr.msrb.gmra.mxu2 %v2242_v50  ;;  %v2192_v4 = vadd.f32 %v7487_v0, %v2191_v52  ;;  %v2199_v10 = vand.u32 2147483648, %v10162_v60  ;;  %vm2183_vm14 = vcmp.eq.f32.partialorder %v2182_v59, 8.507059e+37  ;;  %vm10246_vm13 = vmor %vm2073_vm4, %vm2074_vm1  ;;  %v2077_v53 = vand.u32 2147483647, %v10160_v61 }
 0x586   :  { %vm2193_vm0 = vweird.f32 %v10162_v60  ;;  %v2197_v26 = vand.u32 2147483647, %v10162_v60  ;;  %v2066_v39 = vsel %vm10232_vm5, %v2065_v31, %v2061_v58  ;;  %v2186_v3 = vsel %vm2183_vm14, %v2185_v34, %v2181_v48 }
 0x587   :  { %vm2195_vm3 = vmor %vm2193_vm0, %vm2194_vm2  ;;  %v2076_v23 = vsel %vm10246_vm13, %v7485_v6, %v2072_v5  ;;  %v2080_v20 = vor.u32 1.1754944e-38, %v2079_v19  ;;  %v2200_v57 = vor.u32 1.1754944e-38, %v2199_v10  ;;  %v2225_v42 = vmul.f32 %v2066_v39, %v9864_v55 }
 0x588   :  { %v2196_v56 = vsel %vm2195_vm3, %v7487_v0, %v2192_v4  ;;  %v2233_v32 = vmul.f32 %v2186_v3, %v9879_v12  ;;  %vm2078_vm9 = vcmp.eq.f32.partialorder %v2077_v53, 8.507059e+37  ;;  %vm2198_vm8 = vcmp.eq.f32.partialorder %v2197_v26, 8.507059e+37 }
 0x589   :  { %v2081_v61 = vsel %vm2078_vm9, %v2080_v20, %v2076_v23  ;;  %v2201_v37 = vsel %vm2198_vm8, %v2200_v57, %v2196_v56 }
 0x58a   :  { %v2249_v60 = vpack.c.bf16 %v2233_v32, %v2225_v42  ;;  %v2226_v21 = vmul.f32 %v2081_v61, %v9889_v33  ;;  %v2234_v46 = vmul.f32 %v2201_v37, %v9950_v29 }
 0x58c   :  { %v2250_v7 = vpack.c.bf16 %v2234_v46, %v2226_v21 }
 0x590   :  { %2890 = vmatmul.bf16.gmra.mxu1 %v2249_v60 }
 0x595   :  { %2909 = vmatmul.bf16.gmra.mxu2 %v2250_v7 }
 0x59d   :  { %v2791_v35 = vpop.f32.mrf.mxu2 }
 0x5a5   :  { %v2793_v2 = vpop.f32.mrf.mxu2 }
 0x5a6   :  { %v2772_v11 = vpop.f32.mrf.mxu1 }
 0x5a7   :  { %v2792_v8 = vadd.f32 %v2791_v35, %v2772_v11 }
 0x5a9   :  { %v2810_v18 = vpop.f32.mrf.mxu3 }
 0x5aa   :  { %v2811_v25 = vadd.f32 %v2810_v18, %v2792_v8 }
 0x5ae   :  { %v2774_v43 = vpop.f32.mrf.mxu1 }
 0x5af   :  { %v2794_v55 = vadd.f32 %v2793_v2, %v2774_v43 }
 0x5b1   :  { %v2812_v17 = vpop.f32.mrf.mxu3 }
 0x5b2   :  { %v2813_v30 = vadd.f32 %v2812_v17, %v2794_v55 }
 0x5bf   :  { %v2777_v40 = vpop.f32.mrf.mxu1 }
 0x5c7   :  { %v2779_v12 = vpop.f32.mrf.mxu1 }
 0x5ca   :  { %v2796_v9 = vpop.f32.mrf.mxu2 }
 0x5cb   :  { %v2797_v52 = vadd.f32 %v2796_v9, %v2777_v40 }
 0x5d0   :  { %v2815_v0 = vpop.f32.mrf.mxu3 }
 0x5d1   :  { %v2816_v58 = vadd.f32 %v2815_v0, %v2797_v52 }
 0x5d2   :  { %v2798_v51 = vpop.f32.mrf.mxu2 }
 0x5d3   :  { %v2799_v48 = vadd.f32 %v2798_v51, %v2779_v12 }
 0x5d4   :  { %v2829_v6 = vpop.f32.mrf.mxu1 }
 0x5d5   :  { %v2830_v47 = vadd.f32 %v2829_v6, %v2811_v25 }
 0x5d8   :  { %v2817_v16 = vpop.f32.mrf.mxu3 }
 0x5d9   :  { %v2818_v39 = vadd.f32 %v2817_v16, %v2799_v48 }
 0x5dc   :  { %v2831_v33 = vpop.f32.mrf.mxu1 }
 0x5dd   :  { %v2832_v24 = vadd.f32 %v2831_v33, %v2813_v30 }
 0x5de   :  { %v2848_v41 = vpop.f32.mrf.mxu2 }
 0x5df   :  { %v2849_v54 = vadd.f32 %v2848_v41, %v2830_v47 }
 0x5e1   :  { %v2867_v45 = vpop.f32.mrf.mxu3 }
 0x5e2   :  { %v2868_v50 = vadd.f32 %v2867_v45, %v2849_v54 }
 0x5e6   :  { %v2850_v29 = vpop.f32.mrf.mxu2 }
 0x5e7   :  { %v2851_v63 = vadd.f32 %v2850_v29, %v2832_v24 }
 0x5e9   :  { %v2869_v14 = vpop.f32.mrf.mxu3 }
 0x5ea   :  { %v2870_v44 = vadd.f32 %v2869_v14, %v2851_v63 }
 0x5ed   :  { %v2834_v28 = vpop.f32.mrf.mxu1 }
 0x5ee   :  { %v2835_v5 = vadd.f32 %v2834_v28, %v2816_v58  ;;  %v10708_v28 = vld [vmem:[#allocation16_spill] sm:$0xff] }
 0x5f5   :  { %v2836_v22 = vpop.f32.mrf.mxu1 }
 0x5f6   :  { %v2837_v56 = vadd.f32 %v2836_v22, %v2818_v39 }
 0x5f8   :  { %v2853_v15 = vpop.f32.mrf.mxu2 }
 0x5f9   :  { %v2854_v10 = vadd.f32 %v2853_v15, %v2835_v5 }
 0x5fd   :  { %v2886_v36 = vpop.f32.mrf.mxu1  ;;  %v2872_v34 = vpop.f32.mrf.mxu3 }
 0x5fe   :  { %v2887_v59 = vadd.f32 %v2886_v36, %v2868_v50  ;;  %v2873_v23 = vadd.f32 %v2872_v34, %v2854_v10 }
 0x600   :  { %v2855_v49 = vpop.f32.mrf.mxu2 }
 0x601   :  { %v2856_v57 = vadd.f32 %v2855_v49, %v2837_v56 }
 0x605   :  { %v2888_v38 = vpop.f32.mrf.mxu1  ;;  %v2874_v61 = vpop.f32.mrf.mxu3 }
 0x606   :  { %v2889_v31 = vadd.f32 %v2888_v38, %v2870_v44  ;;  %v2875_v60 = vadd.f32 %v2874_v61, %v2856_v57 }
 0x608   :  { %v2905_v27 = vpop.f32.mrf.mxu2 }
 0x609   :  { %v10261_v13 = vadd.f32 %v2905_v27, %v2887_v59 }
 0x60b   :  { %v2925_v1 = vmul.f32 %v10261_v13, %v10261_v13 }
 0x60d   :  { %v2891_v19 = vpop.f32.mrf.mxu1 }
 0x60e   :  { %v2892_v42 = vadd.f32 %v2891_v19, %v2873_v23 }
 0x610   :  { %v2907_v62 = vpop.f32.mrf.mxu2 }
 0x611   :  { %v2908_v4 = vadd.f32 %v2907_v62, %v2889_v31 }
 0x613   :  { %v2915_v53 = vadd.f32 %v2908_v4, %v10261_v13  ;;  %v2926_v26 = vmul.f32 %v2908_v4, %v2908_v4 }
 0x615   :  { %v2929_v3 = vadd.f32 %v2926_v26, %v2925_v1  ;;  %v2893_v37 = vpop.f32.mrf.mxu1 }
 0x616   :  { %v2894_v46 = vadd.f32 %v2893_v37, %v2875_v60 }
 0x618   :  { %v2910_v20 = vpop.f32.mrf.mxu2 }
 0x619   :  { %v2911_v32 = vadd.f32 %v2910_v20, %v2892_v42 }
 0x61b   :  { %v2927_v21 = vmul.f32 %v2911_v32, %v2911_v32  ;;  %v2916_v35 = vadd.f32 %v2915_v53, %v2911_v32 }
 0x61d   :  { %v2930_v8 = vadd.f32 %v2929_v3, %v2927_v21 }
 0x620   :  { %v2912_v7 = vpop.f32.mrf.mxu2 }
 0x621   :  { %v2913_v11 = vadd.f32 %v2912_v7, %v2894_v46 }
 0x623   :  { %v2917_v2 = vadd.f32 %v2916_v35, %v2913_v11  ;;  %v2928_v43 = vmul.f32 %v2913_v11, %v2913_v11 }
 0x625   :  { %v2918_v55 = vrot.slane %v2917_v2, 4  ;;  %v2931_v40 = vadd.f32 %v2930_v8, %v2928_v43 }
 0x627   :  { %v2919_v12 = vadd.f32 %v2918_v55, %v2917_v2  ;;  %v2932_v9 = vrot.slane %v2931_v40, 4 }
 0x629   :  { %v2920_v18 = vrot.slane %v2919_v12, 2  ;;  %v2933_v51 = vadd.f32 %v2932_v9, %v2931_v40 }
 0x62b   :  { %v2921_v6 = vadd.f32 %v2920_v18, %v2919_v12  ;;  %v2934_v17 = vrot.slane %v2933_v51, 2 }
 0x62d   :  { %v2922_v41 = vrot.slane %v2921_v6, 1  ;;  %v2935_v33 = vadd.f32 %v2934_v17, %v2933_v51 }
 0x62f   :  { %v2923_v0 = vadd.f32 %v2922_v41, %v2921_v6  ;;  %v2936_v29 = vrot.slane %v2935_v33, 1 }
 0x631   :  { %v2924_v16 = vmul.f32 %v2923_v0, %v10708_v28  ;;  %v2937_v22 = vadd.f32 %v2936_v29, %v2935_v33 }
 0x633   :  { %v2938_v15 = vmul.f32 %v2937_v22, %v10708_v28  ;;  %v2939_v45 = vmul.f32 %v2924_v16, %v2924_v16  ;;  %v2941_v36 = vsub.f32 %v10261_v13, %v2924_v16  ;;  %v2942_v49 = vsub.f32 %v2908_v4, %v2924_v16 }
 0x634   :  { %v2943_v63 = vsub.f32 %v2911_v32, %v2924_v16  ;;  %v2944_v52 = vsub.f32 %v2913_v11, %v2924_v16 }
 0x635   :  { %v2940_v25 = vsub.f32 %v2938_v15, %v2939_v45 }
 0x637   :  { %v2945_v30 = vadd.f32 1e-05, %v2940_v25 }
 0x639   :  { %7488 = vrsqrt.f32 %v2945_v30  ;;  %vm2952_vm6 = vweird.f32 %v2945_v30 }
 0x63f   :  { %v7489_v47 = vpop.eup %7488 }
 0x640   :  { %v2947_v54 = vmul.f32 %v7489_v47, %v2945_v30  ;;  %vm2953_vm15 = vweird.f32 %v7489_v47 }
 0x641   :  { %vm2954_vm12 = vmor %vm2952_vm6, %vm2953_vm15 }
 0x642   :  { %v2948_v24 = vmul.f32 %v7489_v47, %v2947_v54 }
 0x644   :  { %v2949_v14 = vmul.f32 0.5, %v2948_v24 }
 0x646   :  { %v2950_v27 = vsub.f32 1.5, %v2949_v14 }
 0x648   :  { %v2951_v38 = vmul.f32 %v7489_v47, %v2950_v27 }
 0x64a   :  { %v2955_v50 = vsel %vm2954_vm12, %v7489_v47, %v2951_v38 }
 0x64b   :  { %v10269_v44 = vmul.f32 %v2955_v50, %v2941_v36  ;;  %v10271_v59 = vmul.f32 %v2955_v50, %v2942_v49  ;;  %v10273_v58 = vmul.f32 %v2955_v50, %v2943_v63  ;;  %v10275_v13 = vmul.f32 %v2955_v50, %v2944_v52 }
 0x64d   :  { %v5825_v31 = vmul.f32 -1.442695, %v10269_v44  ;;  %v5826_v62 = vmul.f32 -1.442695, %v10271_v59  ;;  %v5827_v48 = vmul.f32 -1.442695, %v10273_v58 }
 0x64e   :  { %v5828_v5 = vmul.f32 -1.442695, %v10275_v13 }
 0x64f   :  { %7490 = vpow2.f32 %v5825_v31 }
 0x650   :  { %7492 = vpow2.f32 %v5826_v62 }
 0x651   :  { %7494 = vpow2.f32 %v5827_v48 }
 0x652   :  { %7496 = vpow2.f32 %v5828_v5 }
 0x655   :  { %v7491_v4 = vpop.eup %7490 }
 0x656   :  { %v7493_v34 = vpop.eup %7492  ;;  %v2972_v19 = vadd.f32 1.0, %v7491_v4 }
 0x657   :  { %v7495_v10 = vpop.eup %7494  ;;  %v2973_v1 = vadd.f32 1.0, %v7493_v34 }
 0x658   :  { %v7497_v53 = vpop.eup %7496  ;;  %v2974_v26 = vadd.f32 1.0, %v7495_v10  ;;  %7498 = vrcp.f32 %v2972_v19  ;;  %v2985_v3 = vand.u32 2147483647, %v2972_v19  ;;  %v2987_v23 = vand.u32 2147483648, %v2972_v19 }
 0x659   :  { %v2975_v39 = vadd.f32 1.0, %v7497_v53  ;;  %7500 = vrcp.f32 %v2973_v1  ;;  %vm2981_vm10 = vweird.f32 %v2972_v19  ;;  %vm2996_vm7 = vweird.f32 %v2973_v1 }
 0x65a   :  { %7502 = vrcp.f32 %v2974_v26  ;;  %v3000_v61 = vand.u32 2147483647, %v2973_v1  ;;  %v3002_v37 = vand.u32 2147483648, %v2973_v1  ;;  %vm10281_vm5 = vcmp.eq.f32.partialorder %v2985_v3, 8.507059e+37 }
 0x65b   :  { %7504 = vrcp.f32 %v2975_v39  ;;  %v2988_v46 = vor.u32 1.1754944e-38, %v2987_v23  ;;  %vm3011_vm11 = vweird.f32 %v2974_v26  ;;  %v3015_v8 = vand.u32 2147483647, %v2974_v26 }
 0x65c   :  { %v3017_v2 = vand.u32 2147483648, %v2974_v26  ;;  %vm10285_vm4 = vcmp.eq.f32.partialorder %v3000_v61, 8.507059e+37  ;;  %v3003_v18 = vor.u32 1.1754944e-38, %v3002_v37  ;;  %vm3026_vm0 = vweird.f32 %v2975_v39 }
 0x65d   :  { %v3030_v33 = vand.u32 2147483647, %v2975_v39  ;;  %v3032_v0 = vand.u32 2147483648, %v2975_v39  ;;  %vm3016_vm15 = vcmp.eq.f32.partialorder %v3015_v8, 8.507059e+37 }
 0x65e   :  { %v7499_v56 = vpop.eup %7498  ;;  %v3018_v45 = vor.u32 1.1754944e-38, %v3017_v2 }
 0x65f   :  { %v7501_v20 = vpop.eup %7500  ;;  %v2977_v57 = vmul.f32 %v7499_v56, %v2972_v19  ;;  %vm2982_vm1 = vweird.f32 %v7499_v56  ;;  %vm3031_vm12 = vcmp.eq.f32.partialorder %v3030_v33, 8.507059e+37  ;;  %v3033_v54 = vor.u32 1.1754944e-38, %v3032_v0 }
 0x660   :  { %v7503_v42 = vpop.eup %7502  ;;  %v2992_v32 = vmul.f32 %v7501_v20, %v2973_v1  ;;  %vm2997_vm2 = vweird.f32 %v7501_v20  ;;  %vm2983_vm13 = vmor %vm2981_vm10, %vm2982_vm1 }
 0x661   :  { %v2978_v60 = vsub.f32 1.0, %v2977_v57  ;;  %v3007_v7 = vmul.f32 %v7503_v42, %v2974_v26  ;;  %v7505_v35 = vpop.eup %7504  ;;  %vm3012_vm14 = vweird.f32 %v7503_v42  ;;  %vm2998_vm3 = vmor %vm2996_vm7, %vm2997_vm2 }
 0x662   :  { %v2993_v11 = vsub.f32 1.0, %v2992_v32  ;;  %v3022_v40 = vmul.f32 %v7505_v35, %v2975_v39  ;;  %vm3027_vm9 = vweird.f32 %v7505_v35  ;;  %vm3013_vm8 = vmor %vm3011_vm11, %vm3012_vm14 }
 0x663   :  { %v2979_v43 = vmul.f32 %v7499_v56, %v2978_v60  ;;  %v3008_v55 = vsub.f32 1.0, %v3007_v7  ;;  %vm3028_vm6 = vmor %vm3026_vm0, %vm3027_vm9 }
 0x664   :  { %v2994_v12 = vmul.f32 %v7501_v20, %v2993_v11  ;;  %v3023_v17 = vsub.f32 1.0, %v3022_v40 }
 0x665   :  { %v2980_v51 = vadd.f32 %v7499_v56, %v2979_v43  ;;  %v3009_v6 = vmul.f32 %v7503_v42, %v3008_v55 }
 0x666   :  { %v2995_v41 = vadd.f32 %v7501_v20, %v2994_v12  ;;  %v3024_v16 = vmul.f32 %v7505_v35, %v3023_v17 }
 0x667   :  { %v2984_v29 = vsel %vm2983_vm13, %v7499_v56, %v2980_v51  ;;  %v3010_v28 = vadd.f32 %v7503_v42, %v3009_v6 }
 0x668   :  { %v2989_v22 = vsel %vm10281_vm5, %v2988_v46, %v2984_v29  ;;  %v2999_v15 = vsel %vm2998_vm3, %v7501_v20, %v2995_v41  ;;  %v3025_v25 = vadd.f32 %v7505_v35, %v3024_v16 }
 0x669   :  { %v3004_v36 = vsel %vm10285_vm4, %v3003_v18, %v2999_v15  ;;  %v3014_v49 = vsel %vm3013_vm8, %v7503_v42, %v3010_v28  ;;  %v3036_v30 = vmul.f32 %v2989_v22, %v10269_v44 }
 0x66a   :  { %v3019_v47 = vsel %vm3016_vm15, %v3018_v45, %v3014_v49  ;;  %v3037_v24 = vmul.f32 %v3004_v36, %v10271_v59  ;;  %v3029_v14 = vsel %vm3028_vm6, %v7505_v35, %v3025_v25 }
 0x66b   :  { %v3038_v27 = vmul.f32 %v3019_v47, %v10273_v58  ;;  %v3041_v38 = vrot.slane %v3036_v30, 2  ;;  %v3043_v63 = vrot.slane %v3036_v30, 4  ;;  %v3034_v52 = vsel %vm3031_vm12, %v3033_v54, %v3029_v14 }
 0x66c   :  { %v3045_v50 = vrot.slane %v3036_v30, 6  ;;  %v3048_v31 = vrot.slane %v3037_v24, 2  ;;  %v3050_v62 = vrot.slane %v3037_v24, 4  ;;  %v3039_v48 = vmul.f32 %v3034_v52, %v10275_v13 }
 0x66d   :  { %v3052_v5 = vrot.slane %v3037_v24, 6  ;;  %v3055_v44 = vrot.slane %v3038_v27, 2  ;;  %v3057_v4 = vrot.slane %v3038_v27, 4  ;;  %v3059_v34 = vrot.slane %v3038_v27, 6 }
 0x66e   :  { %v10301_v19 = vpack.c.bf16 %v3036_v30, %v3036_v30  ;;  %v10303_v10 = vpack.c.bf16 %v3041_v38, %v3041_v38  ;;  %v10305_v59 = vpack.c.bf16 %v3043_v63, %v3043_v63  ;;  %v3062_v1 = vrot.slane %v3039_v48, 2 }
 0x66f   :  { %v3064_v58 = vrot.slane %v3039_v48, 4  ;;  %v3066_v53 = vrot.slane %v3039_v48, 6  ;;  %v10307_v26 = vpack.c.bf16 %v3045_v50, %v3045_v50  ;;  %v10309_v39 = vpack.c.bf16 %v3037_v24, %v3037_v24 }
 0x670   :  { %v10311_v3 = vpack.c.bf16 %v3048_v31, %v3048_v31  ;;  %v10313_v13 = vpack.c.bf16 %v3050_v62, %v3050_v62  ;;  %v10315_v23 = vpack.c.bf16 %v3052_v5, %v3052_v5  ;;  %v10317_v56 = vpack.c.bf16 %v3038_v27, %v3038_v27 }
 0x671   :  { %v10319_v20 = vpack.c.bf16 %v3055_v44, %v3055_v44  ;;  %v10321_v57 = vpack.c.bf16 %v3057_v4, %v3057_v4  ;;  %v10323_v42 = vpack.c.bf16 %v3059_v34, %v3059_v34  ;;  %v10325_v32 = vpack.c.bf16 %v3039_v48, %v3039_v48 }
 0x672   :  { %v10327_v61 = vpack.c.bf16 %v3062_v1, %v3062_v1  ;;  %v10329_v37 = vpack.c.bf16 %v3064_v58, %v3064_v58  ;;  %v10331_v60 = vpack.c.bf16 %v3066_v53, %v3066_v53 }
 0x673   :  { %7547 = dma.done.wait [#allocation3], 32768 }
 0x674   :  { %7548 = vsyncadd [#allocation3], 4294934528  ;;  %v5887_v21 = vld [vmem:[#allocation2 + $0x70] sm:$0xf]  ;;  %v7072_v46 = vld [vmem:[#allocation2 + $0x74] sm:$0xf0] }
 0x675   :  { %v5951_v7 = vld [vmem:[#allocation2 + $0xf0] sm:$0xf]  ;;  %v5888_v35 = vor.u32 %v7072_v46, %v5887_v21  ;;  %v7088_v11 = vld [vmem:[#allocation2 + $0xf4] sm:$0xf0]  ;;  %v5879_v8 = vld [vmem:[#allocation2 + $0x60] sm:$0xf] }
 0x676   :  { %v7070_v2 = vld [vmem:[#allocation2 + $0x64] sm:$0xf0]  ;;  %v5952_v43 = vor.u32 %v7088_v11, %v5951_v7  ;;  %v5943_v55 = vld [vmem:[#allocation2 + $0xe0] sm:$0xf]  ;;  %v6015_v12 = vld [vmem:[#allocation2 + $0x170] sm:$0xf] }
 0x677   :  { %v7086_v40 = vld [vmem:[#allocation2 + $0xe4] sm:$0xf0]  ;;  %4630 = vmatpush.bf16.msrb.mxu3 %v5888_v35  ;;  %v5880_v9 = vor.u32 %v7070_v2, %v5879_v8  ;;  %v7104_v18 = vld [vmem:[#allocation2 + $0x174] sm:$0xf0]  ;;  %v5871_v17 = vld [vmem:[#allocation2 + $0x50] sm:$0xf] }
 0x678   :  { %4643 = vmatpush.bf16.msrb.mxu1 %v5952_v43  ;;  %v5944_v51 = vor.u32 %v7086_v40, %v5943_v55  ;;  %v6016_v6 = vor.u32 %v7104_v18, %v6015_v12  ;;  %v7068_v41 = vld [vmem:[#allocation2 + $0x54] sm:$0xf0]  ;;  %v6007_v33 = vld [vmem:[#allocation2 + $0x160] sm:$0xf]  ;;  %v5935_v0 = vld [vmem:[#allocation2 + $0xd0] sm:$0xf] }
 0x679   :  { %v7084_v29 = vld [vmem:[#allocation2 + $0xd4] sm:$0xf0]  ;;  %v7102_v28 = vld [vmem:[#allocation2 + $0x164] sm:$0xf0]  ;;  %v5872_v22 = vor.u32 %v7068_v41, %v5871_v17  ;;  %v5999_v15 = vld [vmem:[#allocation2 + $0x150] sm:$0xf] }
 0x67a   :  { %4656 = vmatpush.bf16.msra.mxu2 %v6016_v6  ;;  %v6008_v16 = vor.u32 %v7102_v28, %v6007_v33  ;;  %v7100_v45 = vld [vmem:[#allocation2 + $0x154] sm:$0xf0]  ;;  %v5936_v36 = vor.u32 %v7084_v29, %v5935_v0  ;;  %v5863_v49 = vld [vmem:[#allocation2 + $0x40] sm:$0xf]  ;;  %v7066_v25 = vld [vmem:[#allocation2 + $0x44] sm:$0xf0] }
 0x67b   :  { %4631 = vmatpush.bf16.msrb.mxu3 %v5880_v9  ;;  %v5927_v30 = vld [vmem:[#allocation2 + $0xc0] sm:$0xf]  ;;  %v7082_v47 = vld [vmem:[#allocation2 + $0xc4] sm:$0xf0]  ;;  %v6000_v54 = vor.u32 %v7100_v45, %v5999_v15  ;;  %v5864_v24 = vor.u32 %v7066_v25, %v5863_v49  ;;  %v5855_v63 = vld [vmem:[#allocation2 + $0x30] sm:$0xf] }
 0x67c   :  { %4644 = vmatpush.bf16.msrb.mxu1 %v5944_v51  ;;  %v5991_v14 = vld [vmem:[#allocation2 + $0x140] sm:$0xf]  ;;  %v7098_v27 = vld [vmem:[#allocation2 + $0x144] sm:$0xf0]  ;;  %v5928_v38 = vor.u32 %v7082_v47, %v5927_v30  ;;  %v7064_v52 = vld [vmem:[#allocation2 + $0x34] sm:$0xf0] }
 0x67d   :  { %v5919_v50 = vld [vmem:[#allocation2 + $0xb0] sm:$0xf]  ;;  %v7080_v31 = vld [vmem:[#allocation2 + $0xb4] sm:$0xf0]  ;;  %v5992_v62 = vor.u32 %v7098_v27, %v5991_v14  ;;  %v5856_v48 = vor.u32 %v7064_v52, %v5855_v63  ;;  %v5847_v34 = vld [vmem:[#allocation2 + $0x20] sm:$0xf] }
 0x67e   :  { %4657 = vmatpush.bf16.msra.mxu2 %v6008_v16  ;;  %v5983_v5 = vld [vmem:[#allocation2 + $0x130] sm:$0xf]  ;;  %v7096_v44 = vld [vmem:[#allocation2 + $0x134] sm:$0xf0]  ;;  %v5920_v4 = vor.u32 %v7080_v31, %v5919_v50  ;;  %v7062_v1 = vld [vmem:[#allocation2 + $0x24] sm:$0xf0] }
 0x67f   :  { %4632 = vmatpush.bf16.msrb.mxu3 %v5872_v22  ;;  %v5911_v58 = vld [vmem:[#allocation2 + $0xa0] sm:$0xf]  ;;  %v7078_v53 = vld [vmem:[#allocation2 + $0xa4] sm:$0xf0]  ;;  %v5984_v21 = vor.u32 %v7096_v44, %v5983_v5  ;;  %v5848_v46 = vor.u32 %v7062_v1, %v5847_v34  ;;  %v5839_v8 = vld [vmem:[#allocation2 + $0x10] sm:$0xf] }
 0x680   :  { %4645 = vmatpush.bf16.msrb.mxu1 %v5936_v36  ;;  %v5975_v7 = vld [vmem:[#allocation2 + $0x120] sm:$0xf]  ;;  %v7094_v35 = vld [vmem:[#allocation2 + $0x124] sm:$0xf0]  ;;  %v5912_v11 = vor.u32 %v7078_v53, %v5911_v58  ;;  %v7060_v2 = vld [vmem:[#allocation2 + $0x14] sm:$0xf0] }
 0x681   :  { %v5903_v43 = vld [vmem:[#allocation2 + $0x90] sm:$0xf]  ;;  %v7076_v55 = vld [vmem:[#allocation2 + $0x94] sm:$0xf0]  ;;  %v5976_v40 = vor.u32 %v7094_v35, %v5975_v7  ;;  %v5840_v12 = vor.u32 %v7060_v2, %v5839_v8  ;;  %v5831_v6 = vld [vmem:[#allocation2] sm:$0xf] }
 0x682   :  { %4658 = vmatpush.bf16.msra.mxu2 %v6000_v54  ;;  %v5967_v9 = vld [vmem:[#allocation2 + $0x110] sm:$0xf]  ;;  %v7092_v18 = vld [vmem:[#allocation2 + $0x114] sm:$0xf0]  ;;  %v5904_v51 = vor.u32 %v7076_v55, %v5903_v43  ;;  %v7058_v17 = vld [vmem:[#allocation2 + $0x4] sm:$0xf0] }
 0x683   :  { %4633 = vmatpush.bf16.msrb.mxu3 %v5864_v24  ;;  %v5895_v41 = vld [vmem:[#allocation2 + $0x80] sm:$0xf]  ;;  %v7074_v33 = vld [vmem:[#allocation2 + $0x84] sm:$0xf0]  ;;  %v6079_v0 = vld [vmem:[#allocation2 + $0x1f0] sm:$0xf]  ;;  %v5968_v28 = vor.u32 %v7092_v18, %v5967_v9  ;;  %v5832_v15 = vor.u32 %v7058_v17, %v5831_v6 }
 0x684   :  { %4646 = vmatpush.bf16.msrb.mxu1 %v5928_v38  ;;  %v7120_v29 = vld [vmem:[#allocation2 + $0x1f4] sm:$0xf0]  ;;  %v6143_v16 = vld [vmem:[#allocation2 + $0x270] sm:$0xf]  ;;  %v5959_v45 = vld [vmem:[#allocation2 + $0x100] sm:$0xf]  ;;  %v5896_v49 = vor.u32 %v7074_v33, %v5895_v41 }
 0x685   :  { %v7136_v22 = vld [vmem:[#allocation2 + $0x274] sm:$0xf0]  ;;  %v7090_v36 = vld [vmem:[#allocation2 + $0x104] sm:$0xf0]  ;;  %v6080_v25 = vor.u32 %v7120_v29, %v6079_v0  ;;  %v6207_v30 = vld [vmem:[#allocation2 + $0x2f0] sm:$0xf] }
 0x686   :  { %4659 = vmatpush.bf16.msra.mxu2 %v5992_v62  ;;  %v7152_v47 = vld [vmem:[#allocation2 + $0x2f4] sm:$0xf0]  ;;  %v6144_v54 = vor.u32 %v7136_v22, %v6143_v16  ;;  %v6071_v24 = vld [vmem:[#allocation2 + $0x1e0] sm:$0xf]  ;;  %v7118_v14 = vld [vmem:[#allocation2 + $0x1e4] sm:$0xf0]  ;;  %v5960_v27 = vor.u32 %v7090_v36, %v5959_v45 }
 0x687   :  { %4634 = vmatpush.bf16.msrb.mxu3 %v5856_v48  ;;  %v6135_v38 = vld [vmem:[#allocation2 + $0x260] sm:$0xf]  ;;  %v7134_v63 = vld [vmem:[#allocation2 + $0x264] sm:$0xf0]  ;;  %v6208_v52 = vor.u32 %v7152_v47, %v6207_v30  ;;  %v6072_v50 = vor.u32 %v7118_v14, %v6071_v24  ;;  %v6063_v5 = vld [vmem:[#allocation2 + $0x1d0] sm:$0xf] }
 0x688   :  { %4647 = vmatpush.bf16.msrb.mxu1 %v5920_v4  ;;  %v6199_v31 = vld [vmem:[#allocation2 + $0x2e0] sm:$0xf]  ;;  %v7150_v62 = vld [vmem:[#allocation2 + $0x2e4] sm:$0xf0]  ;;  %v6136_v48 = vor.u32 %v7134_v63, %v6135_v38  ;;  %v7116_v44 = vld [vmem:[#allocation2 + $0x1d4] sm:$0xf0] }
 0x689   :  { %v6127_v4 = vld [vmem:[#allocation2 + $0x250] sm:$0xf]  ;;  %v7132_v34 = vld [vmem:[#allocation2 + $0x254] sm:$0xf0]  ;;  %v6200_v1 = vor.u32 %v7150_v62, %v6199_v31  ;;  %v6064_v58 = vor.u32 %v7116_v44, %v6063_v5  ;;  %v6055_v53 = vld [vmem:[#allocation2 + $0x1c0] sm:$0xf] }
 0x68a   :  { %4660 = vmatpush.bf16.msra.mxu2 %v5984_v21  ;;  %v6191_v21 = vld [vmem:[#allocation2 + $0x2d0] sm:$0xf]  ;;  %v6128_v7 = vor.u32 %v7132_v34, %v6127_v4  ;;  %v7114_v35 = vld [vmem:[#allocation2 + $0x1c4] sm:$0xf0]  ;;  %v6183_v55 = vld [vmem:[#allocation2 + $0x2c0] sm:$0xf] }
 0x68b   :  { %4635 = vmatpush.bf16.msrb.mxu3 %v5848_v46  ;;  %v7148_v46 = vld [vmem:[#allocation2 + $0x2d4] sm:$0xf0]  ;;  %v7130_v8 = vld [vmem:[#allocation2 + $0x244] sm:$0xf0]  ;;  %v6056_v43 = vor.u32 %v7114_v35, %v6055_v53  ;;  %v6047_v9 = vld [vmem:[#allocation2 + $0x1b0] sm:$0xf] }
 0x68c   :  { %4648 = vmatpush.bf16.msrb.mxu1 %v5912_v11  ;;  %v6119_v11 = vld [vmem:[#allocation2 + $0x240] sm:$0xf]  ;;  %v6192_v2 = vor.u32 %v7148_v46, %v6191_v21  ;;  %v7112_v18 = vld [vmem:[#allocation2 + $0x1b4] sm:$0xf0]  ;;  %v6175_v33 = vld [vmem:[#allocation2 + $0x2b0] sm:$0xf] }
 0x68d   :  { %v7128_v6 = vld [vmem:[#allocation2 + $0x234] sm:$0xf0]  ;;  %v6048_v41 = vor.u32 %v7112_v18, %v6047_v9  ;;  %v7110_v16 = vld [vmem:[#allocation2 + $0x1a4] sm:$0xf0]  ;;  %v6103_v22 = vld [vmem:[#allocation2 + $0x220] sm:$0xf] }
 0x68e   :  { %4661 = vmatpush.bf16.msra.mxu2 %v5976_v40  ;;  %v7146_v40 = vld [vmem:[#allocation2 + $0x2c4] sm:$0xf0]  ;;  %v7144_v0 = vld [vmem:[#allocation2 + $0x2b4] sm:$0xf0]  ;;  %v6031_v47 = vld [vmem:[#allocation2 + $0x190] sm:$0xf] }
 0x68f   :  { %4636 = vmatpush.bf16.msrb.mxu3 %v5840_v12  ;;  %v6120_v12 = vor.u32 %v7130_v8, %v6119_v11  ;;  %v6184_v17 = vor.u32 %v7146_v40, %v6183_v55  ;;  %v6176_v45 = vor.u32 %v7144_v0, %v6175_v33  ;;  %v6095_v24 = vld [vmem:[#allocation2 + $0x210] sm:$0xf]  ;;  %v7124_v14 = vld [vmem:[#allocation2 + $0x214] sm:$0xf0]  ;;  %v6023_v31 = vld [vmem:[#allocation2 + $0x180] sm:$0xf] }
 0x690   :  { %4649 = vmatpush.bf16.msrb.mxu1 %v5904_v51  ;;  %v6111_v51 = vld [vmem:[#allocation2 + $0x230] sm:$0xf]  ;;  %v7106_v62 = vld [vmem:[#allocation2 + $0x184] sm:$0xf0]  ;;  %v7168_v4 = vld [vmem:[#allocation2 + $0x374] sm:$0xf0] }
 0x691   :  { %v6112_v29 = vor.u32 %v7128_v6, %v6111_v51  ;;  %v6159_v63 = vld [vmem:[#allocation2 + $0x290] sm:$0xf]  ;;  %v7122_v5 = vld [vmem:[#allocation2 + $0x204] sm:$0xf0]  ;;  %v6024_v53 = vor.u32 %v7106_v62, %v6023_v31  ;;  %v6151_v21 = vld [vmem:[#allocation2 + $0x280] sm:$0xf] }
 0x692   :  { %4662 = vmatpush.bf16.msra.mxu2 %v5968_v28  ;;  %v6039_v28 = vld [vmem:[#allocation2 + $0x1a0] sm:$0xf]  ;;  %v6271_v44 = vld [vmem:[#allocation2 + $0x370] sm:$0xf]  ;;  %v7138_v46 = vld [vmem:[#allocation2 + $0x284] sm:$0xf0] }
 0x693   :  { %4637 = vmatpush.bf16.msrb.mxu3 %v5832_v15  ;;  %v7126_v15 = vld [vmem:[#allocation2 + $0x224] sm:$0xf0]  ;;  %v6040_v36 = vor.u32 %v7110_v16, %v6039_v28  ;;  %v6272_v35 = vor.u32 %v7168_v4, %v6271_v44  ;;  %v6399_v11 = vld [vmem:[#allocation2 + $0x470] sm:$0xf]  ;;  %v7200_v8 = vld [vmem:[#allocation2 + $0x474] sm:$0xf0]  ;;  %v6152_v40 = vor.u32 %v7138_v46, %v6151_v21 }
 0x694   :  { %4650 = vmatpush.bf16.msrb.mxu1 %v5896_v49  ;;  %v6167_v49 = vld [vmem:[#allocation2 + $0x2a0] sm:$0xf]  ;;  %v6104_v30 = vor.u32 %v7126_v15, %v6103_v22  ;;  %v7166_v55 = vld [vmem:[#allocation2 + $0x364] sm:$0xf0]  ;;  %v6400_v18 = vor.u32 %v7200_v8, %v6399_v11  ;;  %v6255_v33 = vld [vmem:[#allocation2 + $0x350] sm:$0xf] }
 0x695   :  { %v7182_v9 = vld [vmem:[#allocation2 + $0x3e4] sm:$0xf0]  ;;  %v6391_v6 = vld [vmem:[#allocation2 + $0x460] sm:$0xf]  ;;  %v7164_v0 = vld [vmem:[#allocation2 + $0x354] sm:$0xf0] }
 0x696   :  { %4663 = vmatpush.bf16.msra.mxu2 %v5960_v27  ;;  %4638 = vmatmul.bf16.vlgmr.msrb.gmra.mxu3 %v10301_v19  ;;  %v7180_v28 = vld [vmem:[#allocation2 + $0x3d4] sm:$0xf0]  ;;  %v6256_v22 = vor.u32 %v7164_v0, %v6255_v33  ;;  %v6383_v15 = vld [vmem:[#allocation2 + $0x450] sm:$0xf]  ;;  %v7170_v33 = vld [vmem:[#allocation2 + $0x384] sm:$0xf0] }
 0x697   :  { %4669 = vmatpush.bf16.msra.mxu3 %v6080_v25  ;;  %4651 = vmatmul.bf16.vlgmr.msrb.gmra.mxu1 %v10303_v10  ;;  %v7142_v25 = vld [vmem:[#allocation2 + $0x2a4] sm:$0xf0]  ;;  %v7176_v31 = vld [vmem:[#allocation2 + $0x3b4] sm:$0xf0]  ;;  %v6223_v8 = vld [vmem:[#allocation2 + $0x310] sm:$0xf] }
 0x698   :  { %4682 = vmatpush.bf16.msra.mxu1 %v6144_v54  ;;  %v7108_v54 = vld [vmem:[#allocation2 + $0x194] sm:$0xf0]  ;;  %v6168_v27 = vor.u32 %v7142_v25, %v6167_v49  ;;  %v6247_v49 = vld [vmem:[#allocation2 + $0x340] sm:$0xf]  ;;  %v7162_v25 = vld [vmem:[#allocation2 + $0x344] sm:$0xf0] }
 0x699   :  { %4664 = vmatmul.bf16.vlgmr.msra.gmra.mxu2 %v10305_v59  ;;  %v6032_v38 = vor.u32 %v7108_v54, %v6031_v47  ;;  %v7178_v47 = vld [vmem:[#allocation2 + $0x3c4] sm:$0xf0]  ;;  %v7192_v44 = vld [vmem:[#allocation2 + $0x434] sm:$0xf0]  ;;  %v6463_v0 = vld [vmem:[#allocation2 + $0x4f0] sm:$0xf] }
 0x69a   :  { %4695 = vmatpush.bf16.msrb.mxu2 %v6208_v52  ;;  %v7140_v52 = vld [vmem:[#allocation2 + $0x294] sm:$0xf0]  ;;  %s7553_s15 = smov [#allocation4]   ;;  %s5358_s18 = sshll.u32 %s10488_s9, 4  ;;  %vm5349_vm8 = vcmask 25600   ;;  %s5359_s18 = int_to_ptr.hbm [resolvable:$true] %s5358_s18 }
 0x69b   :  { %4670 = vmatpush.bf16.msra.mxu3 %v6072_v50  ;;  %v6096_v50 = vor.u32 %v7124_v14, %v6095_v24  ;;  %v6160_v34 = vor.u32 %v7140_v52, %v6159_v63  ;;  %v6248_v24 = vor.u32 %v7162_v25, %v6247_v49  ;;  %v6375_v14 = vld [vmem:[#allocation2 + $0x440] sm:$0xf]  ;;  %v6239_v63 = vld [vmem:[#allocation2 + $0x330] sm:$0xf]  ;;  %v7160_v52 = vld [vmem:[#allocation2 + $0x334] sm:$0xf0] }
 0x69c   :  { %4683 = vmatpush.bf16.msra.mxu1 %v6136_v48  ;;  %v6087_v48 = vld [vmem:[#allocation2 + $0x200] sm:$0xf]  ;;  %s5356_s16 = sshll.u32 %s7553_s15, 4  ;;  %s5357_s16 = int_to_ptr.vmem [resolvable:$true] %s5356_s16 }
 0x69e   :  { %4696 = vmatpush.bf16.msrb.mxu2 %v6200_v1  ;;  %v6335_v1 = vld [vmem:[#allocation2 + $0x3f0] sm:$0xf] }
 0x69f   :  { %4671 = vmatpush.bf16.msra.mxu3 %v6064_v58  ;;  %v7184_v58 = vld [vmem:[#allocation2 + $0x3f4] sm:$0xf0] }
 0x6a0   :  { %4684 = vmatpush.bf16.msra.mxu1 %v6128_v7  ;;  %v6088_v7 = vor.u32 %v7122_v5, %v6087_v48  ;;  %v6240_v48 = vor.u32 %v7160_v52, %v6239_v63  ;;  %v6367_v5 = vld [vmem:[#allocation2 + $0x430] sm:$0xf]  ;;  %v7230_v63 = vld [vmem:[#allocation2 + $0x564] sm:$0xf0] }
 0x6a1   :  { %v6368_v21 = vor.u32 %v7192_v44, %v6367_v5  ;;  %v6447_v5 = vld [vmem:[#allocation2 + $0x4d0] sm:$0xf]  ;;  %v7212_v44 = vld [vmem:[#allocation2 + $0x4d4] sm:$0xf0] }
 0x6a2   :  { %4697 = vmatpush.bf16.msrb.mxu2 %v6192_v2  ;;  %v6336_v2 = vor.u32 %v7184_v58, %v6335_v1  ;;  %v7158_v1 = vld [vmem:[#allocation2 + $0x324] sm:$0xf0]  ;;  %v6295_v58 = vld [vmem:[#allocation2 + $0x3a0] sm:$0xf] }
 0x6a3   :  { %4672 = vmatpush.bf16.msra.mxu3 %v6056_v43  ;;  %v6263_v43 = vld [vmem:[#allocation2 + $0x360] sm:$0xf] }
 0x6a4   :  { %4685 = vmatpush.bf16.msra.mxu1 %v6120_v12  ;;  %v6327_v12 = vld [vmem:[#allocation2 + $0x3e0] sm:$0xf]  ;;  %v6264_v51 = vor.u32 %v7166_v55, %v6263_v43  ;;  %v6287_v43 = vld [vmem:[#allocation2 + $0x390] sm:$0xf]  ;;  %v7172_v55 = vld [vmem:[#allocation2 + $0x394] sm:$0xf0] }
 0x6a6   :  { %4698 = vmatpush.bf16.msrb.mxu2 %v6184_v17  ;;  %v7198_v17 = vld [vmem:[#allocation2 + $0x464] sm:$0xf0] }
 0x6a7   :  { %4673 = vmatpush.bf16.msra.mxu3 %v6048_v41  ;;  %v6328_v41 = vor.u32 %v7182_v9, %v6327_v12  ;;  %v6392_v16 = vor.u32 %v7198_v17, %v6391_v6  ;;  %v6351_v9 = vld [vmem:[#allocation2 + $0x410] sm:$0xf]  ;;  %v6215_v6 = vld [vmem:[#allocation2 + $0x300] sm:$0xf]  ;;  %v7154_v17 = vld [vmem:[#allocation2 + $0x304] sm:$0xf0] }
 0x6a8   :  { %4686 = vmatpush.bf16.msra.mxu1 %v6112_v29  ;;  %v6319_v29 = vld [vmem:[#allocation2 + $0x3d0] sm:$0xf] }
 0x6aa   :  { %4699 = vmatpush.bf16.msrb.mxu2 %v6176_v45  ;;  %v7196_v45 = vld [vmem:[#allocation2 + $0x454] sm:$0xf0] }
 0x6ab   :  { %4674 = vmatpush.bf16.msra.mxu3 %v6040_v36  ;;  %v6320_v36 = vor.u32 %v7180_v28, %v6319_v29  ;;  %v6384_v54 = vor.u32 %v7196_v45, %v6383_v15  ;;  %v7216_v29 = vld [vmem:[#allocation2 + $0x4f4] sm:$0xf0]  ;;  %v6216_v15 = vor.u32 %v7154_v17, %v6215_v6  ;;  %v6343_v45 = vld [vmem:[#allocation2 + $0x400] sm:$0xf] }
 0x6ac   :  { %4687 = vmatpush.bf16.msra.mxu1 %v6104_v30  ;;  %v6311_v30 = vld [vmem:[#allocation2 + $0x3c0] sm:$0xf]  ;;  %v6464_v25 = vor.u32 %v7216_v29, %v6463_v0  ;;  %v7224_v6 = vld [vmem:[#allocation2 + $0x534] sm:$0xf0] }
 0x6ad   :  { %v7240_v0 = vld [vmem:[#allocation2 + $0x5b4] sm:$0xf0] }
 0x6ae   :  { %4700 = vmatpush.bf16.msrb.mxu2 %v6168_v27  ;;  %v7194_v27 = vld [vmem:[#allocation2 + $0x444] sm:$0xf0] }
 0x6af   :  { %4675 = vmatpush.bf16.msra.mxu3 %v6032_v38  ;;  %v6312_v38 = vor.u32 %v7178_v47, %v6311_v30  ;;  %v6376_v62 = vor.u32 %v7194_v27, %v6375_v14  ;;  %v6591_v30 = vld [vmem:[#allocation2 + $0x5f0] sm:$0xf]  ;;  %v7248_v47 = vld [vmem:[#allocation2 + $0x5f4] sm:$0xf0]  ;;  %v7214_v14 = vld [vmem:[#allocation2 + $0x4e4] sm:$0xf0] }
 0x6b0   :  { %4688 = vmatpush.bf16.msra.mxu1 %v6096_v50  ;;  %v6303_v50 = vld [vmem:[#allocation2 + $0x3b0] sm:$0xf]  ;;  %v6592_v52 = vor.u32 %v7248_v47, %v6591_v30 }
 0x6b1   :  { %v6304_v4 = vor.u32 %v7176_v31, %v6303_v50  ;;  %v6583_v31 = vld [vmem:[#allocation2 + $0x5e0] sm:$0xf]  ;;  %v6415_v47 = vld [vmem:[#allocation2 + $0x490] sm:$0xf] }
 0x6b2   :  { %4701 = vmatpush.bf16.msrb.mxu2 %v6160_v34  ;;  %v6231_v34 = vld [vmem:[#allocation2 + $0x320] sm:$0xf] }
 0x6b3   :  { %4676 = vmatpush.bf16.msra.mxu3 %v6024_v53  ;;  %v7174_v53 = vld [vmem:[#allocation2 + $0x3a4] sm:$0xf0]  ;;  %v6232_v46 = vor.u32 %v7158_v1, %v6231_v34  ;;  %v7228_v34 = vld [vmem:[#allocation2 + $0x554] sm:$0xf0] }
 0x6b4   :  { %4689 = vmatpush.bf16.msra.mxu1 %v6088_v7  ;;  %v6359_v7 = vld [vmem:[#allocation2 + $0x420] sm:$0xf]  ;;  %v6296_v11 = vor.u32 %v7174_v53, %v6295_v58  ;;  %v6448_v58 = vor.u32 %v7212_v44, %v6447_v5  ;;  %v6575_v53 = vld [vmem:[#allocation2 + $0x5d0] sm:$0xf]  ;;  %v7218_v5 = vld [vmem:[#allocation2 + $0x504] sm:$0xf0] }
 0x6b5   :  { %v6655_v44 = vld [vmem:[#allocation2 + $0x670] sm:$0xf] }
 0x6b6   :  { %4702 = vmatpush.bf16.msrb.mxu2 %v6152_v40  ;;  %4677 = vmatmul.bf16.vlgmr.msra.gmra.mxu3 %v10307_v26 }
 0x6b7   :  { %4708 = vmatpush.bf16.msrb.mxu3 %v6272_v35  ;;  %4690 = vmatmul.bf16.vlgmr.msra.gmra.mxu1 %v10309_v39  ;;  %v7190_v35 = vld [vmem:[#allocation2 + $0x424] sm:$0xf0] }
 0x6b8   :  { %4721 = vmatpush.bf16.msrb.mxu1 %v6336_v2  ;;  %v7156_v2 = vld [vmem:[#allocation2 + $0x314] sm:$0xf0]  ;;  %v6360_v40 = vor.u32 %v7190_v35, %v6359_v7  ;;  %v6439_v7 = vld [vmem:[#allocation2 + $0x4c0] sm:$0xf]  ;;  %v7210_v35 = vld [vmem:[#allocation2 + $0x4c4] sm:$0xf0] }
 0x6b9   :  { %4703 = vmatmul.bf16.vlgmr.msrb.gmra.mxu2 %v10311_v3  ;;  %v6224_v12 = vor.u32 %v7156_v2, %v6223_v8  ;;  %v7226_v8 = vld [vmem:[#allocation2 + $0x544] sm:$0xf0] }
 0x6ba   :  { %4734 = vmatpush.bf16.msra.mxu2 %v6400_v18  ;;  %v7188_v18 = vld [vmem:[#allocation2 + $0x414] sm:$0xf0] }
 0x6bb   :  { %4709 = vmatpush.bf16.msrb.mxu3 %v6264_v51  ;;  %v6288_v51 = vor.u32 %v7172_v55, %v6287_v43  ;;  %v6352_v28 = vor.u32 %v7188_v18, %v6351_v9  ;;  %v6440_v43 = vor.u32 %v7210_v35, %v6439_v7  ;;  %v6567_v55 = vld [vmem:[#allocation2 + $0x5c0] sm:$0xf]  ;;  %v6431_v9 = vld [vmem:[#allocation2 + $0x4b0] sm:$0xf]  ;;  %v7208_v18 = vld [vmem:[#allocation2 + $0x4b4] sm:$0xf0] }
 0x6bc   :  { %4722 = vmatpush.bf16.msrb.mxu1 %v6328_v41  ;;  %v6279_v41 = vld [vmem:[#allocation2 + $0x380] sm:$0xf] }
 0x6bd   :  { %v6280_v49 = vor.u32 %v7170_v33, %v6279_v41  ;;  %v6432_v41 = vor.u32 %v7208_v18, %v6431_v9  ;;  %v6559_v33 = vld [vmem:[#allocation2 + $0x5b0] sm:$0xf]  ;;  %v7278_v9 = vld [vmem:[#allocation2 + $0x6e4] sm:$0xf0] }
 0x6be   :  { %4735 = vmatpush.bf16.msra.mxu2 %v6392_v16  ;;  %v6527_v16 = vld [vmem:[#allocation2 + $0x570] sm:$0xf] }
 0x6bf   :  { %4710 = vmatpush.bf16.msrb.mxu3 %v6256_v22  ;;  %v7232_v22 = vld [vmem:[#allocation2 + $0x574] sm:$0xf0] }
 0x6c0   :  { %4723 = vmatpush.bf16.msrb.mxu1 %v6320_v36  ;;  %v7186_v36 = vld [vmem:[#allocation2 + $0x404] sm:$0xf0] }
 0x6c1   :  { %v6344_v27 = vor.u32 %v7186_v36, %v6343_v45  ;;  %v6560_v45 = vor.u32 %v7240_v0, %v6559_v33  ;;  %v6639_v33 = vld [vmem:[#allocation2 + $0x650] sm:$0xf]  ;;  %v7260_v0 = vld [vmem:[#allocation2 + $0x654] sm:$0xf0] }
 0x6c2   :  { %4736 = vmatpush.bf16.msra.mxu2 %v6384_v54  ;;  %v6528_v54 = vor.u32 %v7232_v22, %v6527_v16  ;;  %v7206_v16 = vld [vmem:[#allocation2 + $0x4a4] sm:$0xf0]  ;;  %v6487_v22 = vld [vmem:[#allocation2 + $0x520] sm:$0xf] }
 0x6c3   :  { %4711 = vmatpush.bf16.msrb.mxu3 %v6248_v24  ;;  %v6455_v24 = vld [vmem:[#allocation2 + $0x4e0] sm:$0xf] }
 0x6c4   :  { %4724 = vmatpush.bf16.msrb.mxu1 %v6312_v38  ;;  %v6519_v38 = vld [vmem:[#allocation2 + $0x560] sm:$0xf]  ;;  %v6456_v50 = vor.u32 %v7214_v14, %v6455_v24  ;;  %v6479_v24 = vld [vmem:[#allocation2 + $0x510] sm:$0xf]  ;;  %v7220_v14 = vld [vmem:[#allocation2 + $0x514] sm:$0xf0] }
 0x6c6   :  { %4737 = vmatpush.bf16.msra.mxu2 %v6376_v62  ;;  %v7246_v62 = vld [vmem:[#allocation2 + $0x5e4] sm:$0xf0] }
 0x6c7   :  { %4712 = vmatpush.bf16.msrb.mxu3 %v6240_v48  ;;  %v6520_v48 = vor.u32 %v7230_v63, %v6519_v38  ;;  %v6584_v1 = vor.u32 %v7246_v62, %v6583_v31  ;;  %v6543_v63 = vld [vmem:[#allocation2 + $0x590] sm:$0xf]  ;;  %v6407_v31 = vld [vmem:[#allocation2 + $0x480] sm:$0xf]  ;;  %v7202_v62 = vld [vmem:[#allocation2 + $0x484] sm:$0xf0] }
 0x6c8   :  { %4725 = vmatpush.bf16.msrb.mxu1 %v6304_v4  ;;  %v6511_v4 = vld [vmem:[#allocation2 + $0x550] sm:$0xf] }
 0x6ca   :  { %4738 = vmatpush.bf16.msra.mxu2 %v6368_v21  ;;  %v7244_v21 = vld [vmem:[#allocation2 + $0x5d4] sm:$0xf0] }
 0x6cb   :  { %4713 = vmatpush.bf16.msrb.mxu3 %v6232_v46  ;;  %v6512_v46 = vor.u32 %v7228_v34, %v6511_v4  ;;  %v6576_v2 = vor.u32 %v7244_v21, %v6575_v53  ;;  %v7264_v4 = vld [vmem:[#allocation2 + $0x674] sm:$0xf0]  ;;  %v6408_v53 = vor.u32 %v7202_v62, %v6407_v31  ;;  %v6535_v21 = vld [vmem:[#allocation2 + $0x580] sm:$0xf] }
 0x6cc   :  { %4726 = vmatpush.bf16.msrb.mxu1 %v6296_v11  ;;  %v6503_v11 = vld [vmem:[#allocation2 + $0x540] sm:$0xf]  ;;  %v6656_v35 = vor.u32 %v7264_v4, %v6655_v44  ;;  %v7272_v31 = vld [vmem:[#allocation2 + $0x6b4] sm:$0xf0] }
 0x6cd   :  { %v7288_v44 = vld [vmem:[#allocation2 + $0x734] sm:$0xf0] }
 0x6ce   :  { %4739 = vmatpush.bf16.msra.mxu2 %v6360_v40  ;;  %v7242_v40 = vld [vmem:[#allocation2 + $0x5c4] sm:$0xf0] }
 0x6cf   :  { %4714 = vmatpush.bf16.msrb.mxu3 %v6224_v12  ;;  %v6504_v12 = vor.u32 %v7226_v8, %v6503_v11  ;;  %v6568_v17 = vor.u32 %v7242_v40, %v6567_v55  ;;  %v6783_v11 = vld [vmem:[#allocation2 + $0x770] sm:$0xf]  ;;  %v7296_v8 = vld [vmem:[#allocation2 + $0x774] sm:$0xf0]  ;;  %v7262_v55 = vld [vmem:[#allocation2 + $0x664] sm:$0xf0] }
 0x6d0   :  { %4727 = vmatpush.bf16.msrb.mxu1 %v6288_v51  ;;  %v6495_v51 = vld [vmem:[#allocation2 + $0x530] sm:$0xf]  ;;  %v6784_v18 = vor.u32 %v7296_v8, %v6783_v11 }
 0x6d1   :  { %v6496_v29 = vor.u32 %v7224_v6, %v6495_v51  ;;  %v6775_v6 = vld [vmem:[#allocation2 + $0x760] sm:$0xf]  ;;  %v6607_v8 = vld [vmem:[#allocation2 + $0x610] sm:$0xf] }
 0x6d2   :  { %4740 = vmatpush.bf16.msra.mxu2 %v6352_v28  ;;  %v6423_v28 = vld [vmem:[#allocation2 + $0x4a0] sm:$0xf] }
 0x6d3   :  { %4715 = vmatpush.bf16.msrb.mxu3 %v6216_v15  ;;  %v7222_v15 = vld [vmem:[#allocation2 + $0x524] sm:$0xf0]  ;;  %v6424_v36 = vor.u32 %v7206_v16, %v6423_v28  ;;  %v7276_v28 = vld [vmem:[#allocation2 + $0x6d4] sm:$0xf0] }
 0x6d4   :  { %4728 = vmatpush.bf16.msrb.mxu1 %v6280_v49  ;;  %v6551_v49 = vld [vmem:[#allocation2 + $0x5a0] sm:$0xf]  ;;  %v6488_v30 = vor.u32 %v7222_v15, %v6487_v22  ;;  %v6640_v22 = vor.u32 %v7260_v0, %v6639_v33  ;;  %v6767_v15 = vld [vmem:[#allocation2 + $0x750] sm:$0xf]  ;;  %v7266_v33 = vld [vmem:[#allocation2 + $0x684] sm:$0xf0] }
 0x6d5   :  { %v6847_v0 = vld [vmem:[#allocation2 + $0x7f0] sm:$0xf] }
 0x6d6   :  { %4716 = vmatmul.bf16.vlgmr.msrb.gmra.mxu3 %v10313_v13  ;;  %4741 = vmatpush.bf16.msra.mxu2 %v6344_v27 }
 0x6d7   :  { %4747 = vmatpush.bf16.msra.mxu3 %v6464_v25  ;;  %4729 = vmatmul.bf16.vlgmr.msrb.gmra.mxu1 %v10315_v23  ;;  %v7238_v25 = vld [vmem:[#allocation2 + $0x5a4] sm:$0xf0] }
 0x6d8   :  { %4760 = vmatpush.bf16.msra.mxu1 %v6528_v54  ;;  %v7204_v54 = vld [vmem:[#allocation2 + $0x494] sm:$0xf0]  ;;  %v6552_v27 = vor.u32 %v7238_v25, %v6551_v49  ;;  %v6631_v49 = vld [vmem:[#allocation2 + $0x640] sm:$0xf]  ;;  %v7258_v25 = vld [vmem:[#allocation2 + $0x644] sm:$0xf0] }
 0x6d9   :  { %4742 = vmatmul.bf16.vlgmr.msra.gmra.mxu2 %v10317_v56  ;;  %v6416_v38 = vor.u32 %v7204_v54, %v6415_v47  ;;  %v7274_v47 = vld [vmem:[#allocation2 + $0x6c4] sm:$0xf0] }
 0x6da   :  { %4773 = vmatpush.bf16.msrb.mxu2 %v6592_v52  ;;  %v7236_v52 = vld [vmem:[#allocation2 + $0x594] sm:$0xf0] }
 0x6db   :  { %4748 = vmatpush.bf16.msra.mxu3 %v6456_v50  ;;  %v6480_v50 = vor.u32 %v7220_v14, %v6479_v24  ;;  %v6544_v34 = vor.u32 %v7236_v52, %v6543_v63  ;;  %v6632_v24 = vor.u32 %v7258_v25, %v6631_v49  ;;  %v6759_v14 = vld [vmem:[#allocation2 + $0x740] sm:$0xf]  ;;  %v6623_v63 = vld [vmem:[#allocation2 + $0x630] sm:$0xf]  ;;  %v7256_v52 = vld [vmem:[#allocation2 + $0x634] sm:$0xf0] }
 0x6dc   :  { %4761 = vmatpush.bf16.msra.mxu1 %v6520_v48  ;;  %v6471_v48 = vld [vmem:[#allocation2 + $0x500] sm:$0xf] }
 0x6dd   :  { %v6472_v7 = vor.u32 %v7218_v5, %v6471_v48  ;;  %v6624_v48 = vor.u32 %v7256_v52, %v6623_v63  ;;  %v6751_v5 = vld [vmem:[#allocation2 + $0x730] sm:$0xf]  ;;  %v5881_v63 = vld [vmem:[#allocation2 + $0x68] sm:$0xf0] }
 0x6de   :  { %4774 = vmatpush.bf16.msrb.mxu2 %v6584_v1  ;;  %v6719_v1 = vld [vmem:[#allocation2 + $0x6f0] sm:$0xf] }
 0x6df   :  { %4749 = vmatpush.bf16.msra.mxu3 %v6448_v58  ;;  %v7280_v58 = vld [vmem:[#allocation2 + $0x6f4] sm:$0xf0] }
 0x6e0   :  { %4762 = vmatpush.bf16.msra.mxu1 %v6512_v46  ;;  %v7234_v46 = vld [vmem:[#allocation2 + $0x584] sm:$0xf0] }
 0x6e1   :  { %v6536_v40 = vor.u32 %v7234_v46, %v6535_v21  ;;  %v6752_v21 = vor.u32 %v7288_v44, %v6751_v5  ;;  %v6831_v5 = vld [vmem:[#allocation2 + $0x7d0] sm:$0xf]  ;;  %v7308_v44 = vld [vmem:[#allocation2 + $0x7d4] sm:$0xf0] }
 0x6e2   :  { %4775 = vmatpush.bf16.msrb.mxu2 %v6576_v2  ;;  %v6720_v2 = vor.u32 %v7280_v58, %v6719_v1  ;;  %v7254_v1 = vld [vmem:[#allocation2 + $0x624] sm:$0xf0]  ;;  %v6679_v58 = vld [vmem:[#allocation2 + $0x6a0] sm:$0xf] }
 0x6e3   :  { %4750 = vmatpush.bf16.msra.mxu3 %v6440_v43  ;;  %v6647_v43 = vld [vmem:[#allocation2 + $0x660] sm:$0xf] }
 0x6e4   :  { %4763 = vmatpush.bf16.msra.mxu1 %v6504_v12  ;;  %v6711_v12 = vld [vmem:[#allocation2 + $0x6e0] sm:$0xf]  ;;  %v6648_v51 = vor.u32 %v7262_v55, %v6647_v43  ;;  %v6671_v43 = vld [vmem:[#allocation2 + $0x690] sm:$0xf]  ;;  %v7268_v55 = vld [vmem:[#allocation2 + $0x694] sm:$0xf0] }
 0x6e6   :  { %4776 = vmatpush.bf16.msrb.mxu2 %v6568_v17  ;;  %v7294_v17 = vld [vmem:[#allocation2 + $0x764] sm:$0xf0] }
 0x6e7   :  { %4751 = vmatpush.bf16.msra.mxu3 %v6432_v41  ;;  %v6712_v41 = vor.u32 %v7278_v9, %v6711_v12  ;;  %v6776_v16 = vor.u32 %v7294_v17, %v6775_v6  ;;  %v6735_v9 = vld [vmem:[#allocation2 + $0x710] sm:$0xf]  ;;  %v6599_v6 = vld [vmem:[#allocation2 + $0x600] sm:$0xf]  ;;  %v7250_v17 = vld [vmem:[#allocation2 + $0x604] sm:$0xf0] }
 0x6e8   :  { %4764 = vmatpush.bf16.msra.mxu1 %v6496_v29  ;;  %v6703_v29 = vld [vmem:[#allocation2 + $0x6d0] sm:$0xf] }
 0x6ea   :  { %4777 = vmatpush.bf16.msrb.mxu2 %v6560_v45  ;;  %v7292_v45 = vld [vmem:[#allocation2 + $0x754] sm:$0xf0] }
 0x6eb   :  { %4752 = vmatpush.bf16.msra.mxu3 %v6424_v36  ;;  %v6704_v36 = vor.u32 %v7276_v28, %v6703_v29  ;;  %v6768_v54 = vor.u32 %v7292_v45, %v6767_v15  ;;  %v7312_v29 = vld [vmem:[#allocation2 + $0x7f4] sm:$0xf0]  ;;  %v6600_v15 = vor.u32 %v7250_v17, %v6599_v6  ;;  %v6727_v45 = vld [vmem:[#allocation2 + $0x700] sm:$0xf]  ;;  %v5857_v6 = vld [vmem:[#allocation2 + $0x38] sm:$0xf0] }
 0x6ec   :  { %4765 = vmatpush.bf16.msra.mxu1 %v6488_v30  ;;  %v6695_v30 = vld [vmem:[#allocation2 + $0x6c0] sm:$0xf]  ;;  %v6848_v25 = vor.u32 %v7312_v29, %v6847_v0  ;;  %v7079_v0 = vld [vmem:[#allocation2 + $0xb4] sm:$0xf]  ;;  %v5921_v29 = vld [vmem:[#allocation2 + $0xb8] sm:$0xf0] }
 0x6ee   :  { %4778 = vmatpush.bf16.msrb.mxu2 %v6552_v27  ;;  %v7290_v27 = vld [vmem:[#allocation2 + $0x744] sm:$0xf0] }
 0x6ef   :  { %4753 = vmatpush.bf16.msra.mxu3 %v6416_v38  ;;  %v6696_v38 = vor.u32 %v7274_v47, %v6695_v30  ;;  %v6760_v62 = vor.u32 %v7290_v27, %v6759_v14  ;;  %v7087_v30 = vld [vmem:[#allocation2 + $0xf4] sm:$0xf]  ;;  %v5953_v47 = vld [vmem:[#allocation2 + $0xf8] sm:$0xf0]  ;;  %v7310_v14 = vld [vmem:[#allocation2 + $0x7e4] sm:$0xf0] }
 0x6f0   :  { %4766 = vmatpush.bf16.msra.mxu1 %v6480_v50  ;;  %v6687_v50 = vld [vmem:[#allocation2 + $0x6b0] sm:$0xf]  ;;  %v5956_v52 = vor.u32 %v7087_v30, %v5953_v47  ;;  %v7077_v47 = vld [vmem:[#allocation2 + $0xa4] sm:$0xf] }
 0x6f1   :  { %v6688_v4 = vor.u32 %v7272_v31, %v6687_v50  ;;  %v7085_v31 = vld [vmem:[#allocation2 + $0xe4] sm:$0xf] }
 0x6f2   :  { %4779 = vmatpush.bf16.msrb.mxu2 %v6544_v34  ;;  %v6615_v34 = vld [vmem:[#allocation2 + $0x620] sm:$0xf] }
 0x6f3   :  { %4754 = vmatpush.bf16.msra.mxu3 %v6408_v53  ;;  %v7270_v53 = vld [vmem:[#allocation2 + $0x6a4] sm:$0xf0]  ;;  %v6616_v46 = vor.u32 %v7254_v1, %v6615_v34  ;;  %v5873_v34 = vld [vmem:[#allocation2 + $0x58] sm:$0xf0] }
 0x6f4   :  { %4767 = vmatpush.bf16.msra.mxu1 %v6472_v7  ;;  %v6743_v7 = vld [vmem:[#allocation2 + $0x720] sm:$0xf]  ;;  %v6680_v11 = vor.u32 %v7270_v53, %v6679_v58  ;;  %v6832_v58 = vor.u32 %v7308_v44, %v6831_v5  ;;  %v7083_v53 = vld [vmem:[#allocation2 + $0xd4] sm:$0xf]  ;;  %v5905_v5 = vld [vmem:[#allocation2 + $0x98] sm:$0xf0] }
 0x6f6   :  { %4755 = vmatmul.bf16.vlgmr.msra.gmra.mxu3 %v10319_v20  ;;  %4780 = vmatpush.bf16.msrb.mxu2 %v6536_v40 }
 0x6f7   :  { %4786 = vmatpush.bf16.msrb.mxu3 %v6656_v35  ;;  %4768 = vmatmul.bf16.vlgmr.msra.gmra.mxu1 %v10321_v57  ;;  %v7286_v35 = vld [vmem:[#allocation2 + $0x724] sm:$0xf0] }
 0x6f8   :  { %4799 = vmatpush.bf16.msrb.mxu1 %v6720_v2  ;;  %v7252_v2 = vld [vmem:[#allocation2 + $0x614] sm:$0xf0]  ;;  %v6744_v40 = vor.u32 %v7286_v35, %v6743_v7  ;;  %v6823_v7 = vld [vmem:[#allocation2 + $0x7c0] sm:$0xf]  ;;  %v7306_v35 = vld [vmem:[#allocation2 + $0x7c4] sm:$0xf0] }
 0x6f9   :  { %4781 = vmatmul.bf16.vlgmr.msrb.gmra.mxu2 %v10323_v42  ;;  %v6608_v12 = vor.u32 %v7252_v2, %v6607_v8  ;;  %v5865_v8 = vld [vmem:[#allocation2 + $0x48] sm:$0xf0] }
 0x6fa   :  { %4812 = vmatpush.bf16.msra.mxu2 %v6784_v18  ;;  %v7284_v18 = vld [vmem:[#allocation2 + $0x714] sm:$0xf0] }
 0x6fb   :  { %4787 = vmatpush.bf16.msrb.mxu3 %v6648_v51  ;;  %v6672_v51 = vor.u32 %v7268_v55, %v6671_v43  ;;  %v6736_v28 = vor.u32 %v7284_v18, %v6735_v9  ;;  %v6824_v43 = vor.u32 %v7306_v35, %v6823_v7  ;;  %v7081_v55 = vld [vmem:[#allocation2 + $0xc4] sm:$0xf]  ;;  %v6815_v9 = vld [vmem:[#allocation2 + $0x7b0] sm:$0xf]  ;;  %v7304_v18 = vld [vmem:[#allocation2 + $0x7b4] sm:$0xf0] }
 0x6fc   :  { %4800 = vmatpush.bf16.msrb.mxu1 %v6712_v41  ;;  %v6663_v41 = vld [vmem:[#allocation2 + $0x680] sm:$0xf]  ;;  %v7103_v7 = vld [vmem:[#allocation2 + $0x174] sm:$0xf]  ;;  %v6017_v35 = vld [vmem:[#allocation2 + $0x178] sm:$0xf0] }
 0x6fd   :  { %v6664_v49 = vor.u32 %v7266_v33, %v6663_v41  ;;  %v3344_v41 = vld [vmem:[%s10483_s4] sm:$0x3]  ;;  %v6816_v33 = vor.u32 %v7304_v18, %v6815_v9  ;;  %v6020_v18 = vor.u32 %v7103_v7, %v6017_v35  ;;  %v7127_v35 = vld [vmem:[#allocation2 + $0x234] sm:$0xf] }
 0x6fe   :  { %4813 = vmatpush.bf16.msra.mxu2 %v6776_v16  ;;  %v7071_v16 = vld [vmem:[#allocation2 + $0x74] sm:$0xf] }
 0x6ff   :  { %4788 = vmatpush.bf16.msrb.mxu3 %v6640_v22  ;;  %v5889_v22 = vld [vmem:[#allocation2 + $0x78] sm:$0xf0] }
 0x700   :  { %4801 = vmatpush.bf16.msrb.mxu1 %v6704_v36  ;;  %v7282_v36 = vld [vmem:[#allocation2 + $0x704] sm:$0xf0] }
 0x701   :  { %v6728_v27 = vor.u32 %v7282_v36, %v6727_v45  ;;  %v7061_v45 = vld [vmem:[#allocation2 + $0x24] sm:$0xf]  ;;  %v5849_v36 = vld [vmem:[#allocation2 + $0x28] sm:$0xf0] }
 0x702   :  { %4814 = vmatpush.bf16.msra.mxu2 %v6768_v54  ;;  %v5892_v54 = vor.u32 %v7071_v16, %v5889_v22  ;;  %v6807_v22 = vld [vmem:[#allocation2 + $0x7a0] sm:$0xf] }
 0x703   :  { %4789 = vmatpush.bf16.msrb.mxu3 %v6632_v24  ;;  %v6839_v24 = vld [vmem:[#allocation2 + $0x7e0] sm:$0xf] }
 0x704   :  { %4802 = vmatpush.bf16.msrb.mxu1 %v6696_v38  ;;  %v7069_v38 = vld [vmem:[#allocation2 + $0x64] sm:$0xf]  ;;  %v6840_v50 = vor.u32 %v7310_v14, %v6839_v24  ;;  %v5852_v24 = vor.u32 %v7061_v45, %v5849_v36  ;;  %v6799_v14 = vld [vmem:[#allocation2 + $0x790] sm:$0xf] }
 0x705   :  { %v7133_v36 = vld [vmem:[#allocation2 + $0x264] sm:$0xf] }
 0x706   :  { %4815 = vmatpush.bf16.msra.mxu2 %v6760_v62  ;;  %v5945_v62 = vld [vmem:[#allocation2 + $0xe8] sm:$0xf0] }
 0x707   :  { %4790 = vmatpush.bf16.msrb.mxu3 %v6624_v48  ;;  %v5884_v48 = vor.u32 %v7069_v38, %v5881_v63  ;;  %v5948_v1 = vor.u32 %v7085_v31, %v5945_v62  ;;  %v7059_v63 = vld [vmem:[#allocation2 + $0x14] sm:$0xf] }
 0x708   :  { %4803 = vmatpush.bf16.msrb.mxu1 %v6688_v4  ;;  %v7067_v4 = vld [vmem:[#allocation2 + $0x54] sm:$0xf] }
 0x70a   :  { %4816 = vmatpush.bf16.msra.mxu2 %v6752_v21  ;;  %v5937_v21 = vld [vmem:[#allocation2 + $0xd8] sm:$0xf0] }
 0x70b   :  { %4791 = vmatpush.bf16.msrb.mxu3 %v6616_v46  ;;  %v5876_v46 = vor.u32 %v7067_v4, %v5873_v34  ;;  %v5940_v2 = vor.u32 %v7083_v53, %v5937_v21  ;;  %v7298_v53 = vld [vmem:[#allocation2 + $0x784] sm:$0xf0]  ;;  %v7057_v21 = vld [vmem:[#allocation2 + $0x4] sm:$0xf] }
 0x70c   :  { %4804 = vmatpush.bf16.msrb.mxu1 %v6680_v11  ;;  %v7065_v11 = vld [vmem:[#allocation2 + $0x44] sm:$0xf] }
 0x70e   :  { %4817 = vmatpush.bf16.msra.mxu2 %v6744_v40  ;;  %v5929_v40 = vld [vmem:[#allocation2 + $0xc8] sm:$0xf0] }
 0x70f   :  { %4792 = vmatpush.bf16.msrb.mxu3 %v6608_v12  ;;  %v5868_v12 = vor.u32 %v7065_v11, %v5865_v8  ;;  %v5932_v17 = vor.u32 %v7081_v55, %v5929_v40  ;;  %v7073_v40 = vld [vmem:[#allocation2 + $0x84] sm:$0xf] }
 0x710   :  { %4805 = vmatpush.bf16.msrb.mxu1 %v6672_v51  ;;  %v7063_v51 = vld [vmem:[#allocation2 + $0x34] sm:$0xf] }
 0x711   :  { %v5860_v16 = vor.u32 %v7063_v51, %v5857_v6  ;;  %v7135_v51 = vld [vmem:[#allocation2 + $0x274] sm:$0xf]  ;;  %v6145_v6 = vld [vmem:[#allocation2 + $0x278] sm:$0xf0] }
 0x712   :  { %4818 = vmatpush.bf16.msra.mxu2 %v6736_v28 }
 0x713   :  { %4793 = vmatpush.bf16.msrb.mxu3 %v6600_v15  ;;  %v7302_v15 = vld [vmem:[#allocation2 + $0x7a4] sm:$0xf0] }
 0x714   :  { %4806 = vmatpush.bf16.msrb.mxu1 %v6664_v49  ;;  %v4652_v28 = vpop.f32.mrf.mxu1  ;;  %v3346_v49 = vperm.slane %v3344_v41, 0  ;;  %v6808_v30 = vor.u32 %v7302_v15, %v6807_v22  ;;  %v6148_v22 = vor.u32 %v7135_v51, %v6145_v6  ;;  %v7125_v51 = vld [vmem:[#allocation2 + $0x224] sm:$0xf]  ;;  %v6105_v6 = vld [vmem:[#allocation2 + $0x228] sm:$0xf0] }
 0x716   :  { %4794 = vmatmul.bf16.vlgmr.msrb.gmra.mxu3 %v10325_v32  ;;  %4819 = vmatpush.bf16.msra.mxu2 %v6728_v27  ;;  %v7300_v27 = vld [vmem:[#allocation2 + $0x794] sm:$0xf0] }
 0x717   :  { %4825 = vmatpush.bf16.msra.mxu3 %v6848_v25  ;;  %4807 = vmatmul.bf16.vlgmr.msrb.gmra.mxu1 %v10327_v61  ;;  %v5924_v25 = vor.u32 %v7079_v0, %v5921_v29  ;;  %v6800_v62 = vor.u32 %v7300_v27, %v6799_v14  ;;  %v6009_v0 = vld [vmem:[#allocation2 + $0x168] sm:$0xf0] }
 0x718   :  { %4838 = vmatpush.bf16.msra.mxu1 %v5892_v54  ;;  %v5913_v54 = vld [vmem:[#allocation2 + $0xa8] sm:$0xf0] }
 0x719   :  { %4820 = vmatmul.bf16.vlgmr.msra.gmra.mxu2 %v10329_v37  ;;  %v4639_v38 = vpop.f32.mrf.mxu3  ;;  %v5916_v31 = vor.u32 %v7077_v47, %v5913_v54  ;;  %v6001_v47 = vld [vmem:[#allocation2 + $0x158] sm:$0xf0]  ;;  %v7115_v54 = vld [vmem:[#allocation2 + $0x1d4] sm:$0xf] }
 0x71a   :  { %4851 = vmatpush.bf16.msrb.mxu2 %v5956_v52  ;;  %v5841_v52 = vld [vmem:[#allocation2 + $0x18] sm:$0xf0] }
 0x71b   :  { %4826 = vmatpush.bf16.msra.mxu3 %v6840_v50  ;;  %v4640_v50 = vadd.f32 %v4639_v38, %v3346_v49  ;;  %v6137_v49 = vld [vmem:[#allocation2 + $0x268] sm:$0xf0]  ;;  %v7131_v38 = vld [vmem:[#allocation2 + $0x254] sm:$0xf] }
 0x71c   :  { %4839 = vmatpush.bf16.msra.mxu1 %v5884_v48  ;;  %v7075_v48 = vld [vmem:[#allocation2 + $0x94] sm:$0xf]  ;;  %v4665_v4 = vpop.f32.mrf.mxu2  ;;  %v4654_v34 = vpop.f32.mrf.mxu1  ;;  %v6140_v14 = vor.u32 %v7133_v36, %v6137_v49 }
 0x71d   :  { %v4653_v44 = vadd.f32 %v4652_v28, %v4640_v50  ;;  %v5908_v8 = vor.u32 %v7075_v48, %v5905_v5  ;;  %v7117_v28 = vld [vmem:[#allocation2 + $0x1e4] sm:$0xf]  ;;  %v6057_v48 = vld [vmem:[#allocation2 + $0x1c8] sm:$0xf0]  ;;  %v7123_v49 = vld [vmem:[#allocation2 + $0x214] sm:$0xf] }
 0x71e   :  { %4852 = vmatpush.bf16.msrb.mxu2 %v5948_v1  ;;  %v5844_v1 = vor.u32 %v7059_v63, %v5841_v52  ;;  %v6129_v63 = vld [vmem:[#allocation2 + $0x258] sm:$0xf0]  ;;  %v7097_v50 = vld [vmem:[#allocation2 + $0x144] sm:$0xf]  ;;  %v6121_v34 = vld [vmem:[#allocation2 + $0x248] sm:$0xf0] }
 0x71f   :  { %4827 = vmatpush.bf16.msra.mxu3 %v6832_v58  ;;  %v6791_v58 = vld [vmem:[#allocation2 + $0x780] sm:$0xf]  ;;  %v10351_v11 = vadd.f32 %v4665_v4, %v4653_v44  ;;  %v6132_v5 = vor.u32 %v7131_v38, %v6129_v63  ;;  %v7129_v4 = vld [vmem:[#allocation2 + $0x244] sm:$0xf]  ;;  %v6025_v38 = vld [vmem:[#allocation2 + $0x188] sm:$0xf0] }
 0x720   :  { %4840 = vmatpush.bf16.msra.mxu1 %v5876_v46  ;;  %v5833_v46 = vld [vmem:[#allocation2 + $0x8] sm:$0xf0]  ;;  %v6792_v55 = vor.u32 %v7298_v53, %v6791_v58  ;;  %v5985_v58 = vld [vmem:[#allocation2 + $0x138] sm:$0xf0]  ;;  %v7111_v53 = vld [vmem:[#allocation2 + $0x1b4] sm:$0xf] }
 0x721   :  { %v5836_v9 = vor.u32 %v7057_v21, %v5833_v46  ;;  %v6049_v21 = vld [vmem:[#allocation2 + $0x1b8] sm:$0xf0]  ;;  %v6124_v46 = vor.u32 %v7129_v4, %v6121_v34  ;;  %v7183_v34 = vld [vmem:[#allocation2 + $0x3f4] sm:$0xf] }
 0x722   :  { %4853 = vmatpush.bf16.msrb.mxu2 %v5940_v2  ;;  %v7119_v2 = vld [vmem:[#allocation2 + $0x1f4] sm:$0xf]  ;;  %v6209_v63 = vld [vmem:[#allocation2 + $0x2f8] sm:$0xf0] }
 0x723   :  { %4828 = vmatpush.bf16.msra.mxu3 %v6824_v43  ;;  %v6081_v43 = vld [vmem:[#allocation2 + $0x1f8] sm:$0xf0] }
 0x724   :  { %4841 = vmatpush.bf16.msra.mxu1 %v5868_v12  ;;  %v5897_v12 = vld [vmem:[#allocation2 + $0x88] sm:$0xf0]  ;;  %v6084_v41 = vor.u32 %v7119_v2, %v6081_v43  ;;  %v4667_v15 = vpop.f32.mrf.mxu2  ;;  %v6052_v2 = vor.u32 %v7111_v53, %v6049_v21  ;;  %v7093_v43 = vld [vmem:[#allocation2 + $0x124] sm:$0xf] }
 0x725   :  { %v5900_v29 = vor.u32 %v7073_v40, %v5897_v12  ;;  %v7109_v40 = vld [vmem:[#allocation2 + $0x1a4] sm:$0xf]  ;;  %v6041_v12 = vld [vmem:[#allocation2 + $0x1a8] sm:$0xf0] }
 0x726   :  { %4854 = vmatpush.bf16.msrb.mxu2 %v5932_v17  ;;  %v4641_v17 = vpop.f32.mrf.mxu3  ;;  %v7149_v53 = vld [vmem:[#allocation2 + $0x2e4] sm:$0xf]  ;;  %v6201_v21 = vld [vmem:[#allocation2 + $0x2e8] sm:$0xf0] }
 0x727   :  { %4829 = vmatpush.bf16.msra.mxu3 %v6816_v33  ;;  %v7101_v33 = vld [vmem:[#allocation2 + $0x164] sm:$0xf]  ;;  %v6044_v17 = vor.u32 %v7109_v40, %v6041_v12  ;;  %v7147_v12 = vld [vmem:[#allocation2 + $0x2d4] sm:$0xf] }
 0x728   :  { %4842 = vmatpush.bf16.msra.mxu1 %v5860_v16  ;;  %v6073_v16 = vld [vmem:[#allocation2 + $0x1e8] sm:$0xf0]  ;;  %v6012_v45 = vor.u32 %v7101_v33, %v6009_v0  ;;  %v7091_v33 = vld [vmem:[#allocation2 + $0x114] sm:$0xf]  ;;  %v5969_v0 = vld [vmem:[#allocation2 + $0x118] sm:$0xf0] }
 0x72a   :  { %4855 = vmatpush.bf16.msrb.mxu2 %v5924_v25  ;;  %v6076_v25 = vor.u32 %v7117_v28, %v6073_v16  ;;  %v7107_v28 = vld [vmem:[#allocation2 + $0x194] sm:$0xf]  ;;  %v6033_v16 = vld [vmem:[#allocation2 + $0x198] sm:$0xf0] }
 0x72b   :  { %4830 = vmatpush.bf16.msra.mxu3 %v6808_v30  ;;  %v7099_v30 = vld [vmem:[#allocation2 + $0x154] sm:$0xf] }
 0x72c   :  { %4843 = vmatpush.bf16.msra.mxu1 %v5852_v24  ;;  %v6065_v24 = vld [vmem:[#allocation2 + $0x1d8] sm:$0xf0]  ;;  %v6004_v27 = vor.u32 %v7099_v30, %v6001_v47  ;;  %v6036_v47 = vor.u32 %v7107_v28, %v6033_v16  ;;  %v6185_v28 = vld [vmem:[#allocation2 + $0x2c8] sm:$0xf0]  ;;  %v7161_v16 = vld [vmem:[#allocation2 + $0x344] sm:$0xf] }
 0x72d   :  { %v6068_v52 = vor.u32 %v7115_v54, %v6065_v24  ;;  %v7089_v54 = vld [vmem:[#allocation2 + $0x104] sm:$0xf]  ;;  %v5961_v24 = vld [vmem:[#allocation2 + $0x108] sm:$0xf0] }
 0x72e   :  { %4856 = vmatpush.bf16.msrb.mxu2 %v5916_v31  ;;  %v5993_v31 = vld [vmem:[#allocation2 + $0x148] sm:$0xf0] }
 0x72f   :  { %4831 = vmatpush.bf16.msra.mxu3 %v6800_v62  ;;  %v7113_v62 = vld [vmem:[#allocation2 + $0x1c4] sm:$0xf]  ;;  %v5996_v44 = vor.u32 %v7097_v50, %v5993_v31  ;;  %v7167_v50 = vld [vmem:[#allocation2 + $0x374] sm:$0xf]  ;;  %v6273_v31 = vld [vmem:[#allocation2 + $0x378] sm:$0xf0] }
 0x730   :  { %4844 = vmatpush.bf16.msra.mxu1 %v5844_v1  ;;  %v7095_v1 = vld [vmem:[#allocation2 + $0x134] sm:$0xf] }
 0x731   :  { %v5988_v7 = vor.u32 %v7095_v1, %v5985_v58  ;;  %v6276_v58 = vor.u32 %v7167_v50, %v6273_v31  ;;  %v7157_v50 = vld [vmem:[#allocation2 + $0x324] sm:$0xf]  ;;  %v6233_v31 = vld [vmem:[#allocation2 + $0x328] sm:$0xf0] }
 0x732   :  { %4857 = vmatpush.bf16.msrb.mxu2 %v5908_v8 }
 0x733   :  { %4832 = vmatpush.bf16.msra.mxu3 %v6792_v55  ;;  %v5977_v55 = vld [vmem:[#allocation2 + $0x128] sm:$0xf0] }
 0x734   :  { %4845 = vmatpush.bf16.msra.mxu1 %v5836_v9  ;;  %v4691_v8 = vpop.f32.mrf.mxu1 }
 0x736   :  { %4833 = vmatmul.bf16.vlgmr.msra.gmra.mxu3 %v10331_v60  ;;  %4858 = vmatpush.bf16.msrb.mxu2 %v5900_v29 }
 0x737   :  { %4864 = vmatpush.bf16.msrb.mxu3 %v6020_v18  ;;  %4846 = vmatmul.bf16.vlgmr.msra.gmra.mxu1 %v10301_v19  ;;  %v6060_v19 = vor.u32 %v7113_v62, %v6057_v48  ;;  %v5980_v18 = vor.u32 %v7093_v43, %v5977_v55  ;;  %v5964_v62 = vor.u32 %v7089_v54, %v5961_v24  ;;  %v7121_v48 = vld [vmem:[#allocation2 + $0x204] sm:$0xf]  ;;  %v6329_v55 = vld [vmem:[#allocation2 + $0x3e8] sm:$0xf0] }
 0x738   :  { %4877 = vmatpush.bf16.msrb.mxu1 %v6084_v41  ;;  %v7181_v43 = vld [vmem:[#allocation2 + $0x3e4] sm:$0xf] }
 0x739   :  { %4859 = vmatmul.bf16.vlgmr.msrb.gmra.mxu2 %v10303_v10  ;;  %v6113_v10 = vld [vmem:[#allocation2 + $0x238] sm:$0xf0]  ;;  %v4678_v41 = vpop.f32.mrf.mxu3 }
 0x73a   :  { %4890 = vmatpush.bf16.msra.mxu2 %v6148_v22  ;;  %v6116_v9 = vor.u32 %v7127_v35, %v6113_v10  ;;  %v4679_v29 = vadd.f32 %v4678_v41, %v10351_v11  ;;  %v6108_v22 = vor.u32 %v7125_v51, %v6105_v6  ;;  %v7151_v11 = vld [vmem:[#allocation2 + $0x2f4] sm:$0xf]  ;;  %v6265_v35 = vld [vmem:[#allocation2 + $0x368] sm:$0xf0]  ;;  %v6257_v51 = vld [vmem:[#allocation2 + $0x358] sm:$0xf0]  ;;  %v6332_v6 = vor.u32 %v7181_v43, %v6329_v55 }
 0x73b   :  { %4865 = vmatpush.bf16.msrb.mxu3 %v6012_v45  ;;  %v5972_v45 = vor.u32 %v7091_v33, %v5969_v0  ;;  %v6212_v4 = vor.u32 %v7151_v11, %v6209_v63  ;;  %v7179_v41 = vld [vmem:[#allocation2 + $0x3d4] sm:$0xf]  ;;  %v6321_v33 = vld [vmem:[#allocation2 + $0x3d8] sm:$0xf0]  ;;  %v7141_v63 = vld [vmem:[#allocation2 + $0x2a4] sm:$0xf] }
 0x73c   :  { %4878 = vmatpush.bf16.msrb.mxu1 %v6076_v25  ;;  %v4692_v15 = vadd.f32 %v4691_v8, %v4679_v29  ;;  %v4704_v36 = vpop.f32.mrf.mxu2  ;;  %v6097_v25 = vld [vmem:[#allocation2 + $0x218] sm:$0xf0]  ;;  %v4693_v30 = vpop.f32.mrf.mxu1  ;;  %v7145_v29 = vld [vmem:[#allocation2 + $0x2c4] sm:$0xf] }
 0x73d   :  { %v7159_v30 = vld [vmem:[#allocation2 + $0x334] sm:$0xf] }
 0x73e   :  { %4891 = vmatpush.bf16.msra.mxu2 %v6140_v14  ;;  %v7105_v14 = vld [vmem:[#allocation2 + $0x184] sm:$0xf] }
 0x73f   :  { %4866 = vmatpush.bf16.msrb.mxu3 %v6004_v27  ;;  %v10357_v27 = vadd.f32 %v4704_v36, %v4692_v15  ;;  %v6188_v15 = vor.u32 %v7145_v29, %v6185_v28  ;;  %v6313_v36 = vld [vmem:[#allocation2 + $0x3c8] sm:$0xf0]  ;;  %v7169_v29 = vld [vmem:[#allocation2 + $0x384] sm:$0xf] }
 0x740   :  { %4879 = vmatpush.bf16.msrb.mxu1 %v6068_v52  ;;  %v6100_v52 = vor.u32 %v7123_v49, %v6097_v25  ;;  %v7143_v49 = vld [vmem:[#allocation2 + $0x2b4] sm:$0xf]  ;;  %v6177_v25 = vld [vmem:[#allocation2 + $0x2b8] sm:$0xf0]  ;;  %v6281_v28 = vld [vmem:[#allocation2 + $0x388] sm:$0xf0] }
 0x741   :  { %v4680_v1 = vpop.f32.mrf.mxu3 }
 0x742   :  { %4892 = vmatpush.bf16.msra.mxu2 %v6132_v5  ;;  %v6089_v5 = vld [vmem:[#allocation2 + $0x208] sm:$0xf0]  ;;  %v6161_v1 = vld [vmem:[#allocation2 + $0x298] sm:$0xf0] }
 0x743   :  { %4867 = vmatpush.bf16.msrb.mxu3 %v5996_v44  ;;  %v6028_v44 = vor.u32 %v7105_v14, %v6025_v38  ;;  %v7175_v14 = vld [vmem:[#allocation2 + $0x3b4] sm:$0xf]  ;;  %v6305_v38 = vld [vmem:[#allocation2 + $0x3b8] sm:$0xf0] }
 0x744   :  { %4880 = vmatpush.bf16.msrb.mxu1 %v6060_v19  ;;  %v6337_v19 = vld [vmem:[#allocation2 + $0x3f8] sm:$0xf0]  ;;  %v4706_v8 = vpop.f32.mrf.mxu2 }
 0x745   :  { %v6340_v10 = vor.u32 %v7183_v34, %v6337_v19  ;;  %v6236_v34 = vor.u32 %v7157_v50, %v6233_v31  ;;  %v7139_v19 = vld [vmem:[#allocation2 + $0x294] sm:$0xf]  ;;  %v6449_v31 = vld [vmem:[#allocation2 + $0x4d8] sm:$0xf0] }
 0x746   :  { %4893 = vmatpush.bf16.msra.mxu2 %v6124_v46  ;;  %v6092_v46 = vor.u32 %v7121_v48, %v6089_v5  ;;  %v7173_v5 = vld [vmem:[#allocation2 + $0x3a4] sm:$0xf]  ;;  %v7171_v8 = vld [vmem:[#allocation2 + $0x394] sm:$0xf] }
 0x747   :  { %4868 = vmatpush.bf16.msrb.mxu3 %v5988_v7  ;;  %v7165_v7 = vld [vmem:[#allocation2 + $0x364] sm:$0xf]  ;;  %v7211_v50 = vld [vmem:[#allocation2 + $0x4d4] sm:$0xf] }
 0x748   :  { %4881 = vmatpush.bf16.msrb.mxu1 %v6052_v2  ;;  %v6204_v2 = vor.u32 %v7149_v53, %v6201_v21  ;;  %v6268_v40 = vor.u32 %v7165_v7, %v6265_v35  ;;  %v7155_v53 = vld [vmem:[#allocation2 + $0x314] sm:$0xf]  ;;  %v6225_v21 = vld [vmem:[#allocation2 + $0x318] sm:$0xf0] }
 0x749   :  { %v6228_v55 = vor.u32 %v7155_v53, %v6225_v21  ;;  %v7225_v21 = vld [vmem:[#allocation2 + $0x544] sm:$0xf] }
 0x74a   :  { %4894 = vmatpush.bf16.msra.mxu2 %v6116_v9  ;;  %v6193_v9 = vld [vmem:[#allocation2 + $0x2d8] sm:$0xf0] }
 0x74b   :  { %4869 = vmatpush.bf16.msrb.mxu3 %v5980_v18  ;;  %v7163_v18 = vld [vmem:[#allocation2 + $0x354] sm:$0xf] }
 0x74c   :  { %4882 = vmatpush.bf16.msrb.mxu1 %v6044_v17  ;;  %v6196_v17 = vor.u32 %v7147_v12, %v6193_v9  ;;  %v6260_v0 = vor.u32 %v7163_v18, %v6257_v51  ;;  %v6153_v12 = vld [vmem:[#allocation2 + $0x288] sm:$0xf0]  ;;  %v7153_v9 = vld [vmem:[#allocation2 + $0x304] sm:$0xf] }
 0x74d   :  { %v6217_v51 = vld [vmem:[#allocation2 + $0x308] sm:$0xf0] }
 0x74e   :  { %4895 = vmatpush.bf16.msra.mxu2 %v6108_v22  ;;  %v6249_v22 = vld [vmem:[#allocation2 + $0x348] sm:$0xf0] }
 0x74f   :  { %4870 = vmatpush.bf16.msrb.mxu3 %v5972_v45  ;;  %v7177_v45 = vld [vmem:[#allocation2 + $0x3c4] sm:$0xf] }
 0x750   :  { %4883 = vmatpush.bf16.msrb.mxu1 %v6036_v47  ;;  %v6241_v47 = vld [vmem:[#allocation2 + $0x338] sm:$0xf0]  ;;  %v6316_v54 = vor.u32 %v7177_v45, %v6313_v36 }
 0x751   :  { %v6244_v11 = vor.u32 %v7159_v30, %v6241_v47  ;;  %v7213_v30 = vld [vmem:[#allocation2 + $0x4e4] sm:$0xf]  ;;  %v6457_v47 = vld [vmem:[#allocation2 + $0x4e8] sm:$0xf0] }
 0x752   :  { %4896 = vmatpush.bf16.msra.mxu2 %v6100_v52  ;;  %v6169_v52 = vld [vmem:[#allocation2 + $0x2a8] sm:$0xf0] }
 0x753   :  { %4871 = vmatpush.bf16.msrb.mxu3 %v5964_v62  ;;  %v6308_v62 = vor.u32 %v7175_v14, %v6305_v38  ;;  %v6172_v48 = vor.u32 %v7141_v63, %v6169_v52  ;;  %v7229_v14 = vld [vmem:[#allocation2 + $0x564] sm:$0xf]  ;;  %v6521_v38 = vld [vmem:[#allocation2 + $0x568] sm:$0xf0]  ;;  %v7195_v63 = vld [vmem:[#allocation2 + $0x454] sm:$0xf] }
 0x754   :  { %4884 = vmatpush.bf16.msrb.mxu1 %v6028_v44  ;;  %v4730_v24 = vpop.f32.mrf.mxu1  ;;  %v6297_v44 = vld [vmem:[#allocation2 + $0x3a8] sm:$0xf0]  ;;  %v6385_v52 = vld [vmem:[#allocation2 + $0x458] sm:$0xf0] }
 0x756   :  { %4897 = vmatpush.bf16.msra.mxu2 %v6092_v46  ;;  %4872 = vmatmul.bf16.vlgmr.msrb.gmra.mxu3 %v10305_v59  ;;  %v6324_v59 = vor.u32 %v7179_v41, %v6321_v33  ;;  %v6300_v46 = vor.u32 %v7173_v5, %v6297_v44  ;;  %v7215_v41 = vld [vmem:[#allocation2 + $0x4f4] sm:$0xf]  ;;  %v6465_v33 = vld [vmem:[#allocation2 + $0x4f8] sm:$0xf0] }
 0x757   :  { %4903 = vmatpush.bf16.msra.mxu3 %v6212_v4  ;;  %4885 = vmatmul.bf16.vlgmr.msrb.gmra.mxu1 %v10307_v26  ;;  %v6252_v26 = vor.u32 %v7161_v16, %v6249_v22  ;;  %v6220_v16 = vor.u32 %v7153_v9, %v6217_v51  ;;  %v6468_v36 = vor.u32 %v7215_v41, %v6465_v33  ;;  %v7227_v5 = vld [vmem:[#allocation2 + $0x554] sm:$0xf]  ;;  %v6513_v44 = vld [vmem:[#allocation2 + $0x558] sm:$0xf0]  ;;  %v7189_v9 = vld [vmem:[#allocation2 + $0x424] sm:$0xf] }
 0x758   :  { %4916 = vmatpush.bf16.msra.mxu1 %v6276_v58  ;;  %v6361_v51 = vld [vmem:[#allocation2 + $0x428] sm:$0xf0]  ;;  %v7221_v33 = vld [vmem:[#allocation2 + $0x524] sm:$0xf] }
 0x759   :  { %4898 = vmatmul.bf16.vlgmr.msra.gmra.mxu2 %v10309_v39  ;;  %v6180_v39 = vor.u32 %v7143_v49, %v6177_v25  ;;  %v4717_v4 = vpop.f32.mrf.mxu3  ;;  %v6393_v49 = vld [vmem:[#allocation2 + $0x468] sm:$0xf0]  ;;  %v6284_v25 = vor.u32 %v7169_v29, %v6281_v28  ;;  %v6364_v41 = vor.u32 %v7189_v9, %v6361_v51 }
 0x75a   :  { %4929 = vmatpush.bf16.msrb.mxu2 %v6340_v10  ;;  %v4718_v58 = vadd.f32 %v4717_v4, %v10357_v27  ;;  %v6164_v10 = vor.u32 %v7139_v19, %v6161_v1  ;;  %v7199_v27 = vld [vmem:[#allocation2 + $0x474] sm:$0xf]  ;;  %v6452_v4 = vor.u32 %v7211_v50, %v6449_v31  ;;  %v6377_v19 = vld [vmem:[#allocation2 + $0x448] sm:$0xf0]  ;;  %v7209_v1 = vld [vmem:[#allocation2 + $0x4c4] sm:$0xf] }
 0x75b   :  { %4904 = vmatpush.bf16.msra.mxu3 %v6204_v2  ;;  %v6289_v2 = vld [vmem:[#allocation2 + $0x398] sm:$0xf0] }
 0x75c   :  { %4917 = vmatpush.bf16.msra.mxu1 %v6268_v40  ;;  %v4731_v7 = vadd.f32 %v4730_v24, %v4718_v58  ;;  %v4743_v35 = vpop.f32.mrf.mxu2  ;;  %v4732_v43 = vpop.f32.mrf.mxu1  ;;  %v7137_v40 = vld [vmem:[#allocation2 + $0x284] sm:$0xf]  ;;  %v6441_v58 = vld [vmem:[#allocation2 + $0x4c8] sm:$0xf0]  ;;  %v6657_v50 = vld [vmem:[#allocation2 + $0x678] sm:$0xf0] }
 0x75e   :  { %4930 = vmatpush.bf16.msrb.mxu2 %v6332_v6  ;;  %v10363_v18 = vadd.f32 %v4743_v35, %v4731_v7  ;;  %v6401_v6 = vld [vmem:[#allocation2 + $0x478] sm:$0xf0]  ;;  %v7191_v7 = vld [vmem:[#allocation2 + $0x434] sm:$0xf] }
 0x75f   :  { %4905 = vmatpush.bf16.msra.mxu3 %v6196_v17  ;;  %v6292_v17 = vor.u32 %v7171_v8, %v6289_v2  ;;  %v6404_v22 = vor.u32 %v7199_v27, %v6401_v6  ;;  %v6369_v35 = vld [vmem:[#allocation2 + $0x438] sm:$0xf0]  ;;  %v7205_v27 = vld [vmem:[#allocation2 + $0x4a4] sm:$0xf]  ;;  %v6425_v6 = vld [vmem:[#allocation2 + $0x4a8] sm:$0xf0] }
 0x760   :  { %4918 = vmatpush.bf16.msra.mxu1 %v6260_v0  ;;  %v6156_v0 = vor.u32 %v7137_v40, %v6153_v12  ;;  %v6433_v8 = vld [vmem:[#allocation2 + $0x4b8] sm:$0xf0]  ;;  %v6428_v28 = vor.u32 %v7205_v27, %v6425_v6  ;;  %v7275_v27 = vld [vmem:[#allocation2 + $0x6d4] sm:$0xf] }
 0x761   :  { %v4719_v45 = vpop.f32.mrf.mxu3  ;;  %v6497_v40 = vld [vmem:[#allocation2 + $0x538] sm:$0xf0] }
 0x762   :  { %4931 = vmatpush.bf16.msrb.mxu2 %v6324_v59  ;;  %v7231_v59 = vld [vmem:[#allocation2 + $0x574] sm:$0xf]  ;;  %v6705_v6 = vld [vmem:[#allocation2 + $0x6d8] sm:$0xf0] }
 0x763   :  { %4906 = vmatpush.bf16.msra.mxu3 %v6188_v15  ;;  %v6529_v15 = vld [vmem:[#allocation2 + $0x578] sm:$0xf0] }
 0x764   :  { %4919 = vmatpush.bf16.msra.mxu1 %v6252_v26  ;;  %v7197_v26 = vld [vmem:[#allocation2 + $0x464] sm:$0xf] }
 0x765   :  { %v6396_v24 = vor.u32 %v7197_v26, %v6393_v49  ;;  %v7219_v49 = vld [vmem:[#allocation2 + $0x514] sm:$0xf] }
 0x766   :  { %4932 = vmatpush.bf16.msrb.mxu2 %v6316_v54  ;;  %v6532_v54 = vor.u32 %v7231_v59, %v6529_v15  ;;  %v7203_v59 = vld [vmem:[#allocation2 + $0x494] sm:$0xf]  ;;  %v6417_v15 = vld [vmem:[#allocation2 + $0x498] sm:$0xf0] }
 0x767   :  { %4907 = vmatpush.bf16.msra.mxu3 %v6180_v39  ;;  %v4745_v39 = vpop.f32.mrf.mxu2 }
 0x768   :  { %4920 = vmatpush.bf16.msra.mxu1 %v6244_v11  ;;  %v6460_v11 = vor.u32 %v7213_v30, %v6457_v47  ;;  %v6420_v47 = vor.u32 %v7203_v59, %v6417_v15  ;;  %v6345_v39 = vld [vmem:[#allocation2 + $0x408] sm:$0xf0]  ;;  %v7239_v15 = vld [vmem:[#allocation2 + $0x5b4] sm:$0xf] }
 0x769   :  { %v6697_v59 = vld [vmem:[#allocation2 + $0x6c8] sm:$0xf0] }
 0x76a   :  { %4933 = vmatpush.bf16.msrb.mxu2 %v6308_v62  ;;  %v6524_v62 = vor.u32 %v7229_v14, %v6521_v38  ;;  %v6409_v14 = vld [vmem:[#allocation2 + $0x488] sm:$0xf0]  ;;  %v7247_v38 = vld [vmem:[#allocation2 + $0x5f4] sm:$0xf] }
 0x76b   :  { %4908 = vmatpush.bf16.msra.mxu3 %v6172_v48  ;;  %v6388_v48 = vor.u32 %v7195_v63, %v6385_v52  ;;  %v7263_v52 = vld [vmem:[#allocation2 + $0x674] sm:$0xf] }
 0x76c   :  { %4921 = vmatpush.bf16.msra.mxu1 %v6236_v34  ;;  %v7193_v34 = vld [vmem:[#allocation2 + $0x444] sm:$0xf] }
 0x76d   :  { %v6380_v53 = vor.u32 %v7193_v34, %v6377_v19  ;;  %v6721_v34 = vld [vmem:[#allocation2 + $0x6f8] sm:$0xf0] }
 0x76e   :  { %4934 = vmatpush.bf16.msrb.mxu2 %v6300_v46  ;;  %v6505_v46 = vld [vmem:[#allocation2 + $0x548] sm:$0xf0] }
 0x76f   :  { %4909 = vmatpush.bf16.msra.mxu3 %v6164_v10  ;;  %v7207_v10 = vld [vmem:[#allocation2 + $0x4b4] sm:$0xf]  ;;  %v6508_v2 = vor.u32 %v7225_v21, %v6505_v46  ;;  %v7261_v21 = vld [vmem:[#allocation2 + $0x664] sm:$0xf]  ;;  %v6649_v46 = vld [vmem:[#allocation2 + $0x668] sm:$0xf0] }
 0x770   :  { %4922 = vmatpush.bf16.msra.mxu1 %v6228_v55  ;;  %v7223_v55 = vld [vmem:[#allocation2 + $0x534] sm:$0xf]  ;;  %v6436_v12 = vor.u32 %v7207_v10, %v6433_v8  ;;  %v7277_v10 = vld [vmem:[#allocation2 + $0x6e4] sm:$0xf]  ;;  %v6713_v8 = vld [vmem:[#allocation2 + $0x6e8] sm:$0xf0] }
 0x771   :  { %v6716_v9 = vor.u32 %v7277_v10, %v6713_v8  ;;  %v6601_v10 = vld [vmem:[#allocation2 + $0x608] sm:$0xf0]  ;;  %v7295_v8 = vld [vmem:[#allocation2 + $0x774] sm:$0xf] }
 0x772   :  { %4935 = vmatpush.bf16.msrb.mxu2 %v6292_v17  ;;  %v6500_v17 = vor.u32 %v7223_v55, %v6497_v40  ;;  %v6577_v55 = vld [vmem:[#allocation2 + $0x5d8] sm:$0xf0]  ;;  %v7259_v40 = vld [vmem:[#allocation2 + $0x654] sm:$0xf] }
 0x773   :  { %4910 = vmatpush.bf16.msra.mxu3 %v6156_v0  ;;  %v6489_v0 = vld [vmem:[#allocation2 + $0x528] sm:$0xf0] }
 0x774   :  { %4923 = vmatpush.bf16.msra.mxu1 %v6220_v16  ;;  %v10368_v43 = vpop.f32.mrf.mxu1  ;;  %v7187_v16 = vld [vmem:[#allocation2 + $0x414] sm:$0xf]  ;;  %v6492_v45 = vor.u32 %v7221_v33, %v6489_v0  ;;  %v6569_v33 = vld [vmem:[#allocation2 + $0x5c8] sm:$0xf0]  ;;  %v7257_v0 = vld [vmem:[#allocation2 + $0x644] sm:$0xf] }
 0x776   :  { %4911 = vmatmul.bf16.vlgmr.msra.gmra.mxu3 %v10311_v3  ;;  %4936 = vmatpush.bf16.msrb.mxu2 %v6284_v25  ;;  %v6516_v3 = vor.u32 %v7227_v5, %v6513_v44  ;;  %v6481_v25 = vld [vmem:[#allocation2 + $0x518] sm:$0xf0] }
 0x777   :  { %4942 = vmatpush.bf16.msrb.mxu3 %v6404_v22  ;;  %4924 = vmatmul.bf16.vlgmr.msra.gmra.mxu1 %v10313_v13  ;;  %v6444_v13 = vor.u32 %v7209_v1, %v6441_v58  ;;  %v6353_v22 = vld [vmem:[#allocation2 + $0x418] sm:$0xf0]  ;;  %v6484_v63 = vor.u32 %v7219_v49, %v6481_v25  ;;  %v6660_v1 = vor.u32 %v7263_v52, %v6657_v50  ;;  %v7245_v58 = vld [vmem:[#allocation2 + $0x5e4] sm:$0xf] }
 0x778   :  { %4955 = vmatpush.bf16.msrb.mxu1 %v6468_v36  ;;  %v6356_v26 = vor.u32 %v7187_v16, %v6353_v22  ;;  %v7273_v22 = vld [vmem:[#allocation2 + $0x6c4] sm:$0xf]  ;;  %v6625_v49 = vld [vmem:[#allocation2 + $0x638] sm:$0xf0] }
 0x779   :  { %4937 = vmatmul.bf16.vlgmr.msrb.gmra.mxu2 %v10315_v23  ;;  %v6372_v23 = vor.u32 %v7191_v7, %v6369_v35  ;;  %v10370_v29 = vpop.f32.mrf.mxu3  ;;  %v6700_v25 = vor.u32 %v7273_v22, %v6697_v59  ;;  %v7269_v50 = vld [vmem:[#allocation2 + $0x6a4] sm:$0xf]  ;;  %v6841_v22 = vld [vmem:[#allocation2 + $0x7e8] sm:$0xf0]  ;;  %v7320_v59 = vld [vmem:[%s10484_s5 + $0x38] sm:$0xff] }
 0x77a   :  { %4968 = vmatpush.bf16.msra.mxu2 %v6532_v54  ;;  %v7185_v54 = vld [vmem:[#allocation2 + $0x404] sm:$0xf] }
 0x77b   :  { %4943 = vmatpush.bf16.msrb.mxu3 %v6396_v24  ;;  %v7201_v24 = vld [vmem:[#allocation2 + $0x484] sm:$0xf]  ;;  %v6348_v31 = vor.u32 %v7185_v54, %v6345_v39  ;;  %v6689_v54 = vld [vmem:[#allocation2 + $0x6b8] sm:$0xf0] }
 0x77c   :  { %4956 = vmatpush.bf16.msrb.mxu1 %v6460_v11  ;;  %v10372_v36 = vpop.f32.mrf.mxu2  ;;  %v4771_v30 = vpop.f32.mrf.mxu1  ;;  %v6593_v11 = vld [vmem:[#allocation2 + $0x5f8] sm:$0xf0]  ;;  %v6412_v5 = vor.u32 %v7201_v24, %v6409_v14  ;;  %v7237_v24 = vld [vmem:[#allocation2 + $0x5a4] sm:$0xf]  ;;  %v6553_v14 = vld [vmem:[#allocation2 + $0x5a8] sm:$0xf0] }
 0x77d   :  { %v6596_v44 = vor.u32 %v7247_v38, %v6593_v11  ;;  %v7253_v38 = vld [vmem:[#allocation2 + $0x624] sm:$0xf]  ;;  %v6617_v11 = vld [vmem:[#allocation2 + $0x628] sm:$0xf0]  ;;  %v6556_v52 = vor.u32 %v7237_v24, %v6553_v14 }
 0x77e   :  { %4969 = vmatpush.bf16.msra.mxu2 %v6524_v62  ;;  %v7217_v62 = vld [vmem:[#allocation2 + $0x504] sm:$0xf]  ;;  %v6825_v14 = vld [vmem:[#allocation2 + $0x7c8] sm:$0xf0] }
 0x77f   :  { %4944 = vmatpush.bf16.msrb.mxu3 %v6388_v48  ;;  %v6473_v48 = vld [vmem:[#allocation2 + $0x508] sm:$0xf0]  ;;  %v7305_v24 = vld [vmem:[#allocation2 + $0x7c4] sm:$0xf] }
 0x780   :  { %4957 = vmatpush.bf16.msrb.mxu1 %v6452_v4  ;;  %v7279_v4 = vld [vmem:[#allocation2 + $0x6f4] sm:$0xf] }
 0x781   :  { %v4758_v19 = vpop.f32.mrf.mxu3 }
 0x782   :  { %4970 = vmatpush.bf16.msra.mxu2 %v6516_v3  ;;  %v6585_v3 = vld [vmem:[#allocation2 + $0x5e8] sm:$0xf0] }
 0x783   :  { %4945 = vmatpush.bf16.msrb.mxu3 %v6380_v53  ;;  %v6476_v53 = vor.u32 %v7217_v62, %v6473_v48  ;;  %v6588_v35 = vor.u32 %v7245_v58, %v6585_v3  ;;  %v6620_v48 = vor.u32 %v7253_v38, %v6617_v11  ;;  %v7267_v3 = vld [vmem:[#allocation2 + $0x694] sm:$0xf] }
 0x784   :  { %4958 = vmatpush.bf16.msrb.mxu1 %v6444_v13  ;;  %v6724_v13 = vor.u32 %v7279_v4, %v6721_v34  ;;  %v4784_v7 = vpop.f32.mrf.mxu2  ;;  %v7251_v4 = vld [vmem:[#allocation2 + $0x614] sm:$0xf]  ;;  %v6609_v34 = vld [vmem:[#allocation2 + $0x618] sm:$0xf0] }
 0x785   :  { %v6537_v7 = vld [vmem:[#allocation2 + $0x588] sm:$0xf0] }
 0x786   :  { %4971 = vmatpush.bf16.msra.mxu2 %v6508_v2  ;;  %v6652_v2 = vor.u32 %v7261_v21, %v6649_v46  ;;  %v6612_v46 = vor.u32 %v7251_v4, %v6609_v34  ;;  %v7285_v4 = vld [vmem:[#allocation2 + $0x724] sm:$0xf]  ;;  %v6745_v34 = vld [vmem:[#allocation2 + $0x728] sm:$0xf0] }
 0x787   :  { %4946 = vmatpush.bf16.msrb.mxu3 %v6372_v23  ;;  %v7243_v23 = vld [vmem:[#allocation2 + $0x5d4] sm:$0xf] }
 0x788   :  { %4959 = vmatpush.bf16.msrb.mxu1 %v6436_v12  ;;  %v6641_v12 = vld [vmem:[#allocation2 + $0x658] sm:$0xf0]  ;;  %v6580_v51 = vor.u32 %v7243_v23, %v6577_v55  ;;  %v7311_v55 = vld [vmem:[#allocation2 + $0x7f4] sm:$0xf] }
 0x78a   :  { %4972 = vmatpush.bf16.msra.mxu2 %v6500_v17  ;;  %v6644_v17 = vor.u32 %v7259_v40, %v6641_v12  ;;  %v6849_v40 = vld [vmem:[#allocation2 + $0x7f8] sm:$0xf0] }
 0x78b   :  { %4947 = vmatpush.bf16.msrb.mxu3 %v6364_v41  ;;  %v7241_v41 = vld [vmem:[#allocation2 + $0x5c4] sm:$0xf] }
 0x78c   :  { %4960 = vmatpush.bf16.msrb.mxu1 %v6428_v28  ;;  %v6633_v28 = vld [vmem:[#allocation2 + $0x648] sm:$0xf0]  ;;  %v6572_v16 = vor.u32 %v7241_v41, %v6569_v33  ;;  %v6852_v41 = vor.u32 %v7311_v55, %v6849_v40  ;;  %v7293_v33 = vld [vmem:[#allocation2 + $0x764] sm:$0xf]  ;;  %v6801_v55 = vld [vmem:[#allocation2 + $0x798] sm:$0xf0] }
 0x78d   :  { %v7315_v40 = vld [vmem:[%s10484_s5 + $0x10] sm:$0xff] }
 0x78e   :  { %4973 = vmatpush.bf16.msra.mxu2 %v6492_v45  ;;  %v6561_v45 = vld [vmem:[#allocation2 + $0x5b8] sm:$0xf0] }
 0x78f   :  { %4948 = vmatpush.bf16.msrb.mxu3 %v6356_v26  ;;  %v7255_v26 = vld [vmem:[#allocation2 + $0x634] sm:$0xf] }
 0x790   :  { %4961 = vmatpush.bf16.msrb.mxu1 %v6420_v47  ;;  %v7271_v47 = vld [vmem:[#allocation2 + $0x6b4] sm:$0xf]  ;;  %v6628_v39 = vor.u32 %v7255_v26, %v6625_v49  ;;  %v6769_v49 = vld [vmem:[#allocation2 + $0x758] sm:$0xf0] }
 0x791   :  { %v7291_v26 = vld [vmem:[#allocation2 + $0x754] sm:$0xf] }
 0x792   :  { %4974 = vmatpush.bf16.msra.mxu2 %v6484_v63  ;;  %v6692_v63 = vor.u32 %v7271_v47, %v6689_v54  ;;  %v6772_v47 = vor.u32 %v7291_v26, %v6769_v49 }
 0x793   :  { %4949 = vmatpush.bf16.msrb.mxu3 %v6348_v31  ;;  %v6681_v31 = vld [vmem:[#allocation2 + $0x6a8] sm:$0xf0] }
 0x794   :  { %4962 = vmatpush.bf16.msrb.mxu1 %v6412_v5  ;;  %v10377_v30 = vpop.f32.mrf.mxu1  ;;  %v7235_v5 = vld [vmem:[#allocation2 + $0x594] sm:$0xf]  ;;  %v6684_v19 = vor.u32 %v7269_v50, %v6681_v31  ;;  %v6817_v31 = vld [vmem:[#allocation2 + $0x7b8] sm:$0xf0] }
 0x795   :  { %v7303_v50 = vld [vmem:[#allocation2 + $0x7b4] sm:$0xf] }
 0x796   :  { %4950 = vmatmul.bf16.vlgmr.msrb.gmra.mxu3 %v10317_v56  ;;  %4975 = vmatpush.bf16.msra.mxu2 %v6476_v53  ;;  %v6708_v56 = vor.u32 %v7275_v27, %v6705_v6  ;;  %v6673_v53 = vld [vmem:[#allocation2 + $0x698] sm:$0xf0] }
 0x797   :  { %4981 = vmatpush.bf16.msra.mxu3 %v6596_v44  ;;  %4963 = vmatmul.bf16.vlgmr.msrb.gmra.mxu1 %v10319_v20  ;;  %v6636_v20 = vor.u32 %v7257_v0, %v6633_v28  ;;  %v6545_v44 = vld [vmem:[#allocation2 + $0x598] sm:$0xf0]  ;;  %v6676_v23 = vor.u32 %v7267_v3, %v6673_v53  ;;  %v6777_v0 = vld [vmem:[#allocation2 + $0x768] sm:$0xf0]  ;;  %v4757_v28 = vadd.f32 %v10370_v29, %v10363_v18  ;;  %v7307_v18 = vld [vmem:[#allocation2 + $0x7d4] sm:$0xf] }
 0x798   :  { %4994 = vmatpush.bf16.msra.mxu1 %v6660_v1  ;;  %v6548_v58 = vor.u32 %v7235_v5, %v6545_v44  ;;  %v6833_v29 = vld [vmem:[#allocation2 + $0x7d8] sm:$0xf0]  ;;  %v7522_v3 = vld [vmem:[%s10483_s4] sm:$0x3] }
 0x799   :  { %4976 = vmatmul.bf16.vlgmr.msra.gmra.mxu2 %v10321_v57  ;;  %v6564_v57 = vor.u32 %v7239_v15, %v6561_v45  ;;  %v10379_v62 = vpop.f32.mrf.mxu3  ;;  %v6780_v15 = vor.u32 %v7293_v33, %v6777_v0  ;;  %v6836_v54 = vor.u32 %v7307_v18, %v6833_v29  ;;  %v3347_v53 = vperm.slane %v7522_v3, 1  ;;  %v7297_v33 = vld [vmem:[#allocation2 + $0x784] sm:$0xf]  ;;  %v6793_v0 = vld [vmem:[#allocation2 + $0x788] sm:$0xf0] }
 0x79a   :  { %5007 = vmatpush.bf16.msrb.mxu2 %v6724_v13  ;;  %v7233_v13 = vld [vmem:[#allocation2 + $0x584] sm:$0xf] }
 0x79b   :  { %4982 = vmatpush.bf16.msra.mxu3 %v6588_v35  ;;  %v7249_v35 = vld [vmem:[#allocation2 + $0x604] sm:$0xf]  ;;  %v6540_v12 = vor.u32 %v7233_v13, %v6537_v7 }
 0x79c   :  { %4995 = vmatpush.bf16.msra.mxu1 %v6652_v2  ;;  %v10381_v1 = vpop.f32.mrf.mxu2  ;;  %v4810_v21 = vpop.f32.mrf.mxu1  ;;  %v6785_v2 = vld [vmem:[#allocation2 + $0x778] sm:$0xf0]  ;;  %v6604_v27 = vor.u32 %v7249_v35, %v6601_v10  ;;  %v7283_v35 = vld [vmem:[#allocation2 + $0x714] sm:$0xf] }
 0x79d   :  { %v6788_v6 = vor.u32 %v7295_v8, %v6785_v2  ;;  %v7316_v21 = vld [vmem:[%s10484_s5 + $0x18] sm:$0xff] }
 0x79e   :  { %5008 = vmatpush.bf16.msrb.mxu2 %v6716_v9  ;;  %v7265_v9 = vld [vmem:[#allocation2 + $0x684] sm:$0xf]  ;;  %v6737_v10 = vld [vmem:[#allocation2 + $0x718] sm:$0xf0] }
 0x79f   :  { %4983 = vmatpush.bf16.msra.mxu3 %v6580_v51  ;;  %v6665_v51 = vld [vmem:[#allocation2 + $0x688] sm:$0xf0] }
 0x7a0   :  { %4996 = vmatpush.bf16.msra.mxu1 %v6644_v17 }
 0x7a1   :  { %v4797_v17 = vpop.f32.mrf.mxu3 }
 0x7a2   :  { %5009 = vmatpush.bf16.msrb.mxu2 %v6708_v56  ;;  %v6668_v56 = vor.u32 %v7265_v9, %v6665_v51  ;;  %v6740_v9 = vor.u32 %v7283_v35, %v6737_v10  ;;  %v6729_v17 = vld [vmem:[#allocation2 + $0x708] sm:$0xf0] }
 0x7a3   :  { %4984 = vmatpush.bf16.msra.mxu3 %v6572_v16  ;;  %v7309_v16 = vld [vmem:[#allocation2 + $0x7e4] sm:$0xf] }
 0x7a4   :  { %4997 = vmatpush.bf16.msra.mxu1 %v6636_v20  ;;  %v4823_v20 = vpop.f32.mrf.mxu2  ;;  %v6844_v45 = vor.u32 %v7309_v16, %v6841_v22  ;;  %v6796_v16 = vor.u32 %v7297_v33, %v6793_v0  ;;  %v7322_v33 = vld [vmem:[%s10484_s5 + $0x48] sm:$0xff] }
 0x7a6   :  { %5010 = vmatpush.bf16.msrb.mxu2 %v6700_v25  ;;  %v4770_v25 = vadd.f32 %v10368_v43, %v4757_v28  ;;  %v6761_v43 = vld [vmem:[#allocation2 + $0x748] sm:$0xf0] }
 0x7a7   :  { %4985 = vmatpush.bf16.msra.mxu3 %v6564_v57  ;;  %v7319_v57 = vld [vmem:[%s10484_s5 + $0x30] sm:$0xff]  ;;  %v7314_v28 = vld [vmem:[%s10484_s5 + $0x8] sm:$0xff] }
 0x7a8   :  { %4998 = vmatpush.bf16.msra.mxu1 %v6628_v39  ;;  %v7289_v39 = vld [vmem:[#allocation2 + $0x744] sm:$0xf] }
 0x7a9   :  { %v6764_v11 = vor.u32 %v7289_v39, %v6761_v43 }
 0x7aa   :  { %5011 = vmatpush.bf16.msrb.mxu2 %v6692_v63  ;;  %v6828_v63 = vor.u32 %v7305_v24, %v6825_v14 }
 0x7ab   :  { %4986 = vmatpush.bf16.msra.mxu3 %v6556_v52  ;;  %v7287_v52 = vld [vmem:[#allocation2 + $0x734] sm:$0xf] }
 0x7ac   :  { %4999 = vmatpush.bf16.msra.mxu1 %v6620_v48 }
 0x7ae   :  { %5012 = vmatpush.bf16.msrb.mxu2 %v6684_v19  ;;  %v7301_v19 = vld [vmem:[#allocation2 + $0x7a4] sm:$0xf] }
 0x7af   :  { %4987 = vmatpush.bf16.msra.mxu3 %v6548_v58  ;;  %v6809_v58 = vld [vmem:[#allocation2 + $0x7a8] sm:$0xf0] }
 0x7b0   :  { %5000 = vmatpush.bf16.msra.mxu1 %v6612_v46  ;;  %v6748_v46 = vor.u32 %v7285_v4, %v6745_v34  ;;  %v6812_v7 = vor.u32 %v7301_v19, %v6809_v58 }
 0x7b2   :  { %5013 = vmatpush.bf16.msrb.mxu2 %v6676_v23  ;;  %v7299_v23 = vld [vmem:[#allocation2 + $0x794] sm:$0xf] }
 0x7b3   :  { %4988 = vmatpush.bf16.msra.mxu3 %v6540_v12 }
 0x7b4   :  { %5001 = vmatpush.bf16.msra.mxu1 %v6604_v27  ;;  %v4847_v44 = vpop.f32.mrf.mxu1  ;;  %v6804_v27 = vor.u32 %v7299_v23, %v6801_v55  ;;  %v7326_v55 = vld [vmem:[%s10484_s5 + $0x68] sm:$0xff] }
 0x7b5   :  { %v4848_v8 = vadd.f32 %v4847_v44, %v3347_v53 }
 0x7b6   :  { %4989 = vmatmul.bf16.vlgmr.msra.gmra.mxu3 %v10323_v42  ;;  %5014 = vmatpush.bf16.msrb.mxu2 %v6668_v56  ;;  %v4783_v42 = vadd.f32 %v10372_v36, %v4770_v25  ;;  %v7317_v36 = vld [vmem:[%s10484_s5 + $0x20] sm:$0xff] }
 0x7b7   :  { %5020 = vmatpush.bf16.msrb.mxu3 %v6788_v6  ;;  %5002 = vmatmul.bf16.vlgmr.msra.gmra.mxu1 %v10325_v32  ;;  %v7318_v32 = vld [vmem:[%s10484_s5 + $0x28] sm:$0xff]  ;;  %v7281_v6 = vld [vmem:[#allocation2 + $0x704] sm:$0xf] }
 0x7b8   :  { %5033 = vmatpush.bf16.msrb.mxu1 %v6852_v41  ;;  %v4796_v38 = vadd.f32 %v10379_v62, %v4783_v42  ;;  %v6820_v62 = vor.u32 %v7303_v50, %v6817_v31  ;;  %v6732_v56 = vor.u32 %v7281_v6, %v6729_v17  ;;  %v7323_v6 = vld [vmem:[%s10484_s5 + $0x50] sm:$0xff] }
 0x7b9   :  { %5015 = vmatmul.bf16.vlgmr.msrb.gmra.mxu2 %v10327_v61  ;;  %v6753_v61 = vld [vmem:[#allocation2 + $0x738] sm:$0xf0]  ;;  %v4834_v13 = vpop.f32.mrf.mxu3 }
 0x7ba   :  { %5220 = vmatpush.bf16.msra.mxu2 %v7320_v59  ;;  %v4809_v48 = vadd.f32 %v10377_v30, %v4796_v38  ;;  %v6756_v5 = vor.u32 %v7287_v52, %v6753_v61  ;;  %v7313_v59 = vld [vmem:[%s10484_s5] sm:$0xff] }
 0x7bb   :  { %5021 = vmatpush.bf16.msrb.mxu3 %v6780_v15 }
 0x7bc   :  { %5034 = vmatpush.bf16.msrb.mxu1 %v6844_v45  ;;  %v4822_v30 = vadd.f32 %v10381_v1, %v4809_v48  ;;  %v4860_v1 = vpop.f32.mrf.mxu2  ;;  %v4849_v51 = vpop.f32.mrf.mxu1 }
 0x7bd   :  { %v4861_v41 = vadd.f32 %v4860_v1, %v4848_v8  ;;  %v7327_v8 = vld [vmem:[%s10484_s5 + $0x70] sm:$0xff]  ;;  %v7324_v51 = vld [vmem:[%s10484_s5 + $0x58] sm:$0xff] }
 0x7be   :  { %5221 = vmatpush.bf16.msra.mxu2 %v7319_v57  ;;  %v4835_v2 = vadd.f32 %v4834_v13, %v4822_v30 }
 0x7bf   :  { %5022 = vmatpush.bf16.msrb.mxu3 %v6772_v47 }
 0x7c0   :  { %5035 = vmatpush.bf16.msrb.mxu1 %v6836_v54  ;;  %v6853_v12 = vmul.f32 -1.442695, %v4835_v2 }
 0x7c1   :  { %v4836_v22 = vpop.f32.mrf.mxu3 }
 0x7c2   :  { %5222 = vmatpush.bf16.msra.mxu2 %v7318_v32  ;;  %7508 = vpow2.f32 %v6853_v12 }
 0x7c3   :  { %5023 = vmatpush.bf16.msrb.mxu3 %v6764_v11 }
 0x7c4   :  { %5036 = vmatpush.bf16.msrb.mxu1 %v6828_v63  ;;  %v4862_v15 = vpop.f32.mrf.mxu2 }
 0x7c6   :  { %5223 = vmatpush.bf16.msra.mxu2 %v7317_v36 }
 0x7c7   :  { %5024 = vmatpush.bf16.msrb.mxu3 %v6756_v5 }
 0x7c8   :  { %5037 = vmatpush.bf16.msrb.mxu1 %v6820_v62  ;;  %v7509_v20 = vpop.eup %7508 }
 0x7c9   :  { %v5052_v45 = vadd.f32 1.0, %v7509_v20 }
 0x7ca   :  { %5224 = vmatpush.bf16.msra.mxu2 %v7316_v21 }
 0x7cb   :  { %5025 = vmatpush.bf16.msrb.mxu3 %v6748_v46  ;;  %7510 = vrcp.f32 %v5052_v45  ;;  %v5065_v18 = vand.u32 2147483648, %v5052_v45  ;;  %v5063_v47 = vand.u32 2147483647, %v5052_v45  ;;  %vm5059_vm7 = vweird.f32 %v5052_v45 }
 0x7cc   :  { %5038 = vmatpush.bf16.msrb.mxu1 %v6812_v7  ;;  %v7328_v7 = vld [vmem:[%s10484_s5 + $0x78] sm:$0xff] }
 0x7cd   :  { %v5066_v39 = vor.u32 1.1754944e-38, %v5065_v18  ;;  %vm5064_vm11 = vcmp.eq.f32.partialorder %v5063_v47, 8.507059e+37 }
 0x7ce   :  { %5225 = vmatpush.bf16.msra.mxu2 %v7315_v40 }
 0x7cf   :  { %5026 = vmatpush.bf16.msrb.mxu3 %v6740_v9  ;;  %v7325_v9 = vld [vmem:[%s10484_s5 + $0x60] sm:$0xff] }
 0x7d0   :  { %5039 = vmatpush.bf16.msrb.mxu1 %v6804_v27 }
 0x7d1   :  { %v7511_v26 = vpop.eup %7510 }
 0x7d2   :  { %5226 = vmatpush.bf16.msra.mxu2 %v7314_v28  ;;  %v5055_v49 = vmul.f32 %v7511_v26, %v5052_v45  ;;  %vm5060_vm10 = vweird.f32 %v7511_v26 }
 0x7d3   :  { %5027 = vmatpush.bf16.msrb.mxu3 %v6732_v56  ;;  %vm5061_vm5 = vmor %vm5059_vm7, %vm5060_vm10 }
 0x7d4   :  { %5040 = vmatpush.bf16.msrb.mxu1 %v6796_v16  ;;  %v5056_v25 = vsub.f32 1.0, %v5055_v49  ;;  %v4886_v29 = vpop.f32.mrf.mxu1  ;;  %v7321_v16 = vld [vmem:[%s10484_s5 + $0x40] sm:$0xff] }
 0x7d6   :  { %5028 = vmatmul.bf16.vlgmr.msrb.gmra.mxu3 %v10329_v37  ;;  %5227 = vmatpush.bf16.msra.mxu2 %v7313_v59  ;;  %v5057_v57 = vmul.f32 %v7511_v26, %v5056_v25 }
 0x7d7   :  { %5041 = vmatmul.bf16.vlgmr.msrb.gmra.mxu1 %v10331_v60  ;;  %5233 = vmatpush.bf16.msra.mxu3 %v7328_v7 }
 0x7d8   :  { %v5058_v54 = vadd.f32 %v7511_v26, %v5057_v57 }
 0x7d9   :  { %v4873_v42 = vpop.f32.mrf.mxu3 }
 0x7da   :  { %v5062_v43 = vsel %vm5061_vm5, %v7511_v26, %v5058_v54  ;;  %v4874_v37 = vadd.f32 %v4873_v42, %v4861_v41 }
 0x7db   :  { %v5067_v24 = vsel %vm5064_vm11, %v5066_v39, %v5062_v43  ;;  %5234 = vmatpush.bf16.msra.mxu3 %v7327_v8 }
 0x7dc   :  { %v5084_v14 = vmul.f32 %v5067_v24, %v4835_v2  ;;  %v4887_v32 = vadd.f32 %v4886_v29, %v4874_v37  ;;  %v4899_v60 = vpop.f32.mrf.mxu2  ;;  %v4888_v38 = vpop.f32.mrf.mxu1 }
 0x7dd   :  { %v7335_v38 = vld [vmem:[%s10486_s7 + $0x30] sm:$0xff] }
 0x7de   :  { %v5086_v11 = vpack.c.bf16 %v5084_v14, %v5084_v14  ;;  %v4900_v63 = vadd.f32 %v4899_v60, %v4887_v32  ;;  %v7336_v60 = vld [vmem:[%s10486_s7 + $0x38] sm:$0xff] }
 0x7df   :  { %5235 = vmatpush.bf16.msra.mxu3 %v7326_v55  ;;  %5335 = vmatpush.bf16.msra.mxu1 %v7336_v60 }
 0x7e0   :  { %5228 = vmatmul.bf16.vlgmr.msra.gmra.mxu2 %v5086_v11  ;;  %v7334_v11 = vld [vmem:[%s10486_s7 + $0x28] sm:$0xff] }
 0x7e1   :  { %v4875_v52 = vpop.f32.mrf.mxu3 }
 0x7e2   :  { %v7332_v52 = vld [vmem:[%s10486_s7 + $0x18] sm:$0xff] }
 0x7e3   :  { %5236 = vmatpush.bf16.msra.mxu3 %v7325_v9  ;;  %5336 = vmatpush.bf16.msra.mxu1 %v7335_v38 }
 0x7e4   :  { %v4901_v61 = vpop.f32.mrf.mxu2 }
 0x7e5   :  { %v7331_v61 = vld [vmem:[%s10486_s7 + $0x10] sm:$0xff] }
 0x7e7   :  { %5237 = vmatpush.bf16.msra.mxu3 %v7324_v51  ;;  %5337 = vmatpush.bf16.msra.mxu1 %v7334_v11 }
 0x7eb   :  { %5238 = vmatpush.bf16.msra.mxu3 %v7323_v6 }
 0x7ef   :  { %5239 = vmatpush.bf16.msra.mxu3 %v7322_v33 }
 0x7f3   :  { %5240 = vmatpush.bf16.msra.mxu3 %v7321_v16 }
 0x7f4   :  { %v4925_v50 = vpop.f32.mrf.mxu1 }
 0x7f9   :  { %v4912_v31 = vpop.f32.mrf.mxu3 }
 0x7fa   :  { %v4913_v36 = vadd.f32 %v4912_v31, %v4900_v63  ;;  %v7333_v63 = vld [vmem:[%s10486_s7 + $0x20] sm:$0xff]  ;;  %v7330_v31 = vld [vmem:[%s10486_s7 + $0x8] sm:$0xff] }
 0x7fb   :  { %5338 = vmatpush.bf16.msra.mxu1 %v7333_v63 }
 0x7fc   :  { %v4926_v48 = vadd.f32 %v4925_v50, %v4913_v36  ;;  %v4938_v5 = vpop.f32.mrf.mxu2  ;;  %v4927_v44 = vpop.f32.mrf.mxu1  ;;  %v7506_v50 = vld [vmem:[%s10485_s6] ss:$0 sm:$0xff] }
 0x7fe   :  { %v4939_v62 = vadd.f32 %v4938_v5, %v4926_v48  ;;  %v7329_v48 = vld [vmem:[%s10486_s7] sm:$0xff] }
 0x7ff   :  { %5339 = vmatpush.bf16.msra.mxu1 %v7332_v52 }
 0x801   :  { %v4914_v4 = vpop.f32.mrf.mxu3 }
 0x803   :  { %5340 = vmatpush.bf16.msra.mxu1 %v7331_v61 }
 0x804   :  { %v4940_v34 = vpop.f32.mrf.mxu2 }
 0x807   :  { %5341 = vmatpush.bf16.msra.mxu1 %v7330_v31 }
 0x80b   :  { %5342 = vmatpush.bf16.msra.mxu1 %v7329_v48 }
 0x814   :  { %v4964_v19 = vpop.f32.mrf.mxu1 }
 0x819   :  { %v4951_v58 = vpop.f32.mrf.mxu3 }
 0x81a   :  { %v4952_v23 = vadd.f32 %v4951_v58, %v4939_v62 }
 0x81c   :  { %v4977_v3 = vpop.f32.mrf.mxu2  ;;  %v4966_v53 = vpop.f32.mrf.mxu1  ;;  %v4965_v12 = vadd.f32 %v4964_v19, %v4952_v23  ;;  %v7507_v23 = vld [vmem:[%s10487_s8] ss:$0 sm:$0xff] }
 0x81e   :  { %v4978_v1 = vadd.f32 %v4977_v3, %v4965_v12 }
 0x821   :  { %v4953_v21 = vpop.f32.mrf.mxu3 }
 0x824   :  { %v4979_v30 = vpop.f32.mrf.mxu2 }
 0x834   :  { %v5003_v46 = vpop.f32.mrf.mxu1 }
 0x839   :  { %v4990_v13 = vpop.f32.mrf.mxu3 }
 0x83a   :  { %v4991_v27 = vadd.f32 %v4990_v13, %v4978_v1 }
 0x83c   :  { %v5016_v35 = vpop.f32.mrf.mxu2  ;;  %v5005_v10 = vpop.f32.mrf.mxu1  ;;  %v5004_v17 = vadd.f32 %v5003_v46, %v4991_v27 }
 0x83e   :  { %v5017_v0 = vadd.f32 %v5016_v35, %v5004_v17 }
 0x841   :  { %v4992_v2 = vpop.f32.mrf.mxu3 }
 0x844   :  { %v5018_v40 = vpop.f32.mrf.mxu2 }
 0x854   :  { %v5042_v41 = vpop.f32.mrf.mxu1 }
 0x859   :  { %v5029_v28 = vpop.f32.mrf.mxu3 }
 0x85a   :  { %v5030_v56 = vadd.f32 %v5029_v28, %v5017_v0 }
 0x85c   :  { %v5043_v22 = vadd.f32 %v5042_v41, %v5030_v56  ;;  %v5044_v59 = vpop.f32.mrf.mxu1 }
 0x85e   :  { %v6854_v20 = vmul.f32 -1.442695, %v5043_v22 }
 0x860   :  { %7512 = vpow2.f32 %v6854_v20 }
 0x861   :  { %v5031_v15 = vpop.f32.mrf.mxu3 }
 0x863   :  { %v5229_v49 = vpop.f32.mrf.mxu2 }
 0x864   :  { %v5230_v36 = vadd.f32 %v7506_v50, %v5229_v49 }
 0x866   :  { %v7513_v45 = vpop.eup %7512 }
 0x867   :  { %v5053_v26 = vadd.f32 1.0, %v7513_v45 }
 0x869   :  { %7514 = vrcp.f32 %v5053_v26  ;;  %v5080_v57 = vand.u32 2147483648, %v5053_v26  ;;  %v5078_v54 = vand.u32 2147483647, %v5053_v26  ;;  %vm5074_vm2 = vweird.f32 %v5053_v26 }
 0x86b   :  { %v5231_v43 = vpop.f32.mrf.mxu2  ;;  %v5081_v42 = vor.u32 1.1754944e-38, %v5080_v57  ;;  %vm5079_vm14 = vcmp.eq.f32.partialorder %v5078_v54, 8.507059e+37 }
 0x86f   :  { %v7515_v25 = vpop.eup %7514 }
 0x870   :  { %v5070_v18 = vmul.f32 %v7515_v25, %v5053_v26  ;;  %vm5075_vm1 = vweird.f32 %v7515_v25 }
 0x871   :  { %vm5076_vm4 = vmor %vm5074_vm2, %vm5075_vm1 }
 0x872   :  { %v5071_v29 = vsub.f32 1.0, %v5070_v18 }
 0x874   :  { %v5072_v47 = vmul.f32 %v7515_v25, %v5071_v29 }
 0x876   :  { %v5073_v39 = vadd.f32 %v7515_v25, %v5072_v47 }
 0x878   :  { %v5077_v24 = vsel %vm5076_vm4, %v7515_v25, %v5073_v39 }
 0x879   :  { %v5082_v37 = vsel %vm5079_vm14, %v5081_v42, %v5077_v24 }
 0x87a   :  { %v5085_v14 = vmul.f32 %v5082_v37, %v5043_v22 }
 0x87c   :  { %v5087_v32 = vpack.c.bf16 %v5085_v14, %v5085_v14 }
 0x87e   :  { %5241 = vmatmul.bf16.vlgmr.msra.gmra.mxu3 %v5087_v32 }
 0x901   :  { %v5242_v5 = vpop.f32.mrf.mxu3 }
 0x902   :  { %v5243_v44 = vadd.f32 %v5242_v5, %v5230_v36 }
 0x904   :  { %v6919_v62 = vmul.f32 -1.442695, %v5243_v44 }
 0x906   :  { %7516 = vpow2.f32 %v6919_v62 }
 0x909   :  { %v5244_v4 = vpop.f32.mrf.mxu3 }
 0x90c   :  { %v7517_v34 = vpop.eup %7516 }
 0x90d   :  { %v5249_v19 = vadd.f32 1.0, %v7517_v34 }
 0x90f   :  { %7518 = vrcp.f32 %v5249_v19  ;;  %v5261_v21 = vand.u32 2147483648, %v5249_v19  ;;  %v5259_v46 = vand.u32 2147483647, %v5249_v19  ;;  %vm5255_vm0 = vweird.f32 %v5249_v19 }
 0x911   :  { %v5262_v7 = vor.u32 1.1754944e-38, %v5261_v21  ;;  %vm5260_vm9 = vcmp.eq.f32.partialorder %v5259_v46, 8.507059e+37 }
 0x915   :  { %v7519_v58 = vpop.eup %7518 }
 0x916   :  { %v5251_v3 = vmul.f32 %v7519_v58, %v5249_v19  ;;  %vm5256_vm13 = vweird.f32 %v7519_v58 }
 0x917   :  { %vm5257_vm3 = vmor %vm5255_vm0, %vm5256_vm13 }
 0x918   :  { %v5252_v53 = vsub.f32 1.0, %v5251_v3 }
 0x91a   :  { %v5253_v30 = vmul.f32 %v7519_v58, %v5252_v53 }
 0x91c   :  { %v5254_v13 = vadd.f32 %v7519_v58, %v5253_v30 }
 0x91e   :  { %v5258_v35 = vsel %vm5257_vm3, %v7519_v58, %v5254_v13 }
 0x91f   :  { %v5263_v10 = vsel %vm5260_vm9, %v5262_v7, %v5258_v35 }
 0x920   :  { %v5265_v8 = vmul.f32 %v5263_v10, %v5243_v44 }
 0x922   :  { %v5266_v2 = vpack.c.bf16 %v5265_v8, %v5265_v8 }
 0x924   :  { %5343 = vmatmul.bf16.vlgmr.msra.gmra.mxu1 %v5266_v2 }
 0x9a1   :  { %v5344_v55 = vpop.f32.mrf.mxu1 }
 0x9a2   :  { %v5345_v40 = vadd.f32 %v7507_v23, %v5344_v55 }
 0x9a4   :  { %7520 = vtanh.f32 %v5345_v40 }
 0x9a9   :  { %v5346_v12 = vpop.f32.mrf.mxu1 }
 0x9aa   :  { %v7521_v9 = vpop.eup %7520 }
 0x9ab   :  { %5350 = vst.msk [vmem:[#allocation4] sm:$0x3] %vm5349_vm8, %v7521_v9 }
 0x9ac   :  { %5361 = dma.vmem_to_hbm [thread:$0]  %s5357_s16, 32, %s5359_s18, [#allocation5]  }
 0x9ad   :  { %7549 = dma.done.wait [#allocation5], 32  }
 0x9ae   :  { %7550 = vsyncadd [#allocation5], 4294967264 }
 0x9af   :  { %5366 = vsyncpa [#allocation5], 1 }
 0x9b0   :  { %5367 = vsyncmov [#allocation3] }
 0x9b3   :  { %s5368_s8 = vpop.sfrf %5367 }
 0x9b4   :  { %p6952_p0 = scmp.ne.s32.totalorder %s5368_s8, 0 }
 0x9b6   :  { %5372 = shalt.err (%p6952_p0)  }

</bundles_post_ra>
